<compile_context>
chip_gen: v6e
topology: v6e:2x2x1
jax: 0.10.0
libtpu: 0.0.40
codegen_flags: <defaults>
</compile_context>

<pallas_src>
import math

import jax
import jax.numpy as jnp
from jax.experimental import pallas as pl
from jax.experimental.pallas import tpu as pltpu

F_IN = 30                 # creditcard.csv: 30 features after dropping 'Class'
F_PAD = 128               # features padded to a full lane width
H1, H2, H3 = 512, 256, 128
OUT_PAD = 128             # last layer N padded 1 -> 128 (lane-dense stores)
BM = 256                  # batch tile (sweepable; multiple of 256 for v6e MXU)


def _leaky_relu(x, slope=0.2):
    return jnp.where(x > 0, x, slope * x)


def disc_kernel(x_ref,
                w1_ref, b1_ref,
                w2_ref, b2_ref,
                w3_ref, b3_ref,
                w4_ref, b4_ref,
                o_ref):
    # All weights are (in, out) bf16 already — no transpose inside the kernel.
    # Layer 1: (BM, 128) @ (128, 512)
    h = jnp.dot(x_ref[...], w1_ref[...],
                preferred_element_type=jnp.float32) + b1_ref[...]
    h = _leaky_relu(h)
    # Layer 2: (BM, 512) @ (512, 256)
    h = jnp.dot(h.astype(jnp.bfloat16), w2_ref[...],
                preferred_element_type=jnp.float32) + b2_ref[...]
    h = _leaky_relu(h)
    # Layer 3: (BM, 256) @ (256, 128)
    h = jnp.dot(h.astype(jnp.bfloat16), w3_ref[...],
                preferred_element_type=jnp.float32) + b3_ref[...]
    h = _leaky_relu(h)
    # Layer 4: (BM, 128) @ (128, 128)  (only column 0 is real; rest is padding
    # so the output block is lane-dense)
    logits = jnp.dot(h.astype(jnp.bfloat16), w4_ref[...],
                     preferred_element_type=jnp.float32) + b4_ref[...]
    # sigmoid: exp on EUP, approx reciprocal on EUP (keeps VALU free)
    o_ref[...] = pl.reciprocal(1.0 + jnp.exp(-logits), approx=True)


def discriminator_forward(x, params, bm=BM):
    """x: (B, 30) float32; params: PyTorch-convention W{1..4} (out,in), b{1..4}."""
    B, F = x.shape
    assert F == F_IN
    bp = pl.cdiv(B, bm) * bm  # pad batch instead of asserting divisibility

    # --- one-time host/wrapper-side preparation -----------------------------
    # input: zero-pad batch -> bp and features 30 -> 128; cast to bf16
    xp = jnp.zeros((bp, F_PAD), jnp.float32).at[:B, :F_IN].set(x)
    xp = xp.astype(jnp.bfloat16)
    # weights: transpose to (in, out), pad K of W1 and N of W4, cast to bf16
    w1 = (jnp.zeros((F_PAD, H1), jnp.float32)
          .at[:F_IN, :].set(params["W1"].T).astype(jnp.bfloat16))
    w2 = params["W2"].T.astype(jnp.bfloat16)            # (512, 256)
    w3 = params["W3"].T.astype(jnp.bfloat16)            # (256, 128)
    w4 = (jnp.zeros((H3, OUT_PAD), jnp.float32)
          .at[:, :1].set(params["W4"].T).astype(jnp.bfloat16))
    # biases stay f32 (added after the f32 accumulator)
    b1 = params["b1"].reshape(1, H1)
    b2 = params["b2"].reshape(1, H2)
    b3 = params["b3"].reshape(1, H3)
    b4 = jnp.zeros((1, OUT_PAD), jnp.float32).at[:, :1].set(
        params["b4"].reshape(1, 1))

    grid = (bp // bm,)
    full = lambda a: pl.BlockSpec(a.shape, lambda i: (0,) * a.ndim)

    flops = 2 * bp * (F_PAD * H1 + H1 * H2 + H2 * H3 + H3 * OUT_PAD)
    bytes_accessed = (xp.size * 2
                      + (w1.size + w2.size + w3.size + w4.size) * 2
                      + (b1.size + b2.size + b3.size + b4.size) * 4
                      + bp * OUT_PAD * 4)

    out = pl.pallas_call(
        disc_kernel,
        out_shape=jax.ShapeDtypeStruct((bp, OUT_PAD), jnp.float32),
        grid_spec=pltpu.PrefetchScalarGridSpec(
            num_scalar_prefetch=0,
            grid=grid,
            in_specs=[
                pl.BlockSpec((bm, F_PAD), lambda i: (i, 0)),   # x tile
                full(w1), full(b1),
                full(w2), full(b2),
                full(w3), full(b3),
                full(w4), full(b4),
            ],
            out_specs=pl.BlockSpec((bm, OUT_PAD), lambda i: (i, 0)),
        ),
        compiler_params=pltpu.CompilerParams(
            dimension_semantics=("parallel",)),
        cost_estimate=pl.CostEstimate(
            flops=flops,
            transcendentals=2 * bp * OUT_PAD,
            bytes_accessed=bytes_accessed),
    )(xp, w1, b1, w2, b2, w3, b3, w4, b4)

    # drop batch padding and the 127 padded output lanes
    return out[:B, :1]


def init_params(key):
    """Deterministic init mimicking PyTorch Linear default (U[-1/sqrt(fan_in), +])."""
    dims = [(F_IN, H1), (H1, H2), (H2, H3), (H3, 1)]
    params = {}
    keys = jax.random.split(key, 2 * len(dims))
    for idx, (fan_in, fan_out) in enumerate(dims):
        bound = 1.0 / math.sqrt(fan_in)
        params[f"W{idx+1}"] = jax.random.uniform(
            keys[2 * idx], (fan_out, fan_in), jnp.float32, -bound, bound)
        params[f"b{idx+1}"] = jax.random.uniform(
            keys[2 * idx + 1], (fan_out,), jnp.float32, -bound, bound)
    return params


def reference_forward(x, p):
    h = x @ p["W1"].T + p["b1"]
    h = jnp.where(h > 0, h, 0.2 * h)
    h = h @ p["W2"].T + p["b2"]
    h = jnp.where(h > 0, h, 0.2 * h)
    h = h @ p["W3"].T + p["b3"]
    h = jnp.where(h > 0, h, 0.2 * h)
    h = h @ p["W4"].T + p["b4"]
    return jax.nn.sigmoid(h)


if __name__ == "__main__":
    key = jax.random.PRNGKey(0)
    kp, kx = jax.random.split(key)
    params = init_params(kp)

    # Small batch of "transactions", 30 standardized features each.
    # B is deliberately not a multiple of BM to exercise the padding path;
    # it pads to 512 -> a 2-step grid (keeps both v7x TensorCores busy).
    B = 300
    x = jax.random.normal(kx, (B, F_IN), jnp.float32)

    out = discriminator_forward(x, params)
    out = jax.block_until_ready(out)

    ref = reference_forward(x, params)
    assert out.shape == (B, 1)
    # bf16 MXU inputs (f32 accumulate) vs pure-f32 reference: loosen tolerance.
    assert jnp.allclose(out, ref, atol=2e-2, rtol=2e-2), "mismatch vs reference"
    print("KERNEL_OK")
</pallas_src>

<mosaic_0001>
module attributes {stable_mosaic.version = 11 : i64} {
  func.func @disc_kernel(%arg0: i32, %arg1: memref<256x128xbf16, #tpu.memory_space<vmem>>, %arg2: memref<128x512xbf16, #tpu.memory_space<vmem>>, %arg3: memref<1x512xf32, #tpu.memory_space<vmem>>, %arg4: memref<512x256xbf16, #tpu.memory_space<vmem>>, %arg5: memref<1x256xf32, #tpu.memory_space<vmem>>, %arg6: memref<256x128xbf16, #tpu.memory_space<vmem>>, %arg7: memref<1x128xf32, #tpu.memory_space<vmem>>, %arg8: memref<128x128xbf16, #tpu.memory_space<vmem>>, %arg9: memref<1x128xf32, #tpu.memory_space<vmem>>, %arg10: memref<256x128xf32, #tpu.memory_space<vmem>>) attributes {dimension_semantics = [#tpu.dimension_semantics<parallel>], iteration_bounds = array<i64: 2>, scalar_prefetch = 0 : i64, scratch_operands = 0 : i64, tpu.core_type = #tpu.core_type<tc>, window_params = [{transform_indices = @transform_0, window_bounds = array<i64: 256, 128>}, {pipeline_mode = #tpu.pipeline_mode<synchronous>, transform_indices = @transform_1, window_bounds = array<i64: 128, 512>}, {pipeline_mode = #tpu.pipeline_mode<synchronous>, transform_indices = @transform_2, window_bounds = array<i64: 1, 512>}, {pipeline_mode = #tpu.pipeline_mode<synchronous>, transform_indices = @transform_3, window_bounds = array<i64: 512, 256>}, {pipeline_mode = #tpu.pipeline_mode<synchronous>, transform_indices = @transform_4, window_bounds = array<i64: 1, 256>}, {pipeline_mode = #tpu.pipeline_mode<synchronous>, transform_indices = @transform_5, window_bounds = array<i64: 256, 128>}, {pipeline_mode = #tpu.pipeline_mode<synchronous>, transform_indices = @transform_6, window_bounds = array<i64: 1, 128>}, {pipeline_mode = #tpu.pipeline_mode<synchronous>, transform_indices = @transform_7, window_bounds = array<i64: 128, 128>}, {pipeline_mode = #tpu.pipeline_mode<synchronous>, transform_indices = @transform_8, window_bounds = array<i64: 1, 128>}, {transform_indices = @transform_9, window_bounds = array<i64: 256, 128>}]} {
    %c0 = arith.constant 0 : index
    %c0_0 = arith.constant 0 : index
    %0 = vector.load %arg1[%c0, %c0_0] : memref<256x128xbf16, #tpu.memory_space<vmem>>, vector<256x128xbf16>
    %c0_1 = arith.constant 0 : index
    %c0_2 = arith.constant 0 : index
    %1 = vector.load %arg2[%c0_1, %c0_2] : memref<128x512xbf16, #tpu.memory_space<vmem>>, vector<128x512xbf16>
    %cst = arith.constant dense<0.000000e+00> : vector<256x512xf32>
    %2 = tpu.matmul %0, %1, %cst {dimension_numbers = #tpu.dot_dimension_numbers<[1], [0], [0], [1], [0, 0, 1, 1], [], []>} : vector<256x128xbf16>, vector<128x512xbf16>, vector<256x512xf32> -> vector<256x512xf32>
    %c0_3 = arith.constant 0 : index
    %c0_4 = arith.constant 0 : index
    %3 = vector.load %arg3[%c0_3, %c0_4] : memref<1x512xf32, #tpu.memory_space<vmem>>, vector<1x512xf32>
    %4 = vector.broadcast %3 : vector<1x512xf32> to vector<256x512xf32>
    %5 = arith.addf %2, %4 : vector<256x512xf32>
    %cst_5 = arith.constant 0.000000e+00 : f32
    %6 = vector.broadcast %cst_5 : f32 to vector<256x512xf32>
    %7 = arith.cmpf ogt, %5, %6 : vector<256x512xf32>
    %cst_6 = arith.constant 2.000000e-01 : f32
    %8 = vector.broadcast %cst_6 : f32 to vector<256x512xf32>
    %9 = arith.mulf %8, %5 : vector<256x512xf32>
    %10 = arith.select %7, %5, %9 : vector<256x512xi1>, vector<256x512xf32>
    %11 = arith.truncf %10 : vector<256x512xf32> to vector<256x512xbf16>
    %c0_7 = arith.constant 0 : index
    %c0_8 = arith.constant 0 : index
    %12 = vector.load %arg4[%c0_7, %c0_8] : memref<512x256xbf16, #tpu.memory_space<vmem>>, vector<512x256xbf16>
    %cst_9 = arith.constant dense<0.000000e+00> : vector<256x256xf32>
    %13 = tpu.matmul %11, %12, %cst_9 {dimension_numbers = #tpu.dot_dimension_numbers<[1], [0], [0], [1], [0, 0, 1, 1], [], []>} : vector<256x512xbf16>, vector<512x256xbf16>, vector<256x256xf32> -> vector<256x256xf32>
    %c0_10 = arith.constant 0 : index
    %c0_11 = arith.constant 0 : index
    %14 = vector.load %arg5[%c0_10, %c0_11] : memref<1x256xf32, #tpu.memory_space<vmem>>, vector<1x256xf32>
    %15 = vector.broadcast %14 : vector<1x256xf32> to vector<256x256xf32>
    %16 = arith.addf %13, %15 : vector<256x256xf32>
    %cst_12 = arith.constant 0.000000e+00 : f32
    %17 = vector.broadcast %cst_12 : f32 to vector<256x256xf32>
    %18 = arith.cmpf ogt, %16, %17 : vector<256x256xf32>
    %cst_13 = arith.constant 2.000000e-01 : f32
    %19 = vector.broadcast %cst_13 : f32 to vector<256x256xf32>
    %20 = arith.mulf %19, %16 : vector<256x256xf32>
    %21 = arith.select %18, %16, %20 : vector<256x256xi1>, vector<256x256xf32>
    %22 = arith.truncf %21 : vector<256x256xf32> to vector<256x256xbf16>
    %c0_14 = arith.constant 0 : index
    %c0_15 = arith.constant 0 : index
    %23 = vector.load %arg6[%c0_14, %c0_15] : memref<256x128xbf16, #tpu.memory_space<vmem>>, vector<256x128xbf16>
    %cst_16 = arith.constant dense<0.000000e+00> : vector<256x128xf32>
    %24 = tpu.matmul %22, %23, %cst_16 {dimension_numbers = #tpu.dot_dimension_numbers<[1], [0], [0], [1], [0, 0, 1, 1], [], []>} : vector<256x256xbf16>, vector<256x128xbf16>, vector<256x128xf32> -> vector<256x128xf32>
    %c0_17 = arith.constant 0 : index
    %c0_18 = arith.constant 0 : index
    %25 = vector.load %arg7[%c0_17, %c0_18] : memref<1x128xf32, #tpu.memory_space<vmem>>, vector<1x128xf32>
    %26 = vector.broadcast %25 : vector<1x128xf32> to vector<256x128xf32>
    %27 = arith.addf %24, %26 : vector<256x128xf32>
    %cst_19 = arith.constant 0.000000e+00 : f32
    %28 = vector.broadcast %cst_19 : f32 to vector<256x128xf32>
    %29 = arith.cmpf ogt, %27, %28 : vector<256x128xf32>
    %cst_20 = arith.constant 2.000000e-01 : f32
    %30 = vector.broadcast %cst_20 : f32 to vector<256x128xf32>
    %31 = arith.mulf %30, %27 : vector<256x128xf32>
    %32 = arith.select %29, %27, %31 : vector<256x128xi1>, vector<256x128xf32>
    %33 = arith.truncf %32 : vector<256x128xf32> to vector<256x128xbf16>
    %c0_21 = arith.constant 0 : index
    %c0_22 = arith.constant 0 : index
    %34 = vector.load %arg8[%c0_21, %c0_22] : memref<128x128xbf16, #tpu.memory_space<vmem>>, vector<128x128xbf16>
    %cst_23 = arith.constant dense<0.000000e+00> : vector<256x128xf32>
    %35 = tpu.matmul %33, %34, %cst_23 {dimension_numbers = #tpu.dot_dimension_numbers<[1], [0], [0], [1], [0, 0, 1, 1], [], []>} : vector<256x128xbf16>, vector<128x128xbf16>, vector<256x128xf32> -> vector<256x128xf32>
    %c0_24 = arith.constant 0 : index
    %c0_25 = arith.constant 0 : index
    %36 = vector.load %arg9[%c0_24, %c0_25] : memref<1x128xf32, #tpu.memory_space<vmem>>, vector<1x128xf32>
    %37 = vector.broadcast %36 : vector<1x128xf32> to vector<256x128xf32>
    %38 = arith.addf %35, %37 : vector<256x128xf32>
    %cst_26 = arith.constant 0.000000e+00 : f32
    %39 = vector.broadcast %cst_26 : f32 to vector<256x128xf32>
    %40 = arith.subf %39, %38 : vector<256x128xf32>
    %41 = math.exp %40 : vector<256x128xf32>
    %cst_27 = arith.constant 1.000000e+00 : f32
    %42 = vector.broadcast %cst_27 : f32 to vector<256x128xf32>
    %43 = arith.addf %42, %41 : vector<256x128xf32>
    %44 = tpu.reciprocal %43 {approx = true} : vector<256x128xf32> -> vector<256x128xf32>
    %c0_28 = arith.constant 0 : index
    %c0_29 = arith.constant 0 : index
    %45 = vector.load %arg10[%c0_28, %c0_29] : memref<256x128xf32, #tpu.memory_space<vmem>>, vector<256x128xf32>
    tpu.vector_store %arg10[%c0_28, %c0_29], %44 {strides = array<i32>} : memref<256x128xf32, #tpu.memory_space<vmem>>, vector<256x128xf32>,
    return
  }
  func.func @transform_0(%arg0: i32) -> (i32, i32) {
    %c0_i32 = arith.constant 0 : i32
    %c0_i32_0 = arith.constant 0 : i32
    return %arg0, %c0_i32 : i32, i32
  }
  func.func @transform_1(%arg0: i32) -> (i32, i32) {
    %c0_i32 = arith.constant 0 : i32
    %c0_i32_0 = arith.constant 0 : i32
    %c0_i32_1 = arith.constant 0 : i32
    return %c0_i32, %c0_i32_0 : i32, i32
  }
  func.func @transform_2(%arg0: i32) -> (i32, i32) {
    %c0_i32 = arith.constant 0 : i32
    %c0_i32_0 = arith.constant 0 : i32
    %c0_i32_1 = arith.constant 0 : i32
    return %c0_i32, %c0_i32_0 : i32, i32
  }
  func.func @transform_3(%arg0: i32) -> (i32, i32) {
    %c0_i32 = arith.constant 0 : i32
    %c0_i32_0 = arith.constant 0 : i32
    %c0_i32_1 = arith.constant 0 : i32
    return %c0_i32, %c0_i32_0 : i32, i32
  }
  func.func @transform_4(%arg0: i32) -> (i32, i32) {
    %c0_i32 = arith.constant 0 : i32
    %c0_i32_0 = arith.constant 0 : i32
    %c0_i32_1 = arith.constant 0 : i32
    return %c0_i32, %c0_i32_0 : i32, i32
  }
  func.func @transform_5(%arg0: i32) -> (i32, i32) {
    %c0_i32 = arith.constant 0 : i32
    %c0_i32_0 = arith.constant 0 : i32
    %c0_i32_1 = arith.constant 0 : i32
    return %c0_i32, %c0_i32_0 : i32, i32
  }
  func.func @transform_6(%arg0: i32) -> (i32, i32) {
    %c0_i32 = arith.constant 0 : i32
    %c0_i32_0 = arith.constant 0 : i32
    %c0_i32_1 = arith.constant 0 : i32
    return %c0_i32, %c0_i32_0 : i32, i32
  }
  func.func @transform_7(%arg0: i32) -> (i32, i32) {
    %c0_i32 = arith.constant 0 : i32
    %c0_i32_0 = arith.constant 0 : i32
    %c0_i32_1 = arith.constant 0 : i32
    return %c0_i32, %c0_i32_0 : i32, i32
  }
  func.func @transform_8(%arg0: i32) -> (i32, i32) {
    %c0_i32 = arith.constant 0 : i32
    %c0_i32_0 = arith.constant 0 : i32
    %c0_i32_1 = arith.constant 0 : i32
    return %c0_i32, %c0_i32_0 : i32, i32
  }
  func.func @transform_9(%arg0: i32) -> (i32, i32) {
    %c0_i32 = arith.constant 0 : i32
    %c0_i32_0 = arith.constant 0 : i32
    return %arg0, %c0_i32 : i32, i32
  }
}

</mosaic_0001>

<bundles_post_ra>
// kernel: tpu_custom_call.1
= control target key start
LH: loop header
LB: loop body
LE: loop exit
PB: predicated region body
PF: predicated region fallthrough
CT: control target
= control target key end

     0   :  { %s5929_s0 = inlined_call_operand.hbm [shape: bf16[512,128], index: 0, kind: input, shape index: {}]   ;;  %s5930_s1 = inlined_call_operand.hbm [shape: bf16[128,512], index: 1, kind: input, shape index: {}]   ;;  %s5931_s2 = inlined_call_operand.hbm [shape: f32[1,512], index: 2, kind: input, shape index: {}]   ;;  %s5932_s3 = inlined_call_operand.hbm [shape: bf16[512,256], index: 3, kind: input, shape index: {}]   ;;  %s5933_s4 = inlined_call_operand.vmem [shape: f32[1,256], index: 4, kind: input, shape index: {}]   ;;  %s5934_s5 = inlined_call_operand.hbm [shape: bf16[256,128], index: 5, kind: input, shape index: {}]   ;;  %s5935_s6 = inlined_call_operand.vmem [shape: f32[1,128], index: 6, kind: input, shape index: {}]   ;;  %s5936_s7 = inlined_call_operand.hbm [shape: bf16[128,128], index: 7, kind: input, shape index: {}]   ;;  %s5937_s8 = inlined_call_operand.vmem [shape: f32[1,128], index: 8, kind: input, shape index: {}]   ;;  %s5938_s9 = inlined_call_operand.hbm [shape: f32[512,128], index: 9, kind: output, shape index: {}]  }
   0x1   :  { %5949 = sst [smem:[#allocation20_spill]] %s5930_s1 }
   0x2   :  { %5950 = sst [smem:[#allocation21_spill]] %s5931_s2 }
   0x3   :  { %5951 = sst [smem:[#allocation22_spill]] %s5932_s3 }
   0x4   :  { %14 = vsyncpa [#allocation3], 0 }
   0x5   :  { %16 = vsyncpa [#allocation3 + $0x1], 0 }
   0x6   :  { %17 = vsyncpa [#allocation6], 0 }
   0x7   :  { %18 = vsyncpa [#allocation9], 0 }
   0x8   :  { %19 = vsyncpa [#allocation12], 0 }
   0x9   :  { %20 = vsyncpa [#allocation4], 0 }
   0xa   :  { %22 = vsyncpa [#allocation4 + $0x1], 0  ;;  %s4658_s30 = smov 0   ;;  %s4660_s10 = smov 0  }
   0xb   :  { %s4662_s11 = smov 0   ;;  %s4664_s12 = smov 0  }
   0xc LB: > { %s4592_s13 = smov [#allocation5]   ;;  %s4679_s15 = sadd.s32 4294967295, %s4590_s12   ;;  %s4590_s12 = sphi %s4664_s12, %s5984_s12   ;;  %s4586_s11 = sphi %s4662_s11, %s5983_s11   ;;  %s4582_s10 = sphi %s4660_s10, %s5982_s10   ;;  %s4578_s30 = sphi %s4658_s30, %s5981_s30  }
   0xd   : > { %s265_s14 = sshll.u32 %s4592_s13, 4  ;;  %p3575_p0 = scmp.ge.s32.totalorder %s4590_s12, 1  ;;  %s266_s14 = int_to_ptr.vmem [resolvable:$true] %s265_s14 }
   0xe   : > { %p5941_p1 = scmp.eq.s32.totalorder %s4679_s15, 0  ;;  %p253_p2 = scmp.lt.s32.totalorder %s4590_s12, 3 }
   0xf   : > { %s4593_s17 = smov [#allocation8]   ;;  %s4594_s20 = smov [#allocation7]  }
  0x10   : > { %p4684_p3 = pnand %p3575_p0, %p253_p2  ;;  %s289_s18 = sshll.u32 %s4593_s17, 4  ;;  %s4697_s18 = int_to_ptr.vmem [resolvable:$true] %s289_s18 }
  0x11   : > { %s4699_s21 = sshll.u32 %s4594_s20, 4  ;;  %s4367_s23 = scalar_lea.vmem %s266_s14, 4096  ;;  %s280_s21 = int_to_ptr.vmem [resolvable:$true] %s4699_s21 }
  0x12   : > { %s5952_s16 = scalar_select %p4684_p3, 1, 0 }
  0x13   : > { %p3962_p5 = pneg %p4684_p3  ;;  %p4368_p8 = scmp.ne.s32.totalorder %s266_s14, %s4367_s23 }
  0x14   : > { %p4375_p11 = scmp.lt.s32.totalorder %s266_s14, %s266_s14  ;;  %p4376_p12 = scmp.lt.s32.totalorder %s4367_s23, %s4367_s23 }
  0x15   : > { %p4693_p6 = pnand %p3962_p5, %p5941_p1 }
  0x16   : > { %p4377_p13 = por %p4376_p12, %p4375_p11 }
  0x17   : > { %p4703_p7 = pneg %p4693_p6 }
  0x19   : > { %p4370_p9 = pnand %p4368_p8, %p4703_p7 }
  0x1b   : > { %p4371_p10 = pneg %p4370_p9 }
  0x1d   : > { %p4378_p0 = pnand %p4377_p13, %p4371_p10 }
  0x1f   : > { %4381 = shalt.err (!%p4378_p0)
}
  0x20   : > { %s4595_s24 = smov 256   ;;  %s4596_s25 = smov 16  }
  0x21   : > { %s5955_s1 = sld [smem:[#allocation20_spill]]  ;;  %s4393_s28 = scalar_lea.vmem %s4697_s18, 8192 }
  0x22   : > { %p4394_p2 = scmp.ne.s32.totalorder %s4697_s18, %s4393_s28  ;;  %p4401_p9 = scmp.lt.s32.totalorder %s4697_s18, %s4697_s18 }
  0x23   : > { %p4402_p10 = scmp.lt.s32.totalorder %s4393_s28, %s4393_s28 }
  0x24   : > { %p4396_p5 = pnand %p4394_p2, %p4703_p7 }
  0x25   : > { %p4403_p11 = por %p4402_p10, %p4401_p9 }
  0x26   : > { %p4397_p8 = pneg %p4396_p5 }
  0x27   : > { %3965 = dma.hbm_to_vmem [thread:$0]  (!%p4693_p6), %s5955_s1, 4096, %s266_s14, [#allocation6], %s4595_s24, %s4595_s24, %s4596_s25  }
  0x28   : > { %p4404_p12 = pnand %p4403_p11, %p4397_p8 }
  0x2a   : > { %4407 = shalt.err (!%p4404_p12)
}
  0x2b   : > { %s4597_s29 = smov 128   ;;  %s4598_s13 = smov 8  }
  0x2c   : > { %s5956_s3 = sld [smem:[#allocation22_spill]]  ;;  %s4419_s20 = scalar_lea.vmem %s280_s21, 64 }
  0x2d   : > { %p4420_p13 = scmp.ne.s32.totalorder %s280_s21, %s4419_s20  ;;  %p4427_p5 = scmp.lt.s32.totalorder %s280_s21, %s280_s21 }
  0x2e   : > { %p4428_p8 = scmp.lt.s32.totalorder %s4419_s20, %s4419_s20 }
  0x2f   : > { %p4422_p0 = pnand %p4420_p13, %p4703_p7 }
  0x30   : > { %p4429_p9 = por %p4428_p8, %p4427_p5 }
  0x31   : > { %p4423_p2 = pneg %p4422_p0 }
  0x32   : > { %3971 = dma.hbm_to_vmem [thread:$0]  (!%p4693_p6), %s5956_s3, 8192, %s4697_s18, [#allocation9], %s4597_s29, %s4597_s29, %s4598_s13  }
  0x33   : > { %p4430_p10 = pnand %p4429_p9, %p4423_p2 }
  0x35   : > { %4433 = shalt.err (!%p4430_p10)
}
  0x36   : > { %s5957_s2 = sld [smem:[#allocation21_spill]]  ;;  %s4599_s25 = smov [#allocation10]  }
  0x37   : > { %s305_s18 = sshll.u32 %s4599_s25, 4  ;;  %s306_s18 = int_to_ptr.vmem [resolvable:$true] %s305_s18 }
  0x38   : > { %s4445_s26 = scalar_lea.vmem %s306_s18, 2048  ;;  %p4453_p0 = scmp.lt.s32.totalorder %s306_s18, %s306_s18 }
  0x39   : > { %p4446_p11 = scmp.ne.s32.totalorder %s306_s18, %s4445_s26  ;;  %p4454_p4 = scmp.lt.s32.totalorder %s4445_s26, %s4445_s26 }
  0x3b   : > { %p4448_p12 = pnand %p4446_p11, %p4703_p7  ;;  %p4455_p5 = por %p4454_p4, %p4453_p0 }
  0x3c   : > { %3968 = dma.hbm_to_vmem [thread:$0]  (!%p4693_p6), %s5957_s2, 64, %s280_s21, [#allocation6]  }
  0x3d   : > { %p4449_p13 = pneg %p4448_p12 }
  0x3f   : > { %p4456_p2 = pnand %p4455_p5, %p4449_p13 }
  0x41   : > { %4459 = shalt.err (!%p4456_p2)
}
  0x42   : > { %s5939_s27 = smov 64   ;;  %s5940_s28 = smov 4  }
  0x43   : > { %3974 = dma.hbm_to_vmem [thread:$0]  (!%p4693_p6), %s5934_s5, 2048, %s306_s18, [#allocation9], %s5939_s27, %s5939_s27, %s5940_s28  }
  0x44   : > { %s4602_s13 = smov [#allocation11]  }
  0x45   : > { %s321_s17 = sshll.u32 %s4602_s13, 4  ;;  %s322_s17 = int_to_ptr.vmem [resolvable:$true] %s321_s17 }
  0x46   : > { %s4471_s14 = scalar_lea.vmem %s322_s17, 1024  ;;  %p4479_p10 = scmp.lt.s32.totalorder %s322_s17, %s322_s17 }
  0x47   : > { %p4472_p8 = scmp.ne.s32.totalorder %s322_s17, %s4471_s14  ;;  %p4480_p11 = scmp.lt.s32.totalorder %s4471_s14, %s4471_s14 }
  0x49   : > { %p4474_p4 = pnand %p4472_p8, %p4703_p7  ;;  %p4481_p12 = por %p4480_p11, %p4479_p10 }
  0x4b   : > { %p4475_p9 = pneg %p4474_p4 }
  0x4d   : > { %p4482_p13 = pnand %p4481_p12, %p4475_p9 }
  0x4f   : > { %4485 = shalt.err (!%p4482_p13)
}
  0x50   : > { %3977 = dma.hbm_to_vmem [thread:$0]  (!%p4693_p6), %s5936_s7, 1024, %s322_s17, [#allocation12], %s5939_s27, %s5939_s27, %s5940_s28  }
  0x51   : > { %s3574_s19 = sadd.s32 4294967294, %s4590_s12   ;;  %s4756_s22 = sadd.s32 1, %s4590_s12  }
  0x52   : > { %s35_s24 = sadd.s32 1, %s4586_s11  ;;  %s32_s25 = ssub.s32 %s4590_s12, %s4756_s22 }
  0x53   : > { %p42_p7 = scmp.ne.s32.totalorder %s4586_s11, %s4582_s10  ;;  %p33_p0 = scmp.eq.s32.totalorder %s32_s25, 0 }
  0x54   : > { %p43_p5 = scmp.eq.s32.totalorder %s4590_s12, 0  ;;  %p48_p2 = scmp.ne.s32.totalorder %s4582_s10, %s4578_s30 }
  0x55   : > { %p240_p8 = scmp.eq.s32.totalorder %s4679_s15, 1  ;;  %p246_p10 = scmp.eq.s32.totalorder %s3574_s19, 1 }
  0x56   : > { %s4768_s18 = scalar_select %p33_p0, %s4586_s11, %s35_s24  }
  0x57   : > { %p44_p4 = por %p43_p5, %p42_p7  ;;  %p4772_p9 = por %p5941_p1, %p48_p2 }
  0x58   : > { %p4776_p6 = por %p240_p8, %p42_p7  ;;  %p3991_p11 = scmp.lt.s32.totalorder %s4590_s12, 2 }
  0x59   : > { %s5958_s26 = scalar_select %p4772_p9, 1, 0 }
  0x5a   : > { %s5959_s21 = scalar_select %p4776_p6, 1, 0 }
  0x5b   : > { %s338_s29 = sand.u32 1, %s4586_s11   ;;  %p4782_p12 = por %p246_p10, %p48_p2 }
  0x5c   : > { %s3582_s17 = sshll.u32 %s338_s29, 7  ;;  %s3736_s14 = sshll.u32 %s4590_s12, 11 }
  0x5d   : > { %s5960_s13 = scalar_select %p4782_p12, 1, 0 }
  0x5e   : > { %s4790_s24 = scalar_lea.hbm %s5929_s0, %s3736_s14  ;;  %s342_s25 = scalar_lea.vmem [#allocation2], %s3582_s17 }
  0x5f   : > { %s349_s27 = sshll.u32 %s342_s25, 4  ;;  %p4792_p13 = pnand %p3991_p11, %p44_p4  ;;  %s4796_s27 = int_to_ptr.vmem [resolvable:$true] %s349_s27 }
  0x60   : > { %s4798_s28 = scalar_lea.sflag [#allocation3], %s338_s29  ;;  %s4486_s1 = scalar_lea.hbm %s4790_s24, 2048 }
  0x61   : > { %p4487_p7 = scmp.ne.s32.totalorder %s4790_s24, %s4486_s1  ;;  %p4488_p0 = pneg %p4792_p13 }
  0x62   : > { %s4491_s17 = scalar_lea.hbm %s5929_s0, 4096  ;;  %p4492_p8 = scmp.lt.s32.totalorder %s4790_s24, %s5929_s0 }
  0x63   : > { %p4489_p5 = pnand %p4488_p0, %p4487_p7  ;;  %p4493_p4 = scmp.lt.s32.totalorder %s4491_s17, %s4486_s1 }
  0x65   : > { %p4490_p2 = pneg %p4489_p5  ;;  %p4494_p10 = por %p4493_p4, %p4492_p8 }
  0x67   : > { %p4495_p11 = pnand %p4494_p10, %p4490_p2 }
  0x69   : > { %4498 = shalt.err (!%p4495_p11)
}
  0x6a   : > { %s4499_s29 = scalar_lea.vmem %s4796_s27, 2048  ;;  %s4603_s2 = smov [#allocation2]  }
  0x6b   : > { %p4500_p1 = scmp.ne.s32.totalorder %s4796_s27, %s4499_s29  ;;  %s4504_s3 = sshll.u32 %s4603_s2, 4  ;;  %s4505_s3 = int_to_ptr.vmem [resolvable:$false] %s4504_s3 }
  0x6c   : > { %s4506_s14 = scalar_lea.vmem %s4505_s3, 4096  ;;  %p4507_p5 = scmp.lt.s32.totalorder %s4796_s27, %s4505_s3 }
  0x6d   : > { %p4502_p12 = pnand %p4500_p1, %p4488_p0  ;;  %p4508_p6 = scmp.lt.s32.totalorder %s4506_s14, %s4499_s29 }
  0x6f   : > { %p4503_p7 = pneg %p4502_p12  ;;  %p4509_p9 = por %p4508_p6, %p4507_p5 }
  0x71   : > { %p4510_p3 = pnand %p4509_p9, %p4503_p7 }
  0x73   : > { %4513 = shalt.err (!%p4510_p3)
}
  0x74   : > { %s5962_s1 = smov 4   ;;  %s5963_s20 = smov 64  }
  0x75   : > { %3981 = dma.hbm_to_vmem [thread:$0]  (!%p4792_p13), %s4790_s24, 2048, %s4796_s27, %s4798_s28, %s5963_s20, %s5963_s20, %s5962_s1  }
  0x76   : > { %p5964_p1 = scmp.ne.s32.totalorder %s5952_s16, 0 }
  0x78   : > { %361 = sbr.rel (%p5964_p1) target bundleno = 1207 (0x4b7), region = 56 }
  0x7d   : > { %s4825_s2 = sand.u32 1, %s4582_s10   ;;  %p5965_p3 = scmp.ne.s32.totalorder %s5958_s26, 0 }
  0x7e   : > { %s3586_s3 = sshll.u32 %s4825_s2, 7  ;;  %s364_s17 = scalar_lea.sflag [#allocation3], %s4825_s2 }
  0x7f   : > { %s4829_s23 = scalar_lea.vmem [#allocation2], %s3586_s3 }
  0x80   : > { %4557 = dma.done.wait (%p5965_p3), %s364_s17, 2048  }
  0x81   : > { %4559 = vsyncadd (%p5965_p3), %s364_s17, 4294965248  ;;  %p5966_p9 = scmp.eq.s32.totalorder %s4679_s15, 0 }
  0x83   : > { %4561 = dma.done.wait (%p5966_p9), [#allocation6], 4160   ;;  %p5967_p6 = pmov %p5966_p9 }
  0x85   : > { %4563 = vsyncadd (%p5967_p6), [#allocation6], 4294963136  ;;  %p5968_p12 = pmov %p5967_p6 }
  0x86   : > { %p5969_p13 = pmov %p5967_p6 }
  0x87   : > { %4565 = dma.done.wait (%p5968_p12), [#allocation9], 10240  }
  0x88   : > { %4567 = vsyncadd (%p5969_p13), [#allocation9], 4294957056  ;;  %p5970_p0 = pmov %p5967_p6 }
  0x8a   : > { %4569 = dma.done.wait (%p5970_p0), [#allocation12], 1024   ;;  %p5971_p2 = pmov %p5970_p0 }
  0x8b   : > { %v4604_v0 = vmov 0   ;;  %v4044_v1 = vld [vmem:[#allocation5 + $0xe4] ss:$16 sps:$4 sm:$0xff]   ;;  %v4046_v2 = vld [vmem:[#allocation5 + $0xe0] ss:$16 sps:$4 sm:$0xff]   ;;  %v4860_v24 = vld [vmem:[%s4829_s23 + $0x8] sm:$0xff]  }
  0x8c   : > { %4571 = vsyncadd (%p5971_p2), [#allocation12], 4294966272  ;;  %799 = vmatprep.mubr.bf16.mxu0 %v4604_v0  ;;  %919 = vmatprep.mubr.bf16.mxu1 %v4604_v0  ;;  %v4047_v3 = vld [vmem:[#allocation5 + $0xc4] ss:$16 sps:$4 sm:$0xff]   ;;  %v4049_v4 = vld [vmem:[#allocation5 + $0xc0] ss:$16 sps:$4 sm:$0xff]  }
  0x8d   : > { %767 = vmatprep.subr.bf16.mxu0 %v4044_v1  ;;  %3922 = vmatprep.subr.bf16.mxu1 %v4044_v1  ;;  %v4050_v5 = vld [vmem:[#allocation5 + $0xa4] ss:$16 sps:$4 sm:$0xff]   ;;  %v4052_v6 = vld [vmem:[#allocation5 + $0xa0] ss:$16 sps:$4 sm:$0xff]   ;;  %v4072_v17 = vld [vmem:[#allocation5 + $0xec] ss:$16 sps:$4 sm:$0xff]  }
  0x8e   : > { %768 = vmatpush1.bf16.msra.mxu0 %v4046_v2  ;;  %3930 = vmatpush1.bf16.msra.mxu1 %v4046_v2  ;;  %v4053_v7 = vld [vmem:[#allocation5 + $0x84] ss:$16 sps:$4 sm:$0xff]   ;;  %v4055_v8 = vld [vmem:[#allocation5 + $0x80] ss:$16 sps:$4 sm:$0xff]   ;;  %v4070_v20 = vld [vmem:[#allocation5 + $0xe8] ss:$16 sps:$4 sm:$0xff]  }
  0x8f   : > { %769 = vmatprep.subr.bf16.mxu0 %v4047_v3  ;;  %3923 = vmatprep.subr.bf16.mxu1 %v4047_v3  ;;  %v4056_v9 = vld [vmem:[#allocation5 + $0x64] ss:$16 sps:$4 sm:$0xff]   ;;  %v4058_v10 = vld [vmem:[#allocation5 + $0x60] ss:$16 sps:$4 sm:$0xff]   ;;  %v4075_v21 = vld [vmem:[#allocation5 + $0xcc] ss:$16 sps:$4 sm:$0xff]  }
  0x90   : > { %v4059_v11 = vld [vmem:[#allocation5 + $0x44] ss:$16 sps:$4 sm:$0xff]   ;;  %v4061_v12 = vld [vmem:[#allocation5 + $0x40] ss:$16 sps:$4 sm:$0xff]   ;;  %v4073_v22 = vld [vmem:[#allocation5 + $0xc8] ss:$16 sps:$4 sm:$0xff]  }
  0x91   : > { %v4062_v13 = vld [vmem:[#allocation5 + $0x24] ss:$16 sps:$4 sm:$0xff]   ;;  %v4064_v14 = vld [vmem:[#allocation5 + $0x20] ss:$16 sps:$4 sm:$0xff]   ;;  %v4080_v23 = vld [vmem:[#allocation5 + $0xac] ss:$16 sps:$4 sm:$0xff]  }
  0x92   : > { %770 = vmatpush1.bf16.msra.mxu0 %v4049_v4  ;;  %3931 = vmatpush1.bf16.msra.mxu1 %v4049_v4  ;;  %v4065_v15 = vld [vmem:[#allocation5 + $0x4] ss:$16 sps:$4 sm:$0xff]   ;;  %v4067_v16 = vld [vmem:[#allocation5] ss:$16 sps:$4 sm:$0xff]   ;;  %v4863_v25 = vld [vmem:[%s4829_s23 + $0x68] sm:$0xff]   ;;  %s3592_s25 = sshll.u32 %s4825_s2, 8 }
  0x93   : > { %771 = vmatprep.subr.bf16.mxu0 %v4050_v5  ;;  %3924 = vmatprep.subr.bf16.mxu1 %v4050_v5  ;;  %v4850_v18 = vld [vmem:[%s4829_s23] sm:$0xff]   ;;  %v4078_v26 = vld [vmem:[#allocation5 + $0xa8] ss:$16 sps:$4 sm:$0xff]   ;;  %v4083_v27 = vld [vmem:[#allocation5 + $0x8c] ss:$16 sps:$4 sm:$0xff]   ;;  %s5821_s29 = scalar_lea.vmem [#allocation13], %s3592_s25 }
  0x94   : > { %v4853_v19 = vld [vmem:[%s4829_s23 + $0x60] sm:$0xff]   ;;  %v4081_v28 = vld [vmem:[#allocation5 + $0x88] ss:$16 sps:$4 sm:$0xff]   ;;  %v4120_v29 = vld [vmem:[#allocation8 + $0x70] ss:$8 sps:$4 sm:$0xff]   ;;  %s3737_s14 = sshll.u32 %s4679_s15, 12 }
  0x95   : > { %v4122_v30 = vld [vmem:[#allocation8 + $0x74] ss:$8 sps:$4 sm:$0xff]   ;;  %v4870_v31 = vld [vmem:[%s4829_s23 + $0x10] sm:$0xff]   ;;  %v4088_v33 = vld [vmem:[#allocation5 + $0x6c] ss:$16 sps:$4 sm:$0xff]   ;;  %s3453_s1 = sshll.u32 %s5821_s29, 4  ;;  %s5882_s17 = scalar_lea.hbm %s5938_s9, %s3737_s14  ;;  %s5884_s1 = int_to_ptr.vmem [resolvable:$true] %s3453_s1 }
  0x96   : > { %772 = vmatpush1.bf16.msra.mxu0 %v4052_v6  ;;  %3932 = vmatpush1.bf16.msra.mxu1 %v4052_v6  ;;  %v4873_v32 = vld [vmem:[%s4829_s23 + $0x70] sm:$0xff]   ;;  %v4086_v34 = vld [vmem:[#allocation5 + $0x68] ss:$16 sps:$4 sm:$0xff]   ;;  %v4091_v35 = vld [vmem:[#allocation5 + $0x4c] ss:$16 sps:$4 sm:$0xff]   ;;  %s4514_s16 = scalar_lea.vmem %s5884_s1, 4096 }
  0x97   : > { %773 = vmatprep.subr.bf16.mxu0 %v4053_v7  ;;  %3925 = vmatprep.subr.bf16.mxu1 %v4053_v7  ;;  %v4126_v36 = vld [vmem:[#allocation8 + $0x60] ss:$8 sps:$4 sm:$0xff]   ;;  %v4128_v37 = vld [vmem:[#allocation8 + $0x64] ss:$8 sps:$4 sm:$0xff]   ;;  %v4131_v39 = vld [vmem:[#allocation8 + $0x54] ss:$8 sps:$4 sm:$0xff]   ;;  %p4515_p8 = scmp.ne.s32.totalorder %s5884_s1, %s4514_s16 }
  0x98   : > { %v4089_v38 = vld [vmem:[#allocation5 + $0x48] ss:$16 sps:$4 sm:$0xff]   ;;  %v4096_v42 = vld [vmem:[#allocation5 + $0x2c] ss:$16 sps:$4 sm:$0xff]   ;;  %v4890_v50 = vld [vmem:[%s4829_s23 + $0x20] sm:$0xff]   ;;  %p5978_p4 = scmp.ne.s32.totalorder %s5959_s21, 0 }
  0x99   : > { %v4880_v40 = vld [vmem:[%s4829_s23 + $0x18] sm:$0xff]   ;;  %v4137_v46 = vld [vmem:[#allocation8 + $0x44] ss:$8 sps:$4 sm:$0xff]   ;;  %v4135_v49 = vld [vmem:[#allocation8 + $0x40] ss:$8 sps:$4 sm:$0xff]   ;;  %s4605_s15 = smov [#allocation13]  }
  0x9a   : > { %774 = vmatpush1.bf16.msra.mxu0 %v4055_v8  ;;  %3933 = vmatpush1.bf16.msra.mxu1 %v4055_v8  ;;  %v4883_v41 = vld [vmem:[%s4829_s23 + $0x78] sm:$0xff]   ;;  %v4113_v53 = vld [vmem:[#allocation8 + $0x164] ss:$8 sps:$4 sm:$0xff]   ;;  %v4111_v57 = vld [vmem:[#allocation8 + $0x160] ss:$8 sps:$4 sm:$0xff]   ;;  %p4516_p10 = pnand %p4515_p8, %p5978_p4  ;;  %s4518_s27 = sshll.u32 %s4605_s15, 4  ;;  %s4519_s27 = int_to_ptr.vmem [resolvable:$false] %s4518_s27 }
  0x9b   : > { %775 = vmatprep.subr.bf16.mxu0 %v4056_v9  ;;  %3926 = vmatprep.subr.bf16.mxu1 %v4056_v9  ;;  %v4094_v43 = vld [vmem:[#allocation5 + $0x28] ss:$16 sps:$4 sm:$0xff]   ;;  %v4099_v44 = vld [vmem:[#allocation5 + $0xc] ss:$16 sps:$4 sm:$0xff]   ;;  %v4904_v5 = vld [vmem:[%s4829_s23 + $0x30] sm:$0xff]   ;;  %s4520_s28 = scalar_lea.vmem %s4519_s27, 8192  ;;  %p4521_p7 = scmp.lt.s32.totalorder %s5884_s1, %s4519_s27 }
  0x9c   : > { %v4129_v45 = vld [vmem:[#allocation8 + $0x50] ss:$8 sps:$4 sm:$0xff]   ;;  %v4097_v47 = vld [vmem:[#allocation5 + $0x8] ss:$16 sps:$4 sm:$0xff]   ;;  %v4144_v59 = vld [vmem:[#allocation8 + $0x20] ss:$8 sps:$4 sm:$0xff]   ;;  %p4517_p11 = pneg %p4516_p10  ;;  %p4522_p5 = scmp.lt.s32.totalorder %s4520_s28, %s4514_s16 }
  0x9d   : > { %v4110_v48 = vld [vmem:[#allocation8 + $0x174] ss:$8 sps:$4 sm:$0xff]   ;;  %v4108_v51 = vld [vmem:[#allocation8 + $0x170] ss:$8 sps:$4 sm:$0xff]   ;;  %v4146_v55 = vld [vmem:[#allocation8 + $0x24] ss:$8 sps:$4 sm:$0xff]  }
  0x9e   : > { %776 = vmatpush1.bf16.msra.mxu0 %v4058_v10  ;;  %3934 = vmatpush1.bf16.msra.mxu1 %v4058_v10  ;;  %v4140_v52 = vld [vmem:[#allocation8 + $0x34] ss:$8 sps:$4 sm:$0xff]   ;;  %v4138_v54 = vld [vmem:[#allocation8 + $0x30] ss:$8 sps:$4 sm:$0xff]   ;;  %v4897_v56 = vld [vmem:[%s4829_s23 + $0x28] sm:$0xff]   ;;  %p4523_p1 = por %p4522_p5, %p4521_p7 }
  0x9f   : > { %777 = vmatprep.subr.bf16.mxu0 %v4059_v11  ;;  %3927 = vmatprep.subr.bf16.mxu1 %v4059_v11  ;;  %v4116_v58 = vld [vmem:[#allocation8 + $0x154] ss:$8 sps:$4 sm:$0xff]   ;;  %v4114_v60 = vld [vmem:[#allocation8 + $0x150] ss:$8 sps:$4 sm:$0xff]   ;;  %v4119_v62 = vld [vmem:[#allocation8 + $0x144] ss:$8 sps:$4 sm:$0xff]  }
  0xa0   : > { %v4149_v61 = vld [vmem:[#allocation8 + $0x14] ss:$8 sps:$4 sm:$0xff]   ;;  %v4147_v63 = vld [vmem:[#allocation8 + $0x10] ss:$8 sps:$4 sm:$0xff]   ;;  %v4155_v1 = vld [vmem:[#allocation8 + $0x4] ss:$8 sps:$4 sm:$0xff]   ;;  %p4524_p3 = pnand %p4523_p1, %p4517_p11 }
  0xa1   : > { %v4117_v2 = vld [vmem:[#allocation8 + $0x140] ss:$8 sps:$4 sm:$0xff]   ;;  %v4125_v3 = vld [vmem:[#allocation8 + $0x134] ss:$8 sps:$4 sm:$0xff]   ;;  %v4123_v6 = vld [vmem:[#allocation8 + $0x130] ss:$8 sps:$4 sm:$0xff]  }
  0xa2   : > { %778 = vmatpush1.bf16.msra.mxu0 %v4061_v12  ;;  %3935 = vmatpush1.bf16.msra.mxu1 %v4061_v12  ;;  %v4153_v4 = vld [vmem:[#allocation8] ss:$8 sps:$4 sm:$0xff]   ;;  %v4158_v7 = vld [vmem:[#allocation8 + $0xf4] ss:$8 sps:$4 sm:$0xff]   ;;  %v4134_v8 = vld [vmem:[#allocation8 + $0x124] ss:$8 sps:$4 sm:$0xff]  }
  0xa3   : > { %779 = vmatprep.subr.bf16.mxu0 %v4062_v13  ;;  %3928 = vmatprep.subr.bf16.mxu1 %v4062_v13  ;;  %v4156_v9 = vld [vmem:[#allocation8 + $0xf0] ss:$8 sps:$4 sm:$0xff]   ;;  %v4164_v10 = vld [vmem:[#allocation8 + $0xe4] ss:$8 sps:$4 sm:$0xff]   ;;  %v4132_v11 = vld [vmem:[#allocation8 + $0x120] ss:$8 sps:$4 sm:$0xff]  }
  0xa4   : > { %v4143_v12 = vld [vmem:[#allocation8 + $0x114] ss:$8 sps:$4 sm:$0xff]   ;;  %v4162_v13 = vld [vmem:[#allocation8 + $0xe0] ss:$8 sps:$4 sm:$0xff]  }
  0xa6   : > { %780 = vmatpush1.bf16.msra.mxu0 %v4064_v14  ;;  %3936 = vmatpush1.bf16.msra.mxu1 %v4064_v14  ;;  %v4911_v14 = vld [vmem:[%s4829_s23 + $0x38] sm:$0xff]  }
  0xa7   : > { %781 = vmatprep.subr.bf16.mxu0 %v4065_v15  ;;  %3929 = vmatprep.subr.bf16.mxu1 %v4065_v15  ;;  %v4141_v15 = vld [vmem:[#allocation8 + $0x110] ss:$8 sps:$4 sm:$0xff]  }
  0xaa   : > { %782 = vmatpush1.bf16.msra.mxu0 %v4067_v16  ;;  %3937 = vmatpush1.bf16.msra.mxu1 %v4067_v16  ;;  %v4167_v16 = vld [vmem:[#allocation8 + $0xd4] ss:$8 sps:$4 sm:$0xff]  }
  0xab   : > { %960 = vmatprep.subr.bf16.mxu1 %v4072_v17  ;;  %1997 = vmatprep.subr.bf16.mxu0 %v4122_v30  ;;  %v4152_v17 = vld [vmem:[#allocation8 + $0x104] ss:$8 sps:$4 sm:$0xff]   ;;  %v4168_v30 = vld [vmem:[#allocation8 + $0x1e0] ss:$8 sps:$4 sm:$0xff]  }
  0xad   : > { %800 = vmatmul.mubr.bf16.vlgmr.msra.gmra.mxu0 %v4850_v18  ;;  %920 = vmatmul.mubr.bf16.vlgmr.msra.gmra.mxu1 %v4853_v19 }
  0xae   : > { %961 = vmatpush1.bf16.msra.mxu1 %v4070_v20  ;;  %809 = vmatprep.mubr.bf16.mxu0 %v4604_v0  ;;  %v4173_v20 = vld [vmem:[#allocation8 + $0xc4] ss:$8 sps:$4 sm:$0xff]  }
  0xaf   : > { %962 = vmatprep.subr.bf16.mxu1 %v4075_v21  ;;  %929 = vmatprep.mubr.bf16.mxu1 %v4604_v0  ;;  %v4150_v21 = vld [vmem:[#allocation8 + $0x100] ss:$8 sps:$4 sm:$0xff]  }
  0xb0   : > { %1998 = vmatpush1.bf16.msra.mxu0 %v4120_v29  ;;  %v4174_v29 = vld [vmem:[#allocation8 + $0xb0] ss:$8 sps:$4 sm:$0xff]  }
  0xb1   : > { %1999 = vmatprep.subr.bf16.mxu0 %v4128_v37  ;;  %v4185_v37 = vld [vmem:[#allocation8 + $0x94] ss:$8 sps:$4 sm:$0xff]  }
  0xb2   : > { %963 = vmatpush1.bf16.msra.mxu1 %v4073_v22  ;;  %v4161_v22 = vld [vmem:[#allocation8 + $0x1f4] ss:$8 sps:$4 sm:$0xff]  }
  0xb3   : > { %964 = vmatprep.subr.bf16.mxu1 %v4080_v23  ;;  %v4171_v23 = vld [vmem:[#allocation8 + $0xc0] ss:$8 sps:$4 sm:$0xff]  }
  0xb4   : > { %2000 = vmatpush1.bf16.msra.mxu0 %v4126_v36  ;;  %v4177_v36 = vld [vmem:[#allocation8 + $0x1d0] ss:$8 sps:$4 sm:$0xff]  }
  0xb5   : > { %810 = vmatmul.mubr.bf16.gmra.mxu0 %v4860_v24  ;;  %930 = vmatmul.mubr.bf16.gmra.mxu1 %v4863_v25 }
  0xb6   : > { %965 = vmatpush1.bf16.msra.mxu1 %v4078_v26  ;;  %819 = vmatprep.mubr.bf16.mxu0 %v4604_v0  ;;  %v4159_v26 = vld [vmem:[#allocation8 + $0x1f0] ss:$8 sps:$4 sm:$0xff]  }
  0xb7   : > { %966 = vmatprep.subr.bf16.mxu1 %v4083_v27  ;;  %939 = vmatprep.mubr.bf16.mxu1 %v4604_v0  ;;  %v4176_v27 = vld [vmem:[#allocation8 + $0xb4] ss:$8 sps:$4 sm:$0xff]  }
  0xb8   : > { %2001 = vmatprep.subr.bf16.mxu0 %v4131_v39  ;;  %v4186_v39 = vld [vmem:[#allocation8 + $0x1c0] ss:$8 sps:$4 sm:$0xff]  }
  0xb9   : > { %2002 = vmatpush1.bf16.msra.mxu0 %v4129_v45  ;;  %v4192_v45 = vld [vmem:[#allocation8 + $0x1b0] ss:$8 sps:$4 sm:$0xff]  }
  0xba   : > { %967 = vmatpush1.bf16.msra.mxu1 %v4081_v28  ;;  %2003 = vmatprep.subr.bf16.mxu0 %v4137_v46  ;;  %v4170_v28 = vld [vmem:[#allocation8 + $0x1e4] ss:$8 sps:$4 sm:$0xff]   ;;  %v4194_v46 = vld [vmem:[#allocation8 + $0x1b4] ss:$8 sps:$4 sm:$0xff]  }
  0xbb   : > { %968 = vmatprep.subr.bf16.mxu1 %v4088_v33  ;;  %v4179_v33 = vld [vmem:[#allocation8 + $0x1d4] ss:$8 sps:$4 sm:$0xff]  }
  0xbd   : > { %820 = vmatmul.mubr.bf16.gmra.mxu0 %v4870_v31  ;;  %940 = vmatmul.mubr.bf16.gmra.mxu1 %v4873_v32 }
  0xbe   : > { %969 = vmatpush1.bf16.msra.mxu1 %v4086_v34  ;;  %829 = vmatprep.mubr.bf16.mxu0 %v4604_v0  ;;  %v4180_v34 = vld [vmem:[#allocation8 + $0xa0] ss:$8 sps:$4 sm:$0xff]  }
  0xbf   : > { %970 = vmatprep.subr.bf16.mxu1 %v4091_v35  ;;  %949 = vmatprep.mubr.bf16.mxu1 %v4604_v0  ;;  %v4105_v35 = vld [vmem:[%s4829_s23 + $0x48] sm:$0xff]  }
  0xc0   : > { %2004 = vmatpush1.bf16.msra.mxu0 %v4135_v49  ;;  %v4197_v49 = vld [vmem:[#allocation8 + $0x1a4] ss:$8 sps:$4 sm:$0xff]  }
  0xc1   : > { %2005 = vmatprep.subr.bf16.mxu0 %v4140_v52  ;;  %v4201_v52 = vld [vmem:[#allocation8 + $0x180] ss:$8 sps:$4 sm:$0xff]  }
  0xc2   : > { %971 = vmatpush1.bf16.msra.mxu1 %v4089_v38  ;;  %v4183_v38 = vld [vmem:[#allocation8 + $0x90] ss:$8 sps:$4 sm:$0xff]  }
  0xc3   : > { %972 = vmatprep.subr.bf16.mxu1 %v4096_v42  ;;  %v4191_v42 = vld [vmem:[#allocation8 + $0x84] ss:$8 sps:$4 sm:$0xff]  }
  0xc4   : > { %2006 = vmatpush1.bf16.msra.mxu0 %v4138_v54  ;;  %v491_v54 = vlaneseq }
  0xc5   : > { %830 = vmatmul.mubr.bf16.gmra.mxu0 %v4880_v40  ;;  %950 = vmatmul.mubr.bf16.gmra.mxu1 %v4883_v41 }
  0xc6   : > { %973 = vmatpush1.bf16.msra.mxu1 %v4094_v43  ;;  %839 = vmatprep.mubr.bf16.mxu0 %v4604_v0  ;;  %v4106_v43 = vld [vmem:[%s4829_s23 + $0x50] sm:$0xff]  }
  0xc7   : > { %974 = vmatprep.subr.bf16.mxu1 %v4099_v44  ;;  %992 = vmatprep.mubr.bf16.mxu1 %v4604_v0  ;;  %v4189_v44 = vld [vmem:[#allocation8 + $0x80] ss:$8 sps:$4 sm:$0xff]  }
  0xc8   : > { %2007 = vmatprep.subr.bf16.mxu0 %v4146_v55  ;;  %v4943_v55 = vshrl.u32 %v491_v54, 7  ;;  %v4206_v54 = vld [vmem:[#allocation10 + $0x70] sm:$0xff]  }
  0xc9   : > { %2008 = vmatpush1.bf16.msra.mxu0 %v4144_v59 }
  0xca   : > { %975 = vmatpush1.bf16.msra.mxu1 %v4097_v47  ;;  %2009 = vmatprep.subr.bf16.mxu0 %v4149_v61  ;;  %v4107_v47 = vld [vmem:[%s4829_s23 + $0x58] sm:$0xff]   ;;  %5972 = vst [vmem:[#allocation19_spill] sm:$0xff] %v4943_v55 }
  0xcb   : > { %2190 = vmatprep.subr.bf16.mxu1 %v4110_v48  ;;  %v4195_v48 = vld [vmem:[#allocation8 + $0x1a0] ss:$8 sps:$4 sm:$0xff]  }
  0xcd   : > { %840 = vmatmul.mubr.bf16.gmra.mxu0 %v4890_v50  ;;  %993 = vmatmul.mubr.bf16.vlgmr.msra.gmra.mxu1 %v4850_v18  ;;  %v4165_v18 = vld [vmem:[#allocation8 + $0xd0] ss:$8 sps:$4 sm:$0xff]  }
  0xce   : > { %849 = vmatprep.mubr.bf16.mxu0 %v4604_v0  ;;  %1002 = vmatprep.mubr.bf16.mxu1 %v4604_v0 }
  0xcf   : > { %2191 = vmatpush1.bf16.msra.mxu1 %v4108_v51  ;;  %2010 = vmatpush1.bf16.msra.mxu0 %v4147_v63  ;;  %v4200_v51 = vld [vmem:[#allocation8 + $0x194] ss:$8 sps:$4 sm:$0xff]  }
  0xd0   : > { %2192 = vmatprep.subr.bf16.mxu1 %v4113_v53  ;;  %2011 = vmatprep.subr.bf16.mxu0 %v4155_v1  ;;  %v4203_v53 = vld [vmem:[#allocation8 + $0x184] ss:$8 sps:$4 sm:$0xff]   ;;  %v4204_v1 = vld [vmem:[#allocation10 + $0x78] sm:$0xff]  }
  0xd3   : > { %2193 = vmatpush1.bf16.msra.mxu1 %v4111_v57  ;;  %2012 = vmatpush1.bf16.msra.mxu0 %v4153_v4  ;;  %v4946_v57 = vld [vmem:[#allocation7] sm:$0xf] }
  0xd4   : > { %2194 = vmatprep.subr.bf16.mxu1 %v4116_v58  ;;  %2013 = vmatprep.subr.bf16.mxu0 %v4158_v7 }
  0xd5   : > { %850 = vmatmul.mubr.bf16.gmra.mxu0 %v4897_v56  ;;  %1003 = vmatmul.mubr.bf16.gmra.mxu1 %v4860_v24  ;;  %v4104_v24 = vld [vmem:[%s4829_s23 + $0x40] sm:$0xff]   ;;  %s3440_s23 = scalar_lea.sflag [#allocation4], %s4825_s2 }
  0xd6   : > { %859 = vmatprep.mubr.bf16.mxu0 %v4604_v0  ;;  %1012 = vmatprep.mubr.bf16.mxu1 %v4604_v0 }
  0xd7   : > { %2195 = vmatpush1.bf16.msra.mxu1 %v4114_v60  ;;  %2014 = vmatpush2.bf16.msra.mxu0 %v4156_v9 }
  0xd8   : > { %2196 = vmatprep.subr.bf16.mxu1 %v4119_v62  ;;  %2015 = vmatprep.subr.bf16.mxu0 %v4164_v10 }
  0xdb   : > { %2197 = vmatpush1.bf16.msra.mxu1 %v4117_v2  ;;  %2016 = vmatpush2.bf16.msra.mxu0 %v4162_v13 }
  0xdc   : > { %2198 = vmatprep.subr.bf16.mxu1 %v4125_v3  ;;  %2017 = vmatprep.subr.bf16.mxu0 %v4167_v16 }
  0xdd   : > { %860 = vmatmul.mubr.bf16.gmra.mxu0 %v4904_v5  ;;  %1013 = vmatmul.mubr.bf16.gmra.mxu1 %v4870_v31  ;;  %v4182_v31 = vld [vmem:[#allocation8 + $0xa4] ss:$8 sps:$4 sm:$0xff]  }
  0xde   : > { %869 = vmatprep.mubr.bf16.mxu0 %v4604_v0  ;;  %1022 = vmatprep.mubr.bf16.mxu1 %v4604_v0 }
  0xdf   : > { %2199 = vmatpush1.bf16.msra.mxu1 %v4123_v6  ;;  %2018 = vmatpush2.bf16.msra.mxu0 %v4165_v18 }
  0xe0   : > { %2200 = vmatprep.subr.bf16.mxu1 %v4134_v8  ;;  %2019 = vmatprep.subr.bf16.mxu0 %v4173_v20 }
  0xe3   : > { %2201 = vmatpush1.bf16.msra.mxu1 %v4132_v11  ;;  %2020 = vmatpush2.bf16.msra.mxu0 %v4171_v23 }
  0xe4   : > { %2202 = vmatprep.subr.bf16.mxu1 %v4143_v12  ;;  %2021 = vmatprep.subr.bf16.mxu0 %v4176_v27 }
  0xe5   : > { %870 = vmatmul.mubr.bf16.gmra.mxu0 %v4911_v14  ;;  %1023 = vmatmul.mubr.bf16.gmra.mxu1 %v4880_v40  ;;  %v4188_v40 = vld [vmem:[#allocation8 + $0x1c4] ss:$8 sps:$4 sm:$0xff]  }
  0xe6   : > { %879 = vmatprep.mubr.bf16.mxu0 %v4604_v0  ;;  %1032 = vmatprep.mubr.bf16.mxu1 %v4604_v0 }
  0xe7   : > { %2203 = vmatpush1.bf16.msra.mxu1 %v4141_v15  ;;  %2022 = vmatpush2.bf16.msra.mxu0 %v4174_v29  ;;  %v4205_v29 = vld [vmem:[#allocation10 + $0x38] sm:$0xff]  }
  0xe8   : > { %2204 = vmatprep.subr.bf16.mxu1 %v4152_v17  ;;  %2023 = vmatprep.subr.bf16.mxu0 %v4182_v31 }
  0xeb   : > { %2205 = vmatpush1.bf16.msra.mxu1 %v4150_v21  ;;  %2024 = vmatpush2.bf16.msra.mxu0 %v4180_v34 }
  0xec   : > { %2206 = vmatprep.subr.bf16.mxu1 %v4161_v22  ;;  %2025 = vmatprep.subr.bf16.mxu0 %v4185_v37 }
  0xed   : > { %880 = vmatmul.mubr.bf16.gmra.mxu0 %v4104_v24  ;;  %1033 = vmatmul.mubr.bf16.gmra.mxu1 %v4890_v50  ;;  %v4198_v50 = vld [vmem:[#allocation8 + $0x190] ss:$8 sps:$4 sm:$0xff]  }
  0xee   : > { %889 = vmatprep.mubr.bf16.mxu0 %v4604_v0  ;;  %1042 = vmatprep.mubr.bf16.mxu1 %v4604_v0 }
  0xef   : > { %2207 = vmatpush2.bf16.msra.mxu1 %v4159_v26  ;;  %2026 = vmatpush2.bf16.msra.mxu0 %v4183_v38 }
  0xf0   : > { %2208 = vmatprep.subr.bf16.mxu1 %v4170_v28  ;;  %2027 = vmatprep.subr.bf16.mxu0 %v4191_v42 }
  0xf3   : > { %2209 = vmatpush2.bf16.msra.mxu1 %v4168_v30  ;;  %2028 = vmatpush2.bf16.msra.mxu0 %v4189_v44 }
  0xf4   : > { %2210 = vmatprep.subr.bf16.mxu1 %v4179_v33  ;;  %3738 = vmatprep.subr.bf16.mxu0 %v4204_v1 }
  0xf5   : > { %890 = vmatmul.mubr.bf16.gmra.mxu0 %v4105_v35  ;;  %1043 = vmatmul.mubr.bf16.gmra.mxu1 %v4897_v56  ;;  %v5945_v56 = vsub.s32 0, %v4943_v55 }
  0xf6   : > { %899 = vmatprep.mubr.bf16.mxu0 %v4604_v0  ;;  %1052 = vmatprep.mubr.bf16.mxu1 %v4604_v0 }
  0xf7   : > { %2211 = vmatpush2.bf16.msra.mxu1 %v4177_v36 }
  0xf8   : > { %2212 = vmatprep.subr.bf16.mxu1 %v4188_v40 }
  0xfb   : > { %2213 = vmatpush2.bf16.msra.mxu1 %v4186_v39 }
  0xfc   : > { %2214 = vmatprep.subr.bf16.mxu1 %v4194_v46 }
  0xfd   : > { %900 = vmatmul.mubr.bf16.gmra.mxu0 %v4106_v43  ;;  %1053 = vmatmul.mubr.bf16.gmra.mxu1 %v4904_v5 }
  0xfe   : > { %909 = vmatprep.mubr.bf16.mxu0 %v4604_v0  ;;  %1062 = vmatprep.mubr.bf16.mxu1 %v4604_v0 }
  0xff   : > { %2215 = vmatpush2.bf16.msra.mxu1 %v4192_v45 }
 0x100   : > { %2216 = vmatprep.subr.bf16.mxu1 %v4197_v49 }
 0x103   : > { %2217 = vmatpush2.bf16.msra.mxu1 %v4195_v48 }
 0x104   : > { %2218 = vmatprep.subr.bf16.mxu1 %v4200_v51 }
 0x105   : > { %910 = vmatmul.mubr.bf16.gmra.mxu0 %v4107_v47  ;;  %1063 = vmatmul.mubr.bf16.gmra.mxu1 %v4911_v14 }
 0x106   : > { %1072 = vmatprep.mubr.bf16.mxu1 %v4604_v0 }
 0x107   : > { %2219 = vmatpush2.bf16.msra.mxu1 %v4198_v50 }
 0x108   : > { %2220 = vmatprep.subr.bf16.mxu1 %v4203_v53 }
 0x10b   : > { %2221 = vmatpush2.bf16.msra.mxu1 %v4201_v52 }
 0x10d   : > { %1073 = vmatmul.mubr.bf16.gmra.mxu1 %v4104_v24 }
 0x10e   : > { %1082 = vmatprep.mubr.bf16.mxu1 %v4604_v0 }
 0x115   : > { %1083 = vmatmul.mubr.bf16.gmra.mxu1 %v4105_v35 }
 0x116   : > { %1092 = vmatprep.mubr.bf16.mxu1 %v4604_v0 }
 0x11d   : > { %1093 = vmatmul.mubr.bf16.gmra.mxu1 %v4106_v43 }
 0x11e   : > { %1102 = vmatprep.mubr.bf16.mxu1 %v4604_v0 }
 0x125   : > { %1103 = vmatmul.mubr.bf16.gmra.mxu1 %v4107_v47 }
 0x126   : > { %1112 = vmatprep.mubr.bf16.mxu1 %v4604_v0 }
 0x12d   : > { %1113 = vmatmul.mubr.bf16.gmra.mxu1 %v4853_v19  ;;  %v5946_v19 = vsub.s32 1, %v4943_v55 }
 0x12e   : > { %1122 = vmatprep.mubr.bf16.mxu1 %v4604_v0 }
 0x135   : > { %1123 = vmatmul.mubr.bf16.gmra.mxu1 %v4863_v25  ;;  %v4952_v25 = vrot.slane %v4946_v57, %v5945_v56 }
 0x136   : > { %1132 = vmatprep.mubr.bf16.mxu1 %v4604_v0 }
 0x13d   : > { %1133 = vmatmul.mubr.bf16.gmra.mxu1 %v4873_v32 }
 0x13e   : > { %1142 = vmatprep.mubr.bf16.mxu1 %v4604_v0 }
 0x145   : > { %1143 = vmatmul.mubr.bf16.gmra.mxu1 %v4883_v41  ;;  %v4958_v41 = vrot.slane %v4946_v57, %v5946_v19 }
 0x16d   : > { %v801_v58 = vpop.f32.mrf.mxu0  ;;  %v921_v32 = vpop.f32.mrf.mxu1 }
 0x16e   : > { %v802_v0 = vadd.f32 %v801_v58, %v4952_v25  ;;  %v922_v34 = vadd.f32 %v921_v32, %v4952_v25 }
 0x16f   : > { %v803_v59 = vpop.f32.mrf.mxu0  ;;  %v4960_v60 = vpop.f32.mrf.mxu1 }
 0x170   : > { %v804_v61 = vadd.f32 %v803_v59, %v4958_v41  ;;  %v1281_v2 = vmul.f32 0.2, %v802_v0  ;;  %vm1153_vm0 = vcmp.gt.f32.partialorder %v802_v0, 0.0  ;;  %v1377_v48 = vmul.f32 0.2, %v922_v34 }
 0x171   : > { %v805_v62 = vpop.f32.mrf.mxu0  ;;  %v925_v63 = vpop.f32.mrf.mxu1  ;;  %vm1249_vm9 = vcmp.gt.f32.partialorder %v922_v34, 0.0 }
 0x172   : > { %v806_v3 = vadd.f32 %v805_v62, %v4952_v25  ;;  %v1282_v4 = vmul.f32 0.2, %v804_v61  ;;  %vm1154_vm1 = vcmp.gt.f32.partialorder %v804_v61, 0.0  ;;  %v1409_v11 = vsel %vm1153_vm0, %v802_v0, %v1281_v2 }
 0x173   : > { %v807_v5 = vpop.f32.mrf.mxu0  ;;  %v4964_v6 = vpop.f32.mrf.mxu1  ;;  %v926_v24 = vadd.f32 %v925_v63, %v4952_v25  ;;  %v4997_v2 = vsel %vm1249_vm9, %v922_v34, %v1377_v48 }
 0x174   : > { %vm1157_vm2 = vcmp.gt.f32.partialorder %v806_v3, 0.0  ;;  %v1285_v7 = vmul.f32 0.2, %v806_v3  ;;  %v808_v8 = vadd.f32 %v807_v5, %v4958_v41  ;;  %v1410_v17 = vsel %vm1154_vm1, %v804_v61, %v1282_v4 }
 0x175   : > { %v811_v9 = vpop.f32.mrf.mxu0  ;;  %v4967_v10 = vpop.f32.mrf.mxu1  ;;  %v1381_v39 = vmul.f32 0.2, %v926_v24  ;;  %vm1253_vm7 = vcmp.gt.f32.partialorder %v926_v24, 0.0 }
 0x176   : > { %v1413_v12 = vsel %vm1157_vm2, %v806_v3, %v1285_v7  ;;  %v812_v13 = vadd.f32 %v811_v9, %v4952_v25  ;;  %vm1158_vm3 = vcmp.gt.f32.partialorder %v808_v8, 0.0  ;;  %v1286_v14 = vmul.f32 0.2, %v808_v8 }
 0x177   : > { %v813_v15 = vpop.f32.mrf.mxu0  ;;  %v4970_v16 = vpop.f32.mrf.mxu1  ;;  %v1537_v18 = vpack.c.bf16 %v1413_v12, %v1409_v11  ;;  %v4992_v59 = vsel %vm1253_vm7, %v926_v24, %v1381_v39  ;;  %v501_v12 = vsub.s32 2, %v4943_v55  ;;  %v5026_v39 = vadd.f32 %v4967_v10, %v4952_v25 }
 0x178   : > { %v814_v20 = vadd.f32 %v813_v15, %v4958_v41  ;;  %v1414_v23 = vsel %vm1158_vm3, %v808_v8, %v1286_v14  ;;  %v1289_v26 = vmul.f32 0.2, %v812_v13  ;;  %vm1161_vm4 = vcmp.gt.f32.partialorder %v812_v13, 0.0 }
 0x179   : > { %v815_v21 = vpop.f32.mrf.mxu0  ;;  %v4973_v22 = vpop.f32.mrf.mxu1  ;;  %v1538_v28 = vpack.c.bf16 %v1414_v23, %v1410_v17  ;;  %v5034_v48 = vadd.f32 %v4970_v16, %v4958_v41 }
 0x17a   : > { %v816_v27 = vadd.f32 %v815_v21, %v4952_v25  ;;  %v1290_v30 = vmul.f32 0.2, %v814_v20  ;;  %vm1162_vm5 = vcmp.gt.f32.partialorder %v814_v20, 0.0  ;;  %v1417_v42 = vsel %vm1161_vm4, %v812_v13, %v1289_v26 }
 0x17b   : > { %v817_v31 = vpop.f32.mrf.mxu0  ;;  %v4977_v33 = vpop.f32.mrf.mxu1  ;;  %2029 = vmatprep.mubr.bf16.mxu0 %v1538_v28  ;;  %v924_v13 = vadd.f32 %v4960_v60, %v4958_v41  ;;  %v928_v21 = vadd.f32 %v4964_v6, %v4958_v41  ;;  %v4207_v60 = vld [vmem:[#allocation10 + $0x30] sm:$0xff]   ;;  %v5022_v6 = vrot.slane %v4946_v57, %v501_v12 }
 0x17c   : > { %vm1165_vm6 = vcmp.gt.f32.partialorder %v816_v27, 0.0  ;;  %v1293_v35 = vmul.f32 0.2, %v816_v27  ;;  %v818_v36 = vadd.f32 %v817_v31, %v4958_v41  ;;  %2030 = vmatmul.mubr.bf16.vlgmr.msra.gmra.mxu0 %v1537_v18  ;;  %v1418_v47 = vsel %vm1162_vm5, %v814_v20, %v1290_v30 }
 0x17d   : > { %v821_v37 = vpop.f32.mrf.mxu0  ;;  %v4981_v38 = vpop.f32.mrf.mxu1  ;;  %3739 = vmatpush3.bf16.msra.mxu0 %v4205_v29  ;;  %v505_v20 = vsub.s32 3, %v4943_v55  ;;  %v1378_v34 = vmul.f32 0.2, %v924_v13  ;;  %vm1250_vm1 = vcmp.gt.f32.partialorder %v924_v13, 0.0  ;;  %vm1254_vm2 = vcmp.gt.f32.partialorder %v928_v21, 0.0 }
 0x17e   : > { %v822_v40 = vadd.f32 %v821_v37, %v4952_v25  ;;  %v1421_v43 = vsel %vm1165_vm6, %v816_v27, %v1293_v35  ;;  %vm1166_vm8 = vcmp.gt.f32.partialorder %v818_v36, 0.0  ;;  %v1294_v44 = vmul.f32 0.2, %v818_v36  ;;  %3740 = vmatprep.subr.bf16.mxu0 %v4206_v54 }
 0x17f   : > { %v823_v45 = vpop.f32.mrf.mxu0  ;;  %v4984_v46 = vpop.f32.mrf.mxu1  ;;  %v1541_v53 = vpack.c.bf16 %v1421_v43, %v1417_v42  ;;  %v1382_v42 = vmul.f32 0.2, %v928_v21  ;;  %v5047_v16 = vadd.f32 %v4977_v33, %v4958_v41 }
 0x180   : > { %v824_v49 = vadd.f32 %v823_v45, %v4958_v41  ;;  %v1422_v52 = vsel %vm1166_vm8, %v818_v36, %v1294_v44  ;;  %v1297_v58 = vmul.f32 0.2, %v822_v40  ;;  %vm1169_vm10 = vcmp.gt.f32.partialorder %v822_v40, 0.0 }
 0x181   : > { %v825_v50 = vpop.f32.mrf.mxu0  ;;  %v4988_v51 = vpop.f32.mrf.mxu1  ;;  %v1542_v0 = vpack.c.bf16 %v1422_v52, %v1418_v47  ;;  %3741 = vmatpush3.bf16.msra.mxu0 %v4207_v60  ;;  %v5030_v47 = vrot.slane %v4946_v57, %v505_v20  ;;  %v5043_v57 = vmul.f32 0.2, %v5026_v39 }
 0x182   : > { %v826_v32 = vadd.f32 %v825_v50, %v4952_v25  ;;  %v1298_v61 = vmul.f32 0.2, %v824_v49  ;;  %vm1170_vm11 = vcmp.gt.f32.partialorder %v824_v49, 0.0  ;;  %v1425_v9 = vsel %vm1169_vm10, %v822_v40, %v1297_v58 }
 0x183   : > { %v827_v62 = vpop.f32.mrf.mxu0  ;;  %v4994_v63 = vpop.f32.mrf.mxu1  ;;  %2039 = vmatprep.mubr.bf16.mxu0 %v1542_v0  ;;  %v5039_v50 = vadd.f32 %v4973_v22, %v4952_v25  ;;  %v5053_v0 = vsel %vm1250_vm1, %v924_v13, %v1378_v34  ;;  %v5063_v13 = vmul.f32 0.2, %v5034_v48 }
 0x184   : > { %vm1173_vm12 = vcmp.gt.f32.partialorder %v826_v32, 0.0  ;;  %v1301_v1 = vmul.f32 0.2, %v826_v32  ;;  %v828_v3 = vadd.f32 %v827_v62, %v4958_v41  ;;  %2040 = vmatmul.mubr.bf16.gmra.mxu0 %v1541_v53  ;;  %v1426_v18 = vsel %vm1170_vm11, %v824_v49, %v1298_v61 }
 0x185   : > { %v831_v4 = vpop.f32.mrf.mxu0  ;;  %v5000_v5 = vpop.f32.mrf.mxu1 }
 0x186   : > { %v832_v8 = vadd.f32 %v831_v4, %v4952_v25  ;;  %v1429_v11 = vsel %vm1173_vm12, %v826_v32, %v1301_v1  ;;  %vm1174_vm13 = vcmp.gt.f32.partialorder %v828_v3, 0.0  ;;  %v1302_v14 = vmul.f32 0.2, %v828_v3 }
 0x187   : > { %v833_v15 = vpop.f32.mrf.mxu0  ;;  %v5009_v17 = vpop.f32.mrf.mxu1  ;;  %v1545_v28 = vpack.c.bf16 %v1429_v11, %v1425_v9  ;;  %v5057_v4 = vsel %vm1254_vm2, %v928_v21, %v1382_v42 }
 0x188   : > { %v834_v23 = vadd.f32 %v833_v15, %v4958_v41  ;;  %v1430_v27 = vsel %vm1174_vm13, %v828_v3, %v1302_v14  ;;  %v1305_v29 = vmul.f32 0.2, %v832_v8  ;;  %vm1177_vm14 = vcmp.gt.f32.partialorder %v832_v8, 0.0 }
 0x189   : > { %v835_v24 = vpop.f32.mrf.mxu0  ;;  %v5016_v26 = vpop.f32.mrf.mxu1  ;;  %v1546_v31 = vpack.c.bf16 %v1430_v27, %v1426_v18  ;;  %v5066_v14 = vmul.f32 0.2, %v5039_v50  ;;  %v5070_v15 = vadd.f32 %v4981_v38, %v4952_v25 }
 0x18a   : > { %v836_v30 = vadd.f32 %v835_v24, %v4952_v25  ;;  %v1306_v35 = vmul.f32 0.2, %v834_v23  ;;  %vm1178_vm15 = vcmp.gt.f32.partialorder %v834_v23, 0.0  ;;  %v1433_v10 = vsel %vm1177_vm14, %v832_v8, %v1305_v29  ;;  %v4208_v8 = vld [vmem:[#allocation10 + $0x68] sm:$0xff]  }
 0x18b   : > { %v837_v36 = vpop.f32.mrf.mxu0  ;;  %v5019_v37 = vpop.f32.mrf.mxu1  ;;  %2049 = vmatprep.mubr.bf16.mxu0 %v1546_v31  ;;  %3742 = vmatprep.subr.bf16.mxu0 %v4208_v8 }
 0x18c   : > { %vm1181_vm0 = vcmp.gt.f32.partialorder %v836_v30, 0.0  ;;  %v1309_v40 = vmul.f32 0.2, %v836_v30  ;;  %v838_v43 = vadd.f32 %v837_v36, %v4958_v41  ;;  %2050 = vmatmul.mubr.bf16.gmra.mxu0 %v1545_v28  ;;  %v1434_v58 = vsel %vm1178_vm15, %v834_v23, %v1306_v35 }
 0x18d   : > { %v841_v44 = vpop.f32.mrf.mxu0  ;;  %v994_v45 = vpop.f32.mrf.mxu1  ;;  %v5073_v23 = vmul.f32 0.2, %v5047_v16 }
 0x18e   : > { %v1437_v49 = vsel %vm1181_vm0, %v836_v30, %v1309_v40  ;;  %vm1182_vm3 = vcmp.gt.f32.partialorder %v838_v43, 0.0  ;;  %v1310_v52 = vmul.f32 0.2, %v838_v43  ;;  %v5050_v32 = vadd.f32 %v841_v44, %v4952_v25  ;;  %v4209_v44 = vld [vmem:[#allocation10 + $0x28] sm:$0xff]  }
 0x18f   : > { %v843_v53 = vpop.f32.mrf.mxu0  ;;  %v996_v54 = vpop.f32.mrf.mxu1  ;;  %v1549_v3 = vpack.c.bf16 %v1437_v49, %v1433_v10  ;;  %v995_v9 = vadd.f32 %v994_v45, %v5022_v6  ;;  %v5083_v45 = vmul.f32 0.2, %v5070_v15  ;;  %3743 = vmatpush3.bf16.msra.mxu0 %v4209_v44 }
 0x190   : > { %v844_v22 = vadd.f32 %v843_v53, %v4958_v41  ;;  %v1438_v1 = vsel %vm1182_vm3, %v838_v43, %v1310_v52  ;;  %v997_v33 = vadd.f32 %v996_v54, %v5030_v47  ;;  %v1313_v24 = vmul.f32 0.2, %v5050_v32 }
 0x191   : > { %v845_v61 = vpop.f32.mrf.mxu0  ;;  %v998_v62 = vpop.f32.mrf.mxu1  ;;  %v1550_v12 = vpack.c.bf16 %v1438_v1, %v1434_v58  ;;  %vm1155_vm5 = vcmp.gt.f32.partialorder %v995_v9, 0.0  ;;  %v1283_v34 = vmul.f32 0.2, %v995_v9  ;;  %vm1185_vm9 = vcmp.gt.f32.partialorder %v5050_v32, 0.0 }
 0x192   : > { %v999_v11 = vadd.f32 %v998_v62, %v5022_v6  ;;  %v1314_v18 = vmul.f32 0.2, %v844_v22  ;;  %vm1186_vm4 = vcmp.gt.f32.partialorder %v844_v22, 0.0  ;;  %v846_v28 = vadd.f32 %v845_v61, %v4952_v25 }
 0x193   : > { %v847_v20 = vpop.f32.mrf.mxu0  ;;  %v1000_v21 = vpop.f32.mrf.mxu1  ;;  %2059 = vmatprep.mubr.bf16.mxu0 %v1550_v12  ;;  %v1284_v35 = vmul.f32 0.2, %v997_v33  ;;  %vm1156_vm10 = vcmp.gt.f32.partialorder %v997_v33, 0.0  ;;  %v1411_v62 = vsel %vm1155_vm5, %v995_v9, %v1283_v34 }
 0x194   : > { %v1287_v60 = vmul.f32 0.2, %v999_v11  ;;  %v848_v38 = vadd.f32 %v847_v20, %v4958_v41  ;;  %v1001_v29 = vadd.f32 %v1000_v21, %v5030_v47  ;;  %2060 = vmatmul.mubr.bf16.gmra.mxu0 %v1549_v3  ;;  %vm1159_vm6 = vcmp.gt.f32.partialorder %v999_v11, 0.0 }
 0x195   : > { %v851_v30 = vpop.f32.mrf.mxu0  ;;  %v1004_v31 = vpop.f32.mrf.mxu1  ;;  %v1442_v43 = vsel %vm1186_vm4, %v844_v22, %v1314_v18  ;;  %v1317_v49 = vmul.f32 0.2, %v846_v28  ;;  %vm1189_vm11 = vcmp.gt.f32.partialorder %v846_v28, 0.0  ;;  %v1412_v18 = vsel %vm1156_vm10, %v997_v33, %v1284_v35 }
 0x196   : > { %vm1190_vm7 = vcmp.gt.f32.partialorder %v848_v38, 0.0  ;;  %v1318_v36 = vmul.f32 0.2, %v848_v38  ;;  %vm1160_vm8 = vcmp.gt.f32.partialorder %v1001_v29, 0.0  ;;  %v1288_v10 = vmul.f32 0.2, %v1001_v29 }
 0x197   : > { %v853_v40 = vpop.f32.mrf.mxu0  ;;  %v1006_v42 = vpop.f32.mrf.mxu1  ;;  %v1415_v52 = vsel %vm1159_vm6, %v999_v11, %v1287_v60  ;;  %v1441_v11 = vsel %vm1185_vm9, %v5050_v32, %v1313_v24  ;;  %v852_v21 = vadd.f32 %v851_v30, %v4952_v25  ;;  %v5096_v60 = vadd.f32 %v1004_v31, %v5022_v6 }
 0x198   : > { %v854_v53 = vadd.f32 %v853_v40, %v4958_v41  ;;  %v1446_v61 = vsel %vm1190_vm7, %v848_v38, %v1318_v36  ;;  %v1416_v1 = vsel %vm1160_vm8, %v1001_v29, %v1288_v10  ;;  %v1539_v20 = vpack.c.bf16 %v1415_v52, %v1411_v62  ;;  %v4211_v62 = vld [vmem:[#allocation10 + $0x20] sm:$0xff]  }
 0x199   : > { %v855_v54 = vpop.f32.mrf.mxu0  ;;  %v1008_v58 = vpop.f32.mrf.mxu1  ;;  %v1554_v22 = vpack.c.bf16 %v1446_v61, %v1442_v43  ;;  %v1007_v9 = vadd.f32 %v1006_v42, %v5030_v47  ;;  %v1540_v34 = vpack.c.bf16 %v1416_v1, %v1412_v18  ;;  %v1445_v33 = vsel %vm1189_vm11, %v846_v28, %v1317_v49  ;;  %v4210_v61 = vld [vmem:[#allocation10 + $0x60] sm:$0xff]  }
 0x19a   : > { %vm1194_vm12 = vcmp.gt.f32.partialorder %v854_v53, 0.0  ;;  %v1322_v3 = vmul.f32 0.2, %v854_v53  ;;  %v856_v32 = vadd.f32 %v855_v54, %v4952_v25  ;;  %v1009_v24 = vadd.f32 %v1008_v58, %v5022_v6  ;;  %3744 = vmatprep.subr.bf16.mxu0 %v4210_v61 }
 0x19b   : > { %v857_v8 = vpop.f32.mrf.mxu0  ;;  %v1010_v12 = vpop.f32.mrf.mxu1  ;;  %2069 = vmatprep.mubr.bf16.mxu0 %v1554_v22  ;;  %v1553_v30 = vpack.c.bf16 %v1445_v33, %v1441_v11  ;;  %2222 = vmatprep.mubr.bf16.mxu1 %v1540_v34  ;;  %v5107_v10 = vadd.f32 %v4988_v51, %v4952_v25  ;;  %v1321_v28 = vmul.f32 0.2, %v852_v21  ;;  %v1292_v49 = vmul.f32 0.2, %v1007_v9  ;;  %v4212_v22 = vld [vmem:[#allocation10 + $0x58] sm:$0xff]  }
 0x19c   : > { %v858_v38 = vadd.f32 %v857_v8, %v4958_v41  ;;  %v1011_v29 = vadd.f32 %v1010_v12, %v5030_v47  ;;  %v1450_v31 = vsel %vm1194_vm12, %v854_v53, %v1322_v3  ;;  %2223 = vmatmul.mubr.bf16.vlgmr.msra.gmra.mxu1 %v1539_v20  ;;  %vm1193_vm15 = vcmp.gt.f32.partialorder %v852_v21, 0.0  ;;  %3745 = vmatpush3.bf16.msra.mxu0 %v4211_v62 }
 0x19d   : > { %v861_v35 = vpop.f32.mrf.mxu0  ;;  %v1014_v36 = vpop.f32.mrf.mxu1  ;;  %2070 = vmatmul.mubr.bf16.gmra.mxu0 %v1553_v30  ;;  %vm1163_vm0 = vcmp.gt.f32.partialorder %v5096_v60, 0.0  ;;  %vm1164_vm1 = vcmp.gt.f32.partialorder %v1007_v9, 0.0  ;;  %v1325_v51 = vmul.f32 0.2, %v856_v32  ;;  %v1295_v1 = vmul.f32 0.2, %v1009_v24  ;;  %3746 = vmatprep.subr.bf16.mxu0 %v4212_v22 }
 0x19e   : > { %vm1198_vm13 = vcmp.gt.f32.partialorder %v858_v38, 0.0  ;;  %v1326_v40 = vmul.f32 0.2, %v858_v38  ;;  %vm1168_vm14 = vcmp.gt.f32.partialorder %v1011_v29, 0.0  ;;  %v1296_v42 = vmul.f32 0.2, %v1011_v29 }
 0x19f   : > { %v863_v43 = vpop.f32.mrf.mxu0  ;;  %v1016_v44 = vpop.f32.mrf.mxu1  ;;  %v5110_v52 = vadd.f32 %v861_v35, %v4952_v25  ;;  %v1291_v12 = vmul.f32 0.2, %v5096_v60  ;;  %vm1197_vm2 = vcmp.gt.f32.partialorder %v856_v32, 0.0  ;;  %vm1167_vm3 = vcmp.gt.f32.partialorder %v1009_v24, 0.0  ;;  %v4213_v35 = vld [vmem:[#allocation10 + $0x18] sm:$0xff]  }
 0x1a0   : > { %v1454_v58 = vsel %vm1198_vm13, %v858_v38, %v1326_v40  ;;  %v1424_v8 = vsel %vm1168_vm14, %v1011_v29, %v1296_v42  ;;  %v864_v18 = vadd.f32 %v863_v43, %v4958_v41  ;;  %v5121_v38 = vadd.f32 %v1014_v36, %v5022_v6  ;;  %v4214_v36 = vld [vmem:[#allocation10 + $0x50] sm:$0xff]   ;;  %3747 = vmatpush3.bf16.msra.mxu0 %v4213_v35 }
 0x1a1   : > { %v865_v53 = vpop.f32.mrf.mxu0  ;;  %v1018_v54 = vpop.f32.mrf.mxu1  ;;  %v1558_v3 = vpack.c.bf16 %v1454_v58, %v1450_v31  ;;  %v5118_v34 = vmul.f32 0.2, %v5110_v52  ;;  %v5124_v33 = vadd.f32 %v1016_v44, %v5030_v47  ;;  %v1420_v29 = vsel %vm1164_vm1, %v1007_v9, %v1292_v49  ;;  %3748 = vmatprep.subr.bf16.mxu0 %v4214_v36 }
 0x1a2   : > { %v5128_v30 = vadd.f32 %v865_v53, %v4952_v25  ;;  %v1544_v40 = vpack.c.bf16 %v1424_v8, %v1420_v29  ;;  %v1449_v42 = vsel %vm1193_vm15, %v852_v21, %v1321_v28  ;;  %v1019_v44 = vadd.f32 %v1018_v54, %v5022_v6 }
 0x1a3   : > { %v867_v11 = vpop.f32.mrf.mxu0  ;;  %v1020_v20 = vpop.f32.mrf.mxu1  ;;  %2079 = vmatprep.mubr.bf16.mxu0 %v1558_v3  ;;  %v1453_v9 = vsel %vm1197_vm2, %v856_v32, %v1325_v51  ;;  %v1423_v49 = vsel %vm1167_vm3, %v1009_v24, %v1295_v1  ;;  %vm1202_vm4 = vcmp.gt.f32.partialorder %v864_v18, 0.0  ;;  %v1330_v53 = vmul.f32 0.2, %v864_v18 }
 0x1a4   : > { %v868_v31 = vadd.f32 %v867_v11, %v4958_v41  ;;  %v1021_v61 = vadd.f32 %v1020_v20, %v5030_v47  ;;  %2232 = vmatprep.mubr.bf16.mxu1 %v1544_v40  ;;  %v1419_v21 = vsel %vm1163_vm0, %v5096_v60, %v1291_v12  ;;  %v1557_v22 = vpack.c.bf16 %v1453_v9, %v1449_v42 }
 0x1a5   : > { %v871_v43 = vpop.f32.mrf.mxu0  ;;  %v1024_v58 = vpop.f32.mrf.mxu1  ;;  %v1543_v8 = vpack.c.bf16 %v1423_v49, %v1419_v21  ;;  %vm1201_vm6 = vcmp.gt.f32.partialorder %v5110_v52, 0.0  ;;  %vm1171_vm7 = vcmp.gt.f32.partialorder %v5121_v38, 0.0  ;;  %v1299_v32 = vmul.f32 0.2, %v5121_v38 }
 0x1a6   : > { %v1334_v62 = vmul.f32 0.2, %v868_v31  ;;  %vm1206_vm5 = vcmp.gt.f32.partialorder %v868_v31, 0.0  ;;  %v5140_v54 = vadd.f32 %v871_v43, %v4952_v25  ;;  %v1300_v24 = vmul.f32 0.2, %v5124_v33  ;;  %2080 = vmatmul.mubr.bf16.gmra.mxu0 %v1557_v22 }
 0x1a7   : > { %v873_v28 = vpop.f32.mrf.mxu0  ;;  %v1026_v3 = vpop.f32.mrf.mxu1  ;;  %vm1172_vm8 = vcmp.gt.f32.partialorder %v5124_v33, 0.0  ;;  %vm1205_vm9 = vcmp.gt.f32.partialorder %v5128_v30, 0.0  ;;  %v1333_v60 = vmul.f32 0.2, %v5128_v30  ;;  %v1304_v12 = vmul.f32 0.2, %v1021_v61  ;;  %2233 = vmatmul.mubr.bf16.gmra.mxu1 %v1543_v8 }
 0x1a8   : > { %vm1176_vm10 = vcmp.gt.f32.partialorder %v1021_v61, 0.0  ;;  %v5150_v11 = vadd.f32 %v1024_v58, %v5022_v6  ;;  %v1458_v35 = vsel %vm1202_vm4, %v864_v18, %v1330_v53  ;;  %v1462_v40 = vsel %vm1206_vm5, %v868_v31, %v1334_v62 }
 0x1a9   : > { %v875_v51 = vpop.f32.mrf.mxu0  ;;  %v1028_v1 = vpop.f32.mrf.mxu1  ;;  %vm1175_vm11 = vcmp.gt.f32.partialorder %v1019_v44, 0.0  ;;  %v1303_v42 = vmul.f32 0.2, %v1019_v44  ;;  %vm1209_vm12 = vcmp.gt.f32.partialorder %v5140_v54, 0.0  ;;  %v1337_v43 = vmul.f32 0.2, %v5140_v54 }
 0x1aa   : > { %v874_v36 = vadd.f32 %v873_v28, %v4958_v41  ;;  %v5158_v9 = vadd.f32 %v1026_v3, %v5030_v47  ;;  %v5161_v58 = vadd.f32 %v875_v51, %v4952_v25  ;;  %v5164_v49 = vadd.f32 %v1028_v1, %v5022_v6 }
 0x1ab   : > { %v877_v20 = vpop.f32.mrf.mxu0  ;;  %v1030_v29 = vpop.f32.mrf.mxu1  ;;  %v1562_v62 = vpack.c.bf16 %v1462_v40, %v1458_v35  ;;  %v1432_v21 = vsel %vm1176_vm10, %v1021_v61, %v1304_v12  ;;  %v1457_v28 = vsel %vm1201_vm6, %v5110_v52, %v5118_v34  ;;  %vm1179_vm13 = vcmp.gt.f32.partialorder %v5150_v11, 0.0 }
 0x1ac   : > { %v878_v31 = vadd.f32 %v877_v20, %v4958_v41  ;;  %v1307_v3 = vmul.f32 0.2, %v5150_v11  ;;  %v1031_v22 = vadd.f32 %v1030_v29, %v5030_v47  ;;  %v1428_v8 = vsel %vm1172_vm8, %v5124_v33, %v1300_v24 }
 0x1ad   : > { %v881_v18 = vpop.f32.mrf.mxu0  ;;  %v1034_v53 = vpop.f32.mrf.mxu1  ;;  %2089 = vmatprep.mubr.bf16.mxu0 %v1562_v62  ;;  %v1548_v20 = vpack.c.bf16 %v1432_v21, %v1428_v8  ;;  %v1461_v61 = vsel %vm1205_vm9, %v5128_v30, %v1333_v60  ;;  %v1427_v52 = vsel %vm1171_vm7, %v5121_v38, %v1299_v32  ;;  %v1431_v34 = vsel %vm1175_vm11, %v1019_v44, %v1303_v42 }
 0x1ae   : > { %vm1210_vm14 = vcmp.gt.f32.partialorder %v874_v36, 0.0  ;;  %v1338_v12 = vmul.f32 0.2, %v874_v36  ;;  %v1561_v29 = vpack.c.bf16 %v1461_v61, %v1457_v28  ;;  %v1547_v35 = vpack.c.bf16 %v1431_v34, %v1427_v52 }
 0x1af   : > { %v883_v51 = vpop.f32.mrf.mxu0  ;;  %v1036_v1 = vpop.f32.mrf.mxu1  ;;  %vm1180_vm15 = vcmp.gt.f32.partialorder %v5158_v9, 0.0  ;;  %v1308_v24 = vmul.f32 0.2, %v5158_v9  ;;  %v1342_v62 = vmul.f32 0.2, %v878_v31  ;;  %2242 = vmatprep.mubr.bf16.mxu1 %v1548_v20  ;;  %v5188_v30 = vadd.f32 %v881_v18, %v4952_v25 }
 0x1b0   : > { %vm1213_vm0 = vcmp.gt.f32.partialorder %v5161_v58, 0.0  ;;  %vm1214_vm1 = vcmp.gt.f32.partialorder %v878_v31, 0.0  ;;  %v1312_v38 = vmul.f32 0.2, %v1031_v22  ;;  %2090 = vmatmul.mubr.bf16.gmra.mxu0 %v1561_v29  ;;  %2243 = vmatmul.mubr.bf16.gmra.mxu1 %v1547_v35  ;;  %v5192_v44 = vadd.f32 %v1034_v53, %v5022_v6 }
 0x1b1   : > { %v885_v40 = vpop.f32.mrf.mxu0  ;;  %v1038_v33 = vpop.f32.mrf.mxu1  ;;  %v1341_v42 = vmul.f32 0.2, %v5161_v58  ;;  %vm1183_vm2 = vcmp.gt.f32.partialorder %v5164_v49, 0.0  ;;  %vm1184_vm3 = vcmp.gt.f32.partialorder %v1031_v22, 0.0  ;;  %v884_v21 = vadd.f32 %v883_v51, %v4958_v41 }
 0x1b2   : > { %v1311_v18 = vmul.f32 0.2, %v5164_v49  ;;  %v5199_v28 = vadd.f32 %v1036_v1, %v5030_v47  ;;  %v5202_v8 = vadd.f32 %v885_v40, %v4952_v25  ;;  %v5205_v53 = vadd.f32 %v1038_v33, %v5022_v6 }
 0x1b3   : > { %v887_v32 = vpop.f32.mrf.mxu0  ;;  %v1040_v60 = vpop.f32.mrf.mxu1  ;;  %vm1217_vm4 = vcmp.gt.f32.partialorder %v5188_v30, 0.0  ;;  %v1345_v52 = vmul.f32 0.2, %v5188_v30  ;;  %v1466_v34 = vsel %vm1210_vm14, %v874_v36, %v1338_v12  ;;  %v1470_v51 = vsel %vm1214_vm1, %v878_v31, %v1342_v62 }
 0x1b4   : > { %vm1187_vm5 = vcmp.gt.f32.partialorder %v5192_v44, 0.0  ;;  %v888_v1 = vadd.f32 %v887_v32, %v4958_v41  ;;  %v1566_v29 = vpack.c.bf16 %v1470_v51, %v1466_v34  ;;  %v1440_v35 = vsel %vm1184_vm3, %v1031_v22, %v1312_v38 }
 0x1b5   : > { %v891_v20 = vpop.f32.mrf.mxu0  ;;  %v1044_v61 = vpop.f32.mrf.mxu1  ;;  %v1465_v40 = vsel %vm1209_vm12, %v5140_v54, %v1337_v43  ;;  %v1315_v19 = vmul.f32 0.2, %v5192_v44  ;;  %vm1218_vm6 = vcmp.gt.f32.partialorder %v884_v21, 0.0  ;;  %v1041_v7 = vadd.f32 %v1040_v60, %v5030_v47 }
 0x1b6   : > { %v1436_v36 = vsel %vm1180_vm15, %v5158_v9, %v1308_v24  ;;  %2099 = vmatprep.mubr.bf16.mxu0 %v1566_v29  ;;  %v1469_v22 = vsel %vm1213_vm0, %v5161_v58, %v1341_v42  ;;  %v1435_v54 = vsel %vm1179_vm13, %v5150_v11, %v1307_v3  ;;  %v1439_v43 = vsel %vm1183_vm2, %v5164_v49, %v1311_v18 }
 0x1b7   : > { %v893_v33 = vpop.f32.mrf.mxu0  ;;  %v1046_v56 = vpop.f32.mrf.mxu1  ;;  %v1552_v31 = vpack.c.bf16 %v1440_v35, %v1436_v36  ;;  %v1346_v38 = vmul.f32 0.2, %v884_v21  ;;  %v1565_v32 = vpack.c.bf16 %v1469_v22, %v1465_v40  ;;  %v1551_v60 = vpack.c.bf16 %v1439_v43, %v1435_v54 }
 0x1b8   : > { %v5231_v9 = vadd.f32 %v891_v20, %v4952_v25  ;;  %vm1188_vm7 = vcmp.gt.f32.partialorder %v5199_v28, 0.0  ;;  %v1316_v58 = vmul.f32 0.2, %v5199_v28  ;;  %v1350_v24 = vmul.f32 0.2, %v888_v1 }
 0x1b9   : > { %v895_v12 = vpop.f32.mrf.mxu0  ;;  %v1048_v62 = vpop.f32.mrf.mxu1  ;;  %2252 = vmatprep.mubr.bf16.mxu1 %v1552_v31  ;;  %v5236_v11 = vadd.f32 %v1044_v61, %v5022_v6  ;;  %vm1221_vm8 = vcmp.gt.f32.partialorder %v5202_v8, 0.0  ;;  %v1349_v49 = vmul.f32 0.2, %v5202_v8  ;;  %vm1222_vm9 = vcmp.gt.f32.partialorder %v888_v1, 0.0  ;;  %2100 = vmatmul.mubr.bf16.gmra.mxu0 %v1565_v32  ;;  %v4215_v32 = vld [vmem:[#allocation10 + $0x10] sm:$0xff]  }
 0x1ba   : > { %v1320_v18 = vmul.f32 0.2, %v1041_v7  ;;  %2253 = vmatmul.mubr.bf16.gmra.mxu1 %v1551_v60  ;;  %vm1191_vm10 = vcmp.gt.f32.partialorder %v5205_v53, 0.0  ;;  %v1319_v20 = vmul.f32 0.2, %v5205_v53  ;;  %vm1192_vm11 = vcmp.gt.f32.partialorder %v1041_v7, 0.0  ;;  %3749 = vmatpush3.bf16.msra.mxu0 %v4215_v32 }
 0x1bb   : > { %v897_v3 = vpop.f32.mrf.mxu0  ;;  %v1050_v42 = vpop.f32.mrf.mxu1  ;;  %v5243_v34 = vadd.f32 %v893_v33, %v4958_v41  ;;  %vm1225_vm12 = vcmp.gt.f32.partialorder %v5231_v9, 0.0  ;;  %v5247_v29 = vadd.f32 %v1046_v56, %v5030_v47  ;;  %v5250_v35 = vadd.f32 %v895_v12, %v4952_v25 }
 0x1bc   : > { %v5253_v40 = vadd.f32 %v1048_v62, %v5022_v6  ;;  %v1353_v36 = vmul.f32 0.2, %v5231_v9  ;;  %v5257_v31 = vmul.f32 0.2, %v5236_v11  ;;  %v1474_v33 = vsel %vm1218_vm6, %v884_v21, %v1346_v38 }
 0x1bd   : > { %v901_v61 = vpop.f32.mrf.mxu0  ;;  %v1054_v51 = vpop.f32.mrf.mxu1  ;;  %v1478_v22 = vsel %vm1222_vm9, %v888_v1, %v1350_v24  ;;  %vm1195_vm13 = vcmp.gt.f32.partialorder %v5236_v11, 0.0  ;;  %v898_v56 = vadd.f32 %v897_v3, %v4958_v41  ;;  %v1448_v62 = vsel %vm1192_vm11, %v1041_v7, %v1320_v18 }
 0x1be   : > { %v1570_v12 = vpack.c.bf16 %v1478_v22, %v1474_v33  ;;  %v1473_v60 = vsel %vm1217_vm4, %v5188_v30, %v1345_v52  ;;  %vm1226_vm14 = vcmp.gt.f32.partialorder %v5243_v34, 0.0  ;;  %v1354_v21 = vmul.f32 0.2, %v5243_v34 }
 0x1bf   : > { %v903_v54 = vpop.f32.mrf.mxu0  ;;  %v1056_v43 = vpop.f32.mrf.mxu1  ;;  %v1051_v1 = vadd.f32 %v1050_v42, %v5030_v47  ;;  %v1444_v38 = vsel %vm1188_vm7, %v5199_v28, %v1316_v58  ;;  %v1477_v7 = vsel %vm1221_vm8, %v5202_v8, %v1349_v49  ;;  %v1443_v30 = vsel %vm1187_vm5, %v5192_v44, %v1315_v19 }
 0x1c0   : > { %2109 = vmatprep.mubr.bf16.mxu0 %v1570_v12  ;;  %v1556_v3 = vpack.c.bf16 %v1448_v62, %v1444_v38  ;;  %v1447_v52 = vsel %vm1191_vm10, %v5205_v53, %v1319_v20  ;;  %vm1196_vm15 = vcmp.gt.f32.partialorder %v5247_v29, 0.0  ;;  %v1569_v28 = vpack.c.bf16 %v1477_v7, %v1473_v60 }
 0x1c1   : > { %v905_v24 = vpop.f32.mrf.mxu0  ;;  %v1058_v27 = vpop.f32.mrf.mxu1  ;;  %v1555_v58 = vpack.c.bf16 %v1447_v52, %v1443_v30  ;;  %v5284_v42 = vadd.f32 %v901_v61, %v4952_v25  ;;  %v1324_v22 = vmul.f32 0.2, %v5247_v29  ;;  %v1358_v8 = vmul.f32 0.2, %v898_v56 }
 0x1c2   : > { %2262 = vmatprep.mubr.bf16.mxu1 %v1556_v3  ;;  %v5288_v49 = vadd.f32 %v1054_v51, %v5022_v6  ;;  %v5291_v19 = vadd.f32 %v903_v54, %v4958_v41  ;;  %vm1229_vm0 = vcmp.gt.f32.partialorder %v5250_v35, 0.0  ;;  %v1357_v44 = vmul.f32 0.2, %v5250_v35  ;;  %2110 = vmatmul.mubr.bf16.gmra.mxu0 %v1569_v28 }
 0x1c3   : > { %v907_v18 = vpop.f32.mrf.mxu0  ;;  %v1060_v33 = vpop.f32.mrf.mxu1  ;;  %vm1230_vm1 = vcmp.gt.f32.partialorder %v898_v56, 0.0  ;;  %v1328_v53 = vmul.f32 0.2, %v1051_v1  ;;  %2263 = vmatmul.mubr.bf16.gmra.mxu1 %v1555_v58  ;;  %vm1199_vm2 = vcmp.gt.f32.partialorder %v5253_v40, 0.0  ;;  %v1327_v32 = vmul.f32 0.2, %v5253_v40 }
 0x1c4   : > { %vm1200_vm3 = vcmp.gt.f32.partialorder %v1051_v1, 0.0  ;;  %v5298_v51 = vadd.f32 %v1056_v43, %v5030_v47  ;;  %vm1233_vm4 = vcmp.gt.f32.partialorder %v5284_v42, 0.0  ;;  %v5302_v54 = vmul.f32 0.2, %v5284_v42 }
 0x1c5   : > { %v911_v20 = vpop.f32.mrf.mxu0  ;;  %v1064_v61 = vpop.f32.mrf.mxu1  ;;  %v5305_v12 = vadd.f32 %v905_v24, %v4952_v25  ;;  %v5308_v62 = vadd.f32 %v1058_v27, %v5022_v6  ;;  %v5311_v3 = vmul.f32 0.2, %v5288_v49  ;;  %vm1234_vm5 = vcmp.gt.f32.partialorder %v5291_v19, 0.0 }
 0x1c6   : > { %v1482_v43 = vsel %vm1226_vm14, %v5243_v34, %v1354_v21  ;;  %v1486_v7 = vsel %vm1230_vm1, %v898_v56, %v1358_v8  ;;  %vm1203_vm6 = vcmp.gt.f32.partialorder %v5288_v49, 0.0  ;;  %v908_v24 = vadd.f32 %v907_v18, %v4958_v41 }
 0x1c7   : > { %v913_v60 = vpop.f32.mrf.mxu0  ;;  %v1066_v38 = vpop.f32.mrf.mxu1  ;;  %v1574_v30 = vpack.c.bf16 %v1486_v7, %v1482_v43  ;;  %v1456_v27 = vsel %vm1200_vm3, %v1051_v1, %v1328_v53  ;;  %v1481_v52 = vsel %vm1225_vm12, %v5231_v9, %v1353_v36  ;;  %v1362_v58 = vmul.f32 0.2, %v5291_v19  ;;  %v4216_v53 = vld [vmem:[#allocation10 + $0x48] sm:$0xff]  }
 0x1c8   : > { %vm1204_vm7 = vcmp.gt.f32.partialorder %v5298_v51, 0.0  ;;  %v1061_v55 = vadd.f32 %v1060_v33, %v5030_v47  ;;  %v1452_v34 = vsel %vm1196_vm15, %v5247_v29, %v1324_v22  ;;  %v1485_v1 = vsel %vm1229_vm0, %v5250_v35, %v1357_v44  ;;  %3750 = vmatprep.subr.bf16.mxu0 %v4216_v53 }
 0x1c9   : > { %v1068_v28 = vpop.f32.mrf.mxu1  ;;  %v915_v56 = vpop.f32.mrf.mxu0  ;;  %2119 = vmatprep.mubr.bf16.mxu0 %v1574_v30  ;;  %v1560_v21 = vpack.c.bf16 %v1456_v27, %v1452_v34  ;;  %v1451_v9 = vsel %vm1195_vm13, %v5236_v11, %v5257_v31  ;;  %v1455_v36 = vsel %vm1199_vm2, %v5253_v40, %v1327_v32  ;;  %v1332_v33 = vmul.f32 0.2, %v5298_v51 }
 0x1ca   : > { %v1573_v29 = vpack.c.bf16 %v1485_v1, %v1481_v52  ;;  %v1559_v22 = vpack.c.bf16 %v1455_v36, %v1451_v9  ;;  %v5341_v8 = vadd.f32 %v911_v20, %v4952_v25  ;;  %vm1237_vm8 = vcmp.gt.f32.partialorder %v5305_v12, 0.0 }
 0x1cb   : > { %v1070_v18 = vpop.f32.mrf.mxu1  ;;  %v1365_v35 = vmul.f32 0.2, %v5305_v12  ;;  %v1366_v44 = vmul.f32 0.2, %v908_v24  ;;  %2272 = vmatprep.mubr.bf16.mxu1 %v1560_v21  ;;  %v914_v11 = vadd.f32 %v913_v60, %v4958_v41  ;;  %vm1207_vm9 = vcmp.gt.f32.partialorder %v5308_v62, 0.0  ;;  %v917_v32 = vpop.f32.mrf.mxu0 }
 0x1cc   : > { %vm1238_vm10 = vcmp.gt.f32.partialorder %v908_v24, 0.0  ;;  %v1336_v40 = vmul.f32 0.2, %v1061_v55  ;;  %2120 = vmatmul.mubr.bf16.gmra.mxu0 %v1573_v29  ;;  %2273 = vmatmul.mubr.bf16.gmra.mxu1 %v1559_v22  ;;  %v1067_v20 = vadd.f32 %v1066_v38, %v5030_v47  ;;  %v1335_v43 = vmul.f32 0.2, %v5308_v62 }
 0x1cd   : > { %v5346_v31 = vpop.f32.mrf.mxu1  ;;  %vm1208_vm11 = vcmp.gt.f32.partialorder %v1061_v55, 0.0  ;;  %v5352_v7 = vadd.f32 %v1064_v61, %v5022_v6  ;;  %v916_v30 = vadd.f32 %v915_v56, %v4952_v25  ;;  %v1369_v27 = vmul.f32 0.2, %v5341_v8  ;;  %v4217_v56 = vld [vmem:[#allocation10 + $0x8] sm:$0xff]  }
 0x1ce   : > { %vm1242_vm12 = vcmp.gt.f32.partialorder %v914_v11, 0.0  ;;  %v1370_v52 = vmul.f32 0.2, %v914_v11  ;;  %v1069_v34 = vadd.f32 %v1068_v28, %v5022_v6  ;;  %v918_v21 = vadd.f32 %v917_v32, %v4958_v41  ;;  %3751 = vmatpush3.bf16.msra.mxu0 %v4217_v56 }
 0x1cf   : > { %v1076_v60 = vpop.f32.mrf.mxu1  ;;  %v1071_v38 = vadd.f32 %v1070_v18, %v5030_v47  ;;  %v1490_v1 = vsel %vm1234_vm5, %v5291_v19, %v1362_v58  ;;  %v1494_v61 = vsel %vm1238_vm10, %v908_v24, %v1366_v44  ;;  %vm1212_vm13 = vcmp.gt.f32.partialorder %v1067_v20, 0.0 }
 0x1d0   : > { %v1578_v36 = vpack.c.bf16 %v1494_v61, %v1490_v1  ;;  %v1464_v29 = vsel %vm1208_vm11, %v1061_v55, %v1336_v40  ;;  %v1489_v28 = vsel %vm1233_vm4, %v5284_v42, %v5302_v54  ;;  %v1340_v22 = vmul.f32 0.2, %v1067_v20 }
 0x1d1   : > { %v1078_v9 = vpop.f32.mrf.mxu1  ;;  %vm1246_vm14 = vcmp.gt.f32.partialorder %v918_v21, 0.0  ;;  %v1374_v18 = vmul.f32 0.2, %v918_v21  ;;  %v1460_v19 = vsel %vm1204_vm7, %v5298_v51, %v1332_v33  ;;  %v1493_v55 = vsel %vm1237_vm8, %v5305_v12, %v1365_v35 }
 0x1d2   : > { %2129 = vmatprep.mubr.bf16.mxu0 %v1578_v36  ;;  %v1564_v24 = vpack.c.bf16 %v1464_v29, %v1460_v19  ;;  %v1459_v42 = vsel %vm1203_vm6, %v5288_v49, %v5311_v3  ;;  %v1463_v54 = vsel %vm1207_vm9, %v5308_v62, %v1335_v43  ;;  %v1373_v53 = vmul.f32 0.2, %v916_v30 }
 0x1d3   : > { %v1080_v58 = vpop.f32.mrf.mxu1  ;;  %v1344_v44 = vmul.f32 0.2, %v1071_v38  ;;  %v1577_v51 = vpack.c.bf16 %v1493_v55, %v1489_v28  ;;  %v1563_v33 = vpack.c.bf16 %v1463_v54, %v1459_v42  ;;  %vm1261_vm15 = vcmp.gt.f32.partialorder %v5039_v50, 0.0 }
 0x1d4   : > { %vm1216_vm0 = vcmp.gt.f32.partialorder %v1071_v38, 0.0  ;;  %2282 = vmatprep.mubr.bf16.mxu1 %v1564_v24  ;;  %v1081_v12 = vadd.f32 %v1080_v58, %v5030_v47  ;;  %v1498_v35 = vsel %vm1242_vm12, %v914_v11, %v1370_v52  ;;  %v1502_v49 = vsel %vm1246_vm14, %v918_v21, %v1374_v18 }
 0x1d5   : > { %v5381_v40 = vpop.f32.mrf.mxu1  ;;  %vm1257_vm1 = vcmp.gt.f32.partialorder %v5026_v39, 0.0  ;;  %vm1258_vm2 = vcmp.gt.f32.partialorder %v5034_v48, 0.0  ;;  %vm1241_vm3 = vcmp.gt.f32.partialorder %v5341_v8, 0.0  ;;  %vm1245_vm4 = vcmp.gt.f32.partialorder %v916_v30, 0.0  ;;  %2130 = vmatmul.mubr.bf16.gmra.mxu0 %v1577_v51  ;;  %2283 = vmatmul.mubr.bf16.gmra.mxu1 %v1563_v33 }
 0x1d6   : > { %v1343_v62 = vmul.f32 0.2, %v1069_v34  ;;  %v1077_v3 = vadd.f32 %v1076_v60, %v5030_v47  ;;  %vm1262_vm5 = vcmp.gt.f32.partialorder %v5047_v16, 0.0  ;;  %vm1211_vm6 = vcmp.gt.f32.partialorder %v5352_v7, 0.0 }
 0x1d7   : > { %v1086_v32 = vpop.f32.mrf.mxu1  ;;  %v1339_v11 = vmul.f32 0.2, %v5352_v7  ;;  %vm1215_vm7 = vcmp.gt.f32.partialorder %v1069_v34, 0.0  ;;  %v1079_v43 = vadd.f32 %v1078_v9, %v5022_v6  ;;  %v1352_v52 = vmul.f32 0.2, %v1081_v12 }
 0x1d8   : > { %v1582_v21 = vpack.c.bf16 %v1502_v49, %v1498_v35  ;;  %v1468_v1 = vsel %vm1212_vm13, %v1067_v20, %v1340_v22  ;;  %v1472_v61 = vsel %vm1216_vm0, %v1071_v38, %v1344_v44  ;;  %vm1224_vm8 = vcmp.gt.f32.partialorder %v1081_v12, 0.0 }
 0x1d9   : > { %v1088_v56 = vpop.f32.mrf.mxu1  ;;  %v1568_v36 = vpack.c.bf16 %v1472_v61, %v1468_v1  ;;  %v1497_v60 = vsel %vm1241_vm3, %v5341_v8, %v1369_v27  ;;  %v1501_v29 = vsel %vm1245_vm4, %v916_v30, %v1373_v53  ;;  %v5403_v28 = vadd.f32 %v4984_v46, %v4958_v41  ;;  %v4218_v46 = vld [vmem:[#allocation10 + $0x40] sm:$0xff]  }
 0x1da   : > { %v1348_v9 = vmul.f32 0.2, %v1077_v3  ;;  %2139 = vmatprep.mubr.bf16.mxu0 %v1582_v21  ;;  %v1581_v18 = vpack.c.bf16 %v1501_v29, %v1497_v60  ;;  %v1471_v19 = vsel %vm1215_vm7, %v1069_v34, %v1343_v62  ;;  %vm1269_vm9 = vcmp.gt.f32.partialorder %v5107_v10, 0.0  ;;  %3752 = vmatprep.subr.bf16.mxu0 %v4218_v46 }
 0x1db   : > { %v1090_v20 = vpop.f32.mrf.mxu1  ;;  %v1075_v38 = vadd.f32 %v5346_v31, %v5022_v6  ;;  %vm1220_vm10 = vcmp.gt.f32.partialorder %v1077_v3, 0.0  ;;  %2292 = vmatprep.mubr.bf16.mxu1 %v1568_v36  ;;  %v1467_v8 = vsel %vm1211_vm6, %v5352_v7, %v1339_v11  ;;  %v1087_v30 = vadd.f32 %v1086_v32, %v5030_v47 }
 0x1dc   : > { %vm1265_vm11 = vcmp.gt.f32.partialorder %v5070_v15, 0.0  ;;  %v1397_v27 = vmul.f32 0.2, %v5107_v10  ;;  %v1567_v34 = vpack.c.bf16 %v1471_v19, %v1467_v8  ;;  %v1091_v22 = vadd.f32 %v1090_v20, %v5030_v47 }
 0x1dd   : > { %v1480_v58 = vsel %vm1224_vm8, %v1081_v12, %v1352_v52  ;;  %v5416_v24 = vpop.f32.mrf.mxu1  ;;  %v5420_v31 = vadd.f32 %v4994_v63, %v4958_v41  ;;  %v5424_v7 = vadd.f32 %v5000_v5, %v4952_v25  ;;  %vm1223_vm12 = vcmp.gt.f32.partialorder %v1079_v43, 0.0  ;;  %2140 = vmatmul.mubr.bf16.gmra.mxu0 %v1581_v18  ;;  %v4219_v52 = vld [vmem:[#allocation10] sm:$0xff]  }
 0x1de   : > { %v1351_v55 = vmul.f32 0.2, %v1079_v43  ;;  %2293 = vmatmul.mubr.bf16.gmra.mxu1 %v1567_v34  ;;  %v1356_v42 = vmul.f32 0.2, %v1087_v30  ;;  %vm1232_vm13 = vcmp.gt.f32.partialorder %v1091_v22, 0.0  ;;  %v1476_v53 = vsel %vm1220_vm10, %v1077_v3, %v1348_v9  ;;  %3753 = vmatpush3.bf16.msra.mxu0 %v4219_v52 }
 0x1df   : > { %v1360_v54 = vmul.f32 0.2, %v1091_v22  ;;  %v1096_v44 = vpop.f32.mrf.mxu1  ;;  %v5429_v51 = vadd.f32 %v5016_v26, %v4952_v25  ;;  %v1347_v63 = vmul.f32 0.2, %v1075_v38  ;;  %v5973_v5 = vpack.c.bf16 %v5057_v4, %v5053_v0 }
 0x1e0   : > { %vm1228_vm14 = vcmp.gt.f32.partialorder %v1087_v30, 0.0  ;;  %v1572_v33 = vpack.c.bf16 %v1480_v58, %v1476_v53  ;;  %vm1219_vm0 = vcmp.gt.f32.partialorder %v1075_v38, 0.0  ;;  %v1085_v12 = vadd.f32 %v5381_v40, %v5022_v6 }
 0x1e1   : > { %2149 = vmatprep.mubr.bf16.mxu0 %v5973_v5  ;;  %v1098_v35 = vpop.f32.mrf.mxu1  ;;  %v1488_v49 = vsel %vm1232_vm13, %v1091_v22, %v1360_v54  ;;  %v5440_v62 = vsel %vm1261_vm15, %v5039_v50, %v5066_v14  ;;  %vm1266_vm3 = vcmp.gt.f32.partialorder %v5403_v28, 0.0  ;;  %v1479_v25 = vsel %vm1223_vm12, %v1079_v43, %v1351_v55 }
 0x1e2   : > { %v1089_v26 = vadd.f32 %v1088_v56, %v5022_v6  ;;  %2302 = vmatprep.mubr.bf16.mxu1 %v1572_v33  ;;  %v1514_v0 = vsel %vm1258_vm2, %v5034_v48, %v5063_v13  ;;  %v5453_v4 = vsel %vm1257_vm1, %v5026_v39, %v5043_v57  ;;  %v1518_v50 = vsel %vm1262_vm5, %v5047_v16, %v5073_v23 }
 0x1e3   : > { %v1097_v14 = vadd.f32 %v1096_v44, %v5030_v47  ;;  %v1100_v40 = vpop.f32.mrf.mxu1  ;;  %v1484_v3 = vsel %vm1228_vm14, %v1087_v30, %v1356_v42  ;;  %v1589_v32 = vpack.c.bf16 %v5440_v62, %v5453_v4  ;;  %v1398_v48 = vmul.f32 0.2, %v5420_v31 }
 0x1e4   : > { %v1475_v13 = vsel %vm1219_vm0, %v1075_v38, %v1347_v63  ;;  %v1101_v39 = vadd.f32 %v1100_v40, %v5030_v47  ;;  %v1576_v57 = vpack.c.bf16 %v1488_v49, %v1484_v3  ;;  %vm1270_vm15 = vcmp.gt.f32.partialorder %v5420_v31, 0.0 }
 0x1e5   : > { %v1405_v11 = vmul.f32 0.2, %v5429_v51  ;;  %v1571_v16 = vpack.c.bf16 %v1479_v25, %v1475_v13  ;;  %v1355_v23 = vmul.f32 0.2, %v1085_v12  ;;  %v5468_v43 = vpop.f32.mrf.mxu1  ;;  %v1359_v21 = vmul.f32 0.2, %v1089_v26 }
 0x1e6   : > { %v1590_v1 = vpack.c.bf16 %v1518_v50, %v1514_v0  ;;  %vm1240_vm1 = vcmp.gt.f32.partialorder %v1101_v39, 0.0  ;;  %v1368_v61 = vmul.f32 0.2, %v1101_v39  ;;  %vm1227_vm2 = vcmp.gt.f32.partialorder %v1085_v12, 0.0 }
 0x1e7   : > { %vm1231_vm4 = vcmp.gt.f32.partialorder %v1089_v26, 0.0  ;;  %v5974_v56 = vpack.c.bf16 %v4992_v59, %v4997_v2  ;;  %2303 = vmatmul.mubr.bf16.gmra.mxu1 %v1571_v16  ;;  %v1364_v36 = vmul.f32 0.2, %v1097_v14  ;;  %v1106_v60 = vpop.f32.mrf.mxu1  ;;  %v5476_v29 = vsel %vm1269_vm9, %v5107_v10, %v1397_v27 }
 0x1e8   : > { %v1401_v9 = vmul.f32 0.2, %v5424_v7  ;;  %vm1277_vm5 = vcmp.gt.f32.partialorder %v5429_v51, 0.0  ;;  %vm1236_vm6 = vcmp.gt.f32.partialorder %v1097_v14, 0.0  ;;  %2312 = vmatprep.mubr.bf16.mxu1 %v1576_v57  ;;  %v5484_v59 = vsel %vm1265_vm11, %v5070_v15, %v5083_v45 }
 0x1e9   : > { %2150 = vmatmul.mubr.bf16.gmra.mxu0 %v5974_v56  ;;  %v1394_v2 = vmul.f32 0.2, %v5403_v28  ;;  %vm1273_vm7 = vcmp.gt.f32.partialorder %v5424_v7, 0.0  ;;  %v1108_v18 = vpop.f32.mrf.mxu1  ;;  %v1496_v10 = vsel %vm1240_vm1, %v1101_v39, %v1368_v61  ;;  %v1593_v19 = vpack.c.bf16 %v5476_v29, %v5484_v59 }
 0x1ea   : > { %2159 = vmatprep.mubr.bf16.mxu0 %v1590_v1  ;;  %v958_v20 = vadd.f32 %v5019_v37, %v4958_v41  ;;  %v1483_v38 = vsel %vm1227_vm2, %v1085_v12, %v1355_v23  ;;  %v1487_v8 = vsel %vm1231_vm4, %v1089_v26, %v1359_v21  ;;  %v1099_v15 = vadd.f32 %v1098_v35, %v5022_v6 }
 0x1eb   : > { %v1526_v45 = vsel %vm1270_vm15, %v5420_v31, %v1398_v48  ;;  %v1107_v30 = vadd.f32 %v1106_v60, %v5030_v47  ;;  %v1110_v46 = vpop.f32.mrf.mxu1  ;;  %v1492_v27 = vsel %vm1236_vm6, %v1097_v14, %v1364_v36  ;;  %v5504_v34 = vsel %vm1277_vm5, %v5429_v51, %v1405_v11 }
 0x1ec   : > { %v1095_v37 = vadd.f32 %v5416_v24, %v5022_v6  ;;  %v1111_v22 = vadd.f32 %v1110_v46, %v5030_v47  ;;  %v1580_v58 = vpack.c.bf16 %v1496_v10, %v1492_v27  ;;  %v5512_v31 = vsel %vm1273_vm7, %v5424_v7, %v1401_v9 }
 0x1ed   : > { %v954_v55 = vadd.f32 %v5009_v17, %v4958_v41  ;;  %v1575_v42 = vpack.c.bf16 %v1487_v8, %v1483_v38  ;;  %v1522_v54 = vsel %vm1266_vm3, %v5403_v28, %v1394_v2  ;;  %v1114_v53 = vpop.f32.mrf.mxu1  ;;  %v1597_v24 = vpack.c.bf16 %v5504_v34, %v5512_v31 }
 0x1ee   : > { %v1367_v44 = vmul.f32 0.2, %v1099_v15  ;;  %v1594_v51 = vpack.c.bf16 %v1526_v45, %v1522_v54  ;;  %vm1248_vm8 = vcmp.gt.f32.partialorder %v1111_v22, 0.0  ;;  %v1376_v63 = vmul.f32 0.2, %v1111_v22 }
 0x1ef   : > { %v1406_v5 = vmul.f32 0.2, %v958_v20  ;;  %vm1239_vm9 = vcmp.gt.f32.partialorder %v1099_v15, 0.0  ;;  %2313 = vmatmul.mubr.bf16.gmra.mxu1 %v1575_v42  ;;  %v1372_v7 = vmul.f32 0.2, %v1107_v30  ;;  %v1116_v33 = vpop.f32.mrf.mxu1  ;;  %vm1278_vm10 = vcmp.gt.f32.partialorder %v958_v20, 0.0 }
 0x1f0   : > { %v1363_v41 = vmul.f32 0.2, %v1095_v37  ;;  %vm1244_vm11 = vcmp.gt.f32.partialorder %v1107_v30, 0.0  ;;  %2322 = vmatprep.mubr.bf16.mxu1 %v1580_v58  ;;  %v1402_v17 = vmul.f32 0.2, %v954_v55  ;;  %vm1235_vm12 = vcmp.gt.f32.partialorder %v1095_v37, 0.0 }
 0x1f1   : > { %2160 = vmatmul.mubr.bf16.gmra.mxu0 %v1589_v32  ;;  %v1118_v28 = vpop.f32.mrf.mxu1  ;;  %v1504_v12 = vsel %vm1248_vm8, %v1111_v22, %v1376_v63  ;;  %vm1274_vm13 = vcmp.gt.f32.partialorder %v954_v55, 0.0  ;;  %v1495_v35 = vsel %vm1239_vm9, %v1099_v15, %v1367_v44  ;;  %v1109_v49 = vadd.f32 %v1108_v18, %v5022_v6 }
 0x1f2   : > { %2169 = vmatprep.mubr.bf16.mxu0 %v1594_v51  ;;  %v1534_v62 = vsel %vm1278_vm10, %v958_v20, %v1406_v5  ;;  %v1117_v25 = vadd.f32 %v1116_v33, %v5030_v47  ;;  %v1500_v0 = vsel %vm1244_vm11, %v1107_v30, %v1372_v7  ;;  %v1491_v4 = vsel %vm1235_vm12, %v1095_v37, %v1363_v41 }
 0x1f3   : > { %v1120_v26 = vpop.f32.mrf.mxu1  ;;  %v1105_v50 = vadd.f32 %v5468_v43, %v5022_v6  ;;  %v1584_v40 = vpack.c.bf16 %v1504_v12, %v1500_v0  ;;  %v1579_v3 = vpack.c.bf16 %v1495_v35, %v1491_v4  ;;  %v1530_v32 = vsel %vm1274_vm13, %v954_v55, %v1402_v17 }
 0x1f4   : > { %v1121_v14 = vadd.f32 %v1120_v26, %v5030_v47  ;;  %v1375_v13 = vmul.f32 0.2, %v1109_v49  ;;  %v1598_v39 = vpack.c.bf16 %v1534_v62, %v1530_v32  ;;  %vm1247_vm0 = vcmp.gt.f32.partialorder %v1109_v49, 0.0 }
 0x1f5   : > { %v1124_v48 = vpop.f32.mrf.mxu1  ;;  %v1380_v11 = vmul.f32 0.2, %v1117_v25  ;;  %v1371_v23 = vmul.f32 0.2, %v1105_v50  ;;  %vm1252_vm3 = vcmp.gt.f32.partialorder %v1117_v25, 0.0  ;;  %vm1243_vm15 = vcmp.gt.f32.partialorder %v1105_v50, 0.0 }
 0x1f6   : > { %vm1256_vm14 = vcmp.gt.f32.partialorder %v1121_v14, 0.0  ;;  %v1384_v57 = vmul.f32 0.2, %v1121_v14  ;;  %v1503_v21 = vsel %vm1247_vm0, %v1109_v49, %v1375_v13  ;;  %v1119_v1 = vadd.f32 %v1118_v28, %v5022_v6 }
 0x1f7   : > { %2323 = vmatmul.mubr.bf16.gmra.mxu1 %v1579_v3  ;;  %v1126_v16 = vpop.f32.mrf.mxu1  ;;  %v1508_v36 = vsel %vm1252_vm3, %v1117_v25, %v1380_v11  ;;  %v1499_v60 = vsel %vm1243_vm15, %v1105_v50, %v1371_v23  ;;  %v1115_v29 = vadd.f32 %v1114_v53, %v5022_v6  ;;  %v1125_v34 = vadd.f32 %v1124_v48, %v5022_v6 }
 0x1f8   : > { %2332 = vmatprep.mubr.bf16.mxu1 %v1584_v40  ;;  %v1512_v52 = vsel %vm1256_vm14, %v1121_v14, %v1384_v57  ;;  %v1127_v61 = vadd.f32 %v1126_v16, %v5030_v47  ;;  %v1583_v2 = vpack.c.bf16 %v1503_v21, %v1499_v60  ;;  %v1383_v10 = vmul.f32 0.2, %v1119_v1 }
 0x1f9   : > { %2170 = vmatmul.mubr.bf16.gmra.mxu0 %v1593_v19  ;;  %v1128_v43 = vpop.f32.mrf.mxu1  ;;  %v1588_v59 = vpack.c.bf16 %v1512_v52, %v1508_v36  ;;  %vm1255_vm2 = vcmp.gt.f32.partialorder %v1119_v1, 0.0  ;;  %v1379_v8 = vmul.f32 0.2, %v1115_v29  ;;  %vm1251_vm5 = vcmp.gt.f32.partialorder %v1115_v29, 0.0 }
 0x1fa   : > { %2179 = vmatprep.mubr.bf16.mxu0 %v1598_v39  ;;  %v1388_v20 = vmul.f32 0.2, %v1127_v61  ;;  %vm1260_vm4 = vcmp.gt.f32.partialorder %v1127_v61, 0.0  ;;  %v1511_v30 = vsel %vm1255_vm2, %v1119_v1, %v1383_v10  ;;  %v1129_v46 = vadd.f32 %v1128_v43, %v5022_v6 }
 0x1fb   : > { %v1130_v56 = vpop.f32.mrf.mxu1  ;;  %v1507_v58 = vsel %vm1251_vm5, %v1115_v29, %v1379_v8  ;;  %v1387_v63 = vmul.f32 0.2, %v1125_v34  ;;  %vm1259_vm9 = vcmp.gt.f32.partialorder %v1125_v34, 0.0 }
 0x1fc   : > { %v1131_v9 = vadd.f32 %v1130_v56, %v5030_v47  ;;  %v1516_v22 = vsel %vm1260_vm4, %v1127_v61, %v1388_v20  ;;  %v1587_v42 = vpack.c.bf16 %v1511_v30, %v1507_v58  ;;  %v1391_v53 = vmul.f32 0.2, %v1129_v46 }
 0x1fd   : > { %v1134_v18 = vpop.f32.mrf.mxu1  ;;  %vm1263_vm7 = vcmp.gt.f32.partialorder %v1129_v46, 0.0  ;;  %v1515_v35 = vsel %vm1259_vm9, %v1125_v34, %v1387_v63 }
 0x1fe   : > { %vm1264_vm1 = vcmp.gt.f32.partialorder %v1131_v9, 0.0  ;;  %v1392_v19 = vmul.f32 0.2, %v1131_v9  ;;  %v1519_v33 = vsel %vm1263_vm7, %v1129_v46, %v1391_v53  ;;  %v1135_v49 = vadd.f32 %v1134_v18, %v5022_v6 }
 0x1ff   : > { %2333 = vmatmul.mubr.bf16.gmra.mxu1 %v1583_v2  ;;  %v1136_v38 = vpop.f32.mrf.mxu1  ;;  %v1591_v26 = vpack.c.bf16 %v1519_v33, %v1515_v35 }
 0x200   : > { %2342 = vmatprep.mubr.bf16.mxu1 %v1588_v59  ;;  %v1520_v45 = vsel %vm1264_vm1, %v1131_v9, %v1392_v19  ;;  %v1137_v27 = vadd.f32 %v1136_v38, %v5030_v47  ;;  %v1395_v14 = vmul.f32 0.2, %v1135_v49  ;;  %vm1267_vm13 = vcmp.gt.f32.partialorder %v1135_v49, 0.0  ;;  %v1665_v38 = vld [vmem:[%s5933_s4] sm:$0x3] }
 0x201   : > { %2180 = vmatmul.mubr.bf16.gmra.mxu0 %v1597_v24  ;;  %v1138_v15 = vpop.f32.mrf.mxu1  ;;  %v1592_v55 = vpack.c.bf16 %v1520_v45, %v1516_v22 }
 0x202   : > { %v1396_v44 = vmul.f32 0.2, %v1137_v27  ;;  %vm1268_vm8 = vcmp.gt.f32.partialorder %v1137_v27, 0.0  ;;  %v1139_v41 = vadd.f32 %v1138_v15, %v5022_v6  ;;  %v1523_v13 = vsel %vm1267_vm13, %v1135_v49, %v1395_v14  ;;  %v5975_v15 = vld [vmem:[#allocation19_spill] sm:$0xff] }
 0x203   : > { %v1140_v37 = vpop.f32.mrf.mxu1  ;;  %v5976_v45 = vsub.s32 1, %v5975_v15  ;;  %v5977_v46 = vsub.s32 0, %v5975_v15 }
 0x204   : > { %v1141_v31 = vadd.f32 %v1140_v37, %v5030_v47  ;;  %v1524_v12 = vsel %vm1268_vm8, %v1137_v27, %v1396_v44  ;;  %v1399_v0 = vmul.f32 0.2, %v1139_v41  ;;  %vm1271_vm11 = vcmp.gt.f32.partialorder %v1139_v41, 0.0 }
 0x205   : > { %v1144_v54 = vpop.f32.mrf.mxu1  ;;  %v5565_v30 = vrot.slane %v1665_v38, %v5976_v45  ;;  %v5569_v27 = vrot.slane %v1665_v38, %v5977_v46  ;;  %v4222_v38 = vld [vmem:[#allocation11 + $0x28] sm:$0xff]  }
 0x206   : > { %vm1272_vm6 = vcmp.gt.f32.partialorder %v1141_v31, 0.0  ;;  %v1400_v24 = vmul.f32 0.2, %v1141_v31  ;;  %v1527_v3 = vsel %vm1271_vm11, %v1139_v41, %v1399_v0 }
 0x207   : > { %2343 = vmatmul.mubr.bf16.gmra.mxu1 %v1587_v42  ;;  %v1146_v51 = vpop.f32.mrf.mxu1  ;;  %v1595_v57 = vpack.c.bf16 %v1527_v3, %v1523_v13 }
 0x208   : > { %2352 = vmatprep.mubr.bf16.mxu1 %v1592_v55  ;;  %v1528_v7 = vsel %vm1272_vm6, %v1141_v31, %v1400_v24  ;;  %v1147_v17 = vadd.f32 %v1146_v51, %v5030_v47 }
 0x209   : > { %v1148_v5 = vpop.f32.mrf.mxu1  ;;  %v1596_v25 = vpack.c.bf16 %v1528_v7, %v1524_v12 }
 0x20a   : > { %v1404_v50 = vmul.f32 0.2, %v1147_v17  ;;  %vm1276_vm12 = vcmp.gt.f32.partialorder %v1147_v17, 0.0  ;;  %v1149_v32 = vadd.f32 %v1148_v5, %v5022_v6 }
 0x20b   : > { %v1150_v28 = vpop.f32.mrf.mxu1 }
 0x20c   : > { %v1151_v62 = vadd.f32 %v1150_v28, %v5030_v47  ;;  %v1532_v48 = vsel %vm1276_vm12, %v1147_v17, %v1404_v50  ;;  %v1145_v47 = vadd.f32 %v1144_v54, %v5022_v6  ;;  %v1407_v11 = vmul.f32 0.2, %v1149_v32 }
 0x20d   : > { %vm1279_vm14 = vcmp.gt.f32.partialorder %v1149_v32, 0.0 }
 0x20e   : > { %vm1280_vm10 = vcmp.gt.f32.partialorder %v1151_v62, 0.0  ;;  %v1408_v4 = vmul.f32 0.2, %v1151_v62  ;;  %v1403_v16 = vmul.f32 0.2, %v1145_v47  ;;  %vm1275_vm0 = vcmp.gt.f32.partialorder %v1145_v47, 0.0 }
 0x20f   : > { %2353 = vmatmul.mubr.bf16.gmra.mxu1 %v1591_v26  ;;  %v1535_v23 = vsel %vm1279_vm14, %v1149_v32, %v1407_v11 }
 0x210   : > { %2362 = vmatprep.mubr.bf16.mxu1 %v1596_v25  ;;  %v1536_v40 = vsel %vm1280_vm10, %v1151_v62, %v1408_v4  ;;  %v1531_v43 = vsel %vm1275_vm0, %v1145_v47, %v1403_v16  ;;  %v4220_v16 = vld [vmem:[#allocation11 + $0x38] sm:$0xff]  }
 0x211   : > { %v1600_v39 = vpack.c.bf16 %v1536_v40, %v1532_v48  ;;  %v1599_v52 = vpack.c.bf16 %v1535_v23, %v1531_v43  ;;  %v4221_v23 = vld [vmem:[#allocation11 + $0x30] sm:$0xff]   ;;  %3874 = vmatprep.subr.bf16.mxu1 %v4220_v16 }
 0x212   : > { %3875 = vmatpush3.bf16.msra.mxu1 %v4220_v16 }
 0x213   : > { %3876 = vmatprep.subr.bf16.mxu1 %v4221_v23 }
 0x216   : > { %3877 = vmatpush3.bf16.msra.mxu1 %v4221_v23 }
 0x217   : > { %2363 = vmatmul.mubr.bf16.gmra.mxu1 %v1595_v57  ;;  %3878 = vmatprep.subr.bf16.mxu1 %v4222_v38 }
 0x218   : > { %2372 = vmatprep.mubr.bf16.mxu1 %v1600_v39 }
 0x21a   : > { %3879 = vmatpush3.bf16.msra.mxu1 %v4222_v38 }
 0x21f   : > { %2373 = vmatmul.mubr.bf16.gmra.mxu1 %v1599_v52 }
 0x23c   : > { %v2031_v21 = vpop.f32.mrf.mxu0 }
 0x23d   : > { %v2032_v34 = vadd.f32 %v2031_v21, %v5569_v27 }
 0x23e   : > { %v2033_v1 = vpop.f32.mrf.mxu0 }
 0x23f   : > { %v2034_v58 = vadd.f32 %v2033_v1, %v5565_v30 }
 0x240   : > { %v2035_v61 = vpop.f32.mrf.mxu0 }
 0x241   : > { %v2036_v54 = vadd.f32 %v2035_v61, %v5569_v27 }
 0x242   : > { %v2037_v56 = vpop.f32.mrf.mxu0 }
 0x243   : > { %v2038_v51 = vadd.f32 %v2037_v56, %v5565_v30 }
 0x244   : > { %v2041_v36 = vpop.f32.mrf.mxu0 }
 0x245   : > { %v2042_v25 = vadd.f32 %v2041_v36, %v5569_v27 }
 0x246   : > { %v2043_v60 = vpop.f32.mrf.mxu0 }
 0x247   : > { %v2044_v4 = vadd.f32 %v2043_v60, %v5565_v30 }
 0x248   : > { %v2045_v29 = vpop.f32.mrf.mxu0 }
 0x249   : > { %v2046_v13 = vadd.f32 %v2045_v29, %v5569_v27 }
 0x24a   : > { %v2047_v6 = vpop.f32.mrf.mxu0 }
 0x24b   : > { %v2048_v11 = vadd.f32 %v2047_v6, %v5565_v30 }
 0x24c   : > { %v5544_v9 = vpop.f32.mrf.mxu0 }
 0x24e   : > { %v5546_v59 = vpop.f32.mrf.mxu0 }
 0x24f   : > { %v2054_v15 = vadd.f32 %v5546_v59, %v5565_v30 }
 0x250   : > { %v5548_v2 = vpop.f32.mrf.mxu0 }
 0x252   : > { %v5550_v18 = vpop.f32.mrf.mxu0 }
 0x253   : > { %v2058_v59 = vadd.f32 %v5550_v18, %v5565_v30 }
 0x254   : > { %v5552_v10 = vpop.f32.mrf.mxu0 }
 0x256   : > { %v5554_v19 = vpop.f32.mrf.mxu0 }
 0x258   : > { %v5556_v20 = vpop.f32.mrf.mxu0 }
 0x25a   : > { %v5561_v8 = vpop.f32.mrf.mxu0 }
 0x25c   : > { %v2224_v22 = vpop.f32.mrf.mxu1 }
 0x25d   : > { %v5571_v37 = vpop.f32.mrf.mxu0  ;;  %v2225_v53 = vadd.f32 %v2224_v22, %v2032_v34  ;;  %v2052_v34 = vadd.f32 %v5544_v9, %v5569_v27 }
 0x25e   : > { %v2226_v55 = vpop.f32.mrf.mxu1 }
 0x25f   : > { %v5575_v31 = vpop.f32.mrf.mxu0  ;;  %v2227_v42 = vadd.f32 %v2226_v55, %v2034_v58  ;;  %v2447_v17 = vmul.f32 0.2, %v2225_v53  ;;  %vm2383_vm1 = vcmp.gt.f32.partialorder %v2225_v53, 0.0 }
 0x260   : > { %v2228_v44 = vpop.f32.mrf.mxu1 }
 0x261   : > { %v5578_v24 = vpop.f32.mrf.mxu0  ;;  %v2229_v63 = vadd.f32 %v2228_v44, %v2036_v54  ;;  %v2448_v33 = vmul.f32 0.2, %v2227_v42  ;;  %vm2384_vm3 = vcmp.gt.f32.partialorder %v2227_v42, 0.0  ;;  %v2511_v50 = vsel %vm2383_vm1, %v2225_v53, %v2447_v17 }
 0x262   : > { %v2230_v7 = vpop.f32.mrf.mxu1 }
 0x263   : > { %v5581_v5 = vpop.f32.mrf.mxu0  ;;  %v2231_v41 = vadd.f32 %v2230_v7, %v2038_v51  ;;  %vm2385_vm15 = vcmp.gt.f32.partialorder %v2229_v63, 0.0  ;;  %v2449_v28 = vmul.f32 0.2, %v2229_v63  ;;  %v2512_v26 = vsel %vm2384_vm3, %v2227_v42, %v2448_v33 }
 0x264   : > { %v2056_v42 = vadd.f32 %v5548_v2, %v5569_v27 }
 0x265   : > { %vm2386_vm2 = vcmp.gt.f32.partialorder %v2231_v41, 0.0  ;;  %v2450_v12 = vmul.f32 0.2, %v2231_v41  ;;  %v2513_v35 = vsel %vm2385_vm15, %v2229_v63, %v2449_v28 }
 0x266   : > { %v5583_v49 = vpop.f32.mrf.mxu0  ;;  %v2575_v32 = vpack.c.bf16 %v2513_v35, %v2511_v50 }
 0x267   : > { %v2234_v62 = vpop.f32.mrf.mxu1  ;;  %v2514_v0 = vsel %vm2386_vm2, %v2231_v41, %v2450_v12 }
 0x268   : > { %v5587_v14 = vpop.f32.mrf.mxu0  ;;  %v2576_v3 = vpack.c.bf16 %v2514_v0, %v2512_v26  ;;  %v2235_v48 = vadd.f32 %v2234_v62, %v2042_v25  ;;  %v2064_v26 = vadd.f32 %v5554_v19, %v5565_v30  ;;  %v2068_v19 = vadd.f32 %v5561_v8, %v5565_v30 }
 0x269   : > { %v2236_v40 = vpop.f32.mrf.mxu1  ;;  %v2074_v8 = vadd.f32 %v5575_v31, %v5565_v30  ;;  %v2078_v31 = vadd.f32 %v5581_v5, %v5565_v30  ;;  %v2084_v5 = vadd.f32 %v5587_v14, %v5565_v30 }
 0x26a   : > { %v2237_v47 = vadd.f32 %v2236_v40, %v2044_v4  ;;  %v5590_v39 = vpop.f32.mrf.mxu0  ;;  %2774 = vmatprep.mubr.bf16.mxu0 %v2576_v3  ;;  %v2451_v1 = vmul.f32 0.2, %v2235_v48  ;;  %vm2387_vm7 = vcmp.gt.f32.partialorder %v2235_v48, 0.0  ;;  %v2062_v3 = vadd.f32 %v5552_v10, %v5569_v27 }
 0x26b   : > { %v2238_v57 = vpop.f32.mrf.mxu1  ;;  %2775 = vmatmul.mubr.bf16.vlgmr.msra.gmra.mxu0 %v2575_v32 }
 0x26c   : > { %v2239_v43 = vadd.f32 %v2238_v57, %v2046_v13  ;;  %v5593_v52 = vpop.f32.mrf.mxu0  ;;  %v2452_v56 = vmul.f32 0.2, %v2237_v47  ;;  %vm2388_vm5 = vcmp.gt.f32.partialorder %v2237_v47, 0.0  ;;  %v2515_v54 = vsel %vm2387_vm7, %v2235_v48, %v2451_v1 }
 0x26d   : > { %v2240_v21 = vpop.f32.mrf.mxu1  ;;  %v2066_v48 = vadd.f32 %v5556_v20, %v5569_v27  ;;  %v2088_v14 = vadd.f32 %v5593_v52, %v5565_v30 }
 0x26e   : > { %v2241_v61 = vadd.f32 %v2240_v21, %v2048_v11  ;;  %vm2389_vm4 = vcmp.gt.f32.partialorder %v2239_v43, 0.0  ;;  %v2453_v36 = vmul.f32 0.2, %v2239_v43  ;;  %v2516_v55 = vsel %vm2388_vm5, %v2237_v47, %v2452_v56 }
 0x270   : > { %vm2390_vm6 = vcmp.gt.f32.partialorder %v2241_v61, 0.0  ;;  %v2454_v60 = vmul.f32 0.2, %v2241_v61  ;;  %v5595_v29 = vpop.f32.mrf.mxu0  ;;  %v2244_v6 = vpop.f32.mrf.mxu1  ;;  %v2517_v45 = vsel %vm2389_vm4, %v2239_v43, %v2453_v36 }
 0x271   : > { %v2577_v7 = vpack.c.bf16 %v2517_v45, %v2515_v54  ;;  %v2245_v33 = vadd.f32 %v2244_v6, %v2052_v34  ;;  %v2072_v34 = vadd.f32 %v5571_v37, %v5569_v27 }
 0x272   : > { %v5599_v46 = vpop.f32.mrf.mxu0  ;;  %v2246_v22 = vpop.f32.mrf.mxu1  ;;  %v2518_v58 = vsel %vm2390_vm6, %v2241_v61, %v2454_v60 }
 0x273   : > { %v2247_v53 = vadd.f32 %v2246_v22, %v2054_v15  ;;  %v2578_v63 = vpack.c.bf16 %v2518_v58, %v2516_v55  ;;  %v2455_v35 = vmul.f32 0.2, %v2245_v33  ;;  %vm2391_vm11 = vcmp.gt.f32.partialorder %v2245_v33, 0.0 }
 0x274   : > { %v5605_v44 = vpop.f32.mrf.mxu0  ;;  %v2248_v51 = vpop.f32.mrf.mxu1  ;;  %v2094_v52 = vadd.f32 %v5599_v46, %v5565_v30 }
 0x275   : > { %v2249_v41 = vadd.f32 %v2248_v51, %v2056_v42  ;;  %2782 = vmatprep.mubr.bf16.mxu0 %v2578_v63  ;;  %v2456_v2 = vmul.f32 0.2, %v2247_v53  ;;  %vm2392_vm9 = vcmp.gt.f32.partialorder %v2247_v53, 0.0  ;;  %v2519_v13 = vsel %vm2391_vm11, %v2245_v33, %v2455_v35 }
 0x276   : > { %v5609_v17 = vpop.f32.mrf.mxu0  ;;  %v2250_v9 = vpop.f32.mrf.mxu1  ;;  %2783 = vmatmul.mubr.bf16.gmra.mxu0 %v2577_v7  ;;  %v2076_v42 = vadd.f32 %v5578_v24, %v5569_v27 }
 0x277   : > { %v2251_v28 = vadd.f32 %v2250_v9, %v2058_v59  ;;  %vm2393_vm8 = vcmp.gt.f32.partialorder %v2249_v41, 0.0  ;;  %v2457_v12 = vmul.f32 0.2, %v2249_v41  ;;  %v2520_v32 = vsel %vm2392_vm9, %v2247_v53, %v2456_v2 }
 0x278   : > { %v2098_v46 = vadd.f32 %v5609_v17, %v5565_v30 }
 0x279   : > { %vm2394_vm10 = vcmp.gt.f32.partialorder %v2251_v28, 0.0  ;;  %v2458_v62 = vmul.f32 0.2, %v2251_v28  ;;  %v5611_v25 = vpop.f32.mrf.mxu0  ;;  %v2521_v0 = vsel %vm2393_vm8, %v2249_v41, %v2457_v12 }
 0x27a   : > { %v2254_v18 = vpop.f32.mrf.mxu1  ;;  %v2579_v23 = vpack.c.bf16 %v2521_v0, %v2519_v13 }
 0x27b   : > { %v5615_v4 = vpop.f32.mrf.mxu0  ;;  %v2522_v40 = vsel %vm2394_vm10, %v2251_v28, %v2458_v62  ;;  %v2255_v43 = vadd.f32 %v2254_v18, %v2062_v3  ;;  %v2082_v3 = vadd.f32 %v5583_v49, %v5569_v27 }
 0x27c   : > { %v2256_v50 = vpop.f32.mrf.mxu1  ;;  %v2580_v16 = vpack.c.bf16 %v2522_v40, %v2520_v32  ;;  %v2104_v17 = vadd.f32 %v5615_v4, %v5565_v30 }
 0x27d   : > { %v2257_v47 = vadd.f32 %v2256_v50, %v2064_v26  ;;  %v5621_v57 = vpop.f32.mrf.mxu0  ;;  %v2459_v36 = vmul.f32 0.2, %v2255_v43  ;;  %vm2395_vm0 = vcmp.gt.f32.partialorder %v2255_v43, 0.0 }
 0x27e   : > { %v2258_v11 = vpop.f32.mrf.mxu1  ;;  %2790 = vmatprep.mubr.bf16.mxu0 %v2580_v16 }
 0x27f   : > { %v2259_v21 = vadd.f32 %v2258_v11, %v2066_v48  ;;  %v5625_v1 = vpop.f32.mrf.mxu0  ;;  %2791 = vmatmul.mubr.bf16.gmra.mxu0 %v2579_v23  ;;  %v2460_v56 = vmul.f32 0.2, %v2257_v47  ;;  %vm2396_vm13 = vcmp.gt.f32.partialorder %v2257_v47, 0.0  ;;  %v2523_v54 = vsel %vm2395_vm0, %v2255_v43, %v2459_v36 }
 0x280   : > { %v2260_v61 = vpop.f32.mrf.mxu1  ;;  %v2086_v48 = vadd.f32 %v5590_v39, %v5569_v27 }
 0x281   : > { %v2261_v10 = vadd.f32 %v2260_v61, %v2068_v19  ;;  %vm2397_vm12 = vcmp.gt.f32.partialorder %v2259_v21, 0.0  ;;  %v2461_v20 = vmul.f32 0.2, %v2259_v21  ;;  %v2524_v55 = vsel %vm2396_vm13, %v2257_v47, %v2460_v56 }
 0x282   : > { %v5627_v6 = vpop.f32.mrf.mxu0 }
 0x283   : > { %vm2398_vm14 = vcmp.gt.f32.partialorder %v2261_v10, 0.0  ;;  %v2462_v60 = vmul.f32 0.2, %v2261_v10  ;;  %v2264_v38 = vpop.f32.mrf.mxu1  ;;  %v2525_v15 = vsel %vm2397_vm12, %v2259_v21, %v2461_v20 }
 0x284   : > { %v5631_v45 = vpop.f32.mrf.mxu0  ;;  %v2581_v7 = vpack.c.bf16 %v2525_v15, %v2523_v54  ;;  %v2265_v33 = vadd.f32 %v2264_v38, %v2072_v34  ;;  %v2092_v34 = vadd.f32 %v5595_v29, %v5569_v27 }
 0x285   : > { %v2266_v22 = vpop.f32.mrf.mxu1  ;;  %v2526_v58 = vsel %vm2398_vm14, %v2261_v10, %v2462_v60 }
 0x286   : > { %v2267_v53 = vadd.f32 %v2266_v22, %v2074_v8  ;;  %v5637_v51 = vpop.f32.mrf.mxu0  ;;  %v2582_v59 = vpack.c.bf16 %v2526_v58, %v2524_v55  ;;  %v2463_v12 = vmul.f32 0.2, %v2265_v33  ;;  %vm2399_vm2 = vcmp.gt.f32.partialorder %v2265_v33, 0.0 }
 0x287   : > { %v2268_v63 = vpop.f32.mrf.mxu1 }
 0x288   : > { %v2269_v41 = vadd.f32 %v2268_v63, %v2076_v42  ;;  %v5641_v9 = vpop.f32.mrf.mxu0  ;;  %2798 = vmatprep.mubr.bf16.mxu0 %v2582_v59  ;;  %v2464_v2 = vmul.f32 0.2, %v2267_v53  ;;  %vm2400_vm15 = vcmp.gt.f32.partialorder %v2267_v53, 0.0  ;;  %v2527_v13 = vsel %vm2399_vm2, %v2265_v33, %v2463_v12 }
 0x289   : > { %v2270_v28 = vpop.f32.mrf.mxu1  ;;  %2799 = vmatmul.mubr.bf16.gmra.mxu0 %v2581_v7  ;;  %v2096_v42 = vadd.f32 %v5605_v44, %v5569_v27 }
 0x28a   : > { %v2271_v37 = vadd.f32 %v2270_v28, %v2078_v31  ;;  %vm2401_vm3 = vcmp.gt.f32.partialorder %v2269_v41, 0.0  ;;  %v2465_v24 = vmul.f32 0.2, %v2269_v41  ;;  %v2528_v32 = vsel %vm2400_vm15, %v2267_v53, %v2464_v2 }
 0x28c   : > { %vm2402_vm1 = vcmp.gt.f32.partialorder %v2271_v37, 0.0  ;;  %v2466_v35 = vmul.f32 0.2, %v2271_v37  ;;  %v5643_v62 = vpop.f32.mrf.mxu0  ;;  %v2274_v18 = vpop.f32.mrf.mxu1  ;;  %v2529_v26 = vsel %vm2401_vm3, %v2269_v41, %v2465_v24 }
 0x28d   : > { %v2583_v23 = vpack.c.bf16 %v2529_v26, %v2527_v13  ;;  %v2275_v43 = vadd.f32 %v2274_v18, %v2082_v3 }
 0x28e   : > { %v5647_v0 = vpop.f32.mrf.mxu0  ;;  %v2276_v50 = vpop.f32.mrf.mxu1  ;;  %v2530_v40 = vsel %vm2402_vm1, %v2271_v37, %v2466_v35 }
 0x28f   : > { %v2277_v47 = vadd.f32 %v2276_v50, %v2084_v5  ;;  %v2584_v19 = vpack.c.bf16 %v2530_v40, %v2528_v32  ;;  %v2467_v20 = vmul.f32 0.2, %v2275_v43  ;;  %vm2403_vm7 = vcmp.gt.f32.partialorder %v2275_v43, 0.0 }
 0x290   : > { %v5653_v11 = vpop.f32.mrf.mxu0  ;;  %v2278_v16 = vpop.f32.mrf.mxu1  ;;  %v2102_v50 = vadd.f32 %v5611_v25, %v5569_v27  ;;  %v2106_v40 = vadd.f32 %v5621_v57, %v5569_v27  ;;  %v2108_v32 = vadd.f32 %v5625_v1, %v5565_v30 }
 0x291   : > { %v2279_v21 = vadd.f32 %v2278_v16, %v2086_v48  ;;  %2806 = vmatprep.mubr.bf16.mxu0 %v2584_v19  ;;  %v2468_v56 = vmul.f32 0.2, %v2277_v47  ;;  %vm2404_vm5 = vcmp.gt.f32.partialorder %v2277_v47, 0.0  ;;  %v2531_v54 = vsel %vm2403_vm7, %v2275_v43, %v2467_v20 }
 0x292   : > { %v5657_v61 = vpop.f32.mrf.mxu0  ;;  %v2280_v10 = vpop.f32.mrf.mxu1  ;;  %2807 = vmatmul.mubr.bf16.gmra.mxu0 %v2583_v23  ;;  %v2114_v20 = vadd.f32 %v5631_v45, %v5565_v30 }
 0x293   : > { %v2281_v49 = vadd.f32 %v2280_v10, %v2088_v14  ;;  %vm2405_vm4 = vcmp.gt.f32.partialorder %v2279_v21, 0.0  ;;  %v2469_v39 = vmul.f32 0.2, %v2279_v21  ;;  %v2532_v55 = vsel %vm2404_vm5, %v2277_v47, %v2468_v56 }
 0x295   : > { %vm2406_vm6 = vcmp.gt.f32.partialorder %v2281_v49, 0.0  ;;  %v2470_v36 = vmul.f32 0.2, %v2281_v49  ;;  %v5659_v60 = vpop.f32.mrf.mxu0  ;;  %v2284_v38 = vpop.f32.mrf.mxu1  ;;  %v2533_v8 = vsel %vm2405_vm4, %v2279_v21, %v2469_v39 }
 0x296   : > { %v2585_v7 = vpack.c.bf16 %v2533_v8, %v2531_v54  ;;  %v2285_v33 = vadd.f32 %v2284_v38, %v2092_v34  ;;  %v2116_v8 = vadd.f32 %v5637_v51, %v5569_v27 }
 0x297   : > { %v5663_v15 = vpop.f32.mrf.mxu0  ;;  %v2286_v22 = vpop.f32.mrf.mxu1  ;;  %v2534_v58 = vsel %vm2406_vm6, %v2281_v49, %v2470_v36 }
 0x298   : > { %v2287_v53 = vadd.f32 %v2286_v22, %v2094_v52  ;;  %v2586_v31 = vpack.c.bf16 %v2534_v58, %v2532_v55  ;;  %v2471_v35 = vmul.f32 0.2, %v2285_v33  ;;  %vm2407_vm11 = vcmp.gt.f32.partialorder %v2285_v33, 0.0 }
 0x299   : > { %v5669_v63 = vpop.f32.mrf.mxu0  ;;  %v2288_v59 = vpop.f32.mrf.mxu1  ;;  %v2112_v52 = vadd.f32 %v5627_v6, %v5569_v27 }
 0x29a   : > { %v2289_v41 = vadd.f32 %v2288_v59, %v2096_v42  ;;  %2814 = vmatprep.mubr.bf16.mxu0 %v2586_v31  ;;  %v2472_v2 = vmul.f32 0.2, %v2287_v53  ;;  %vm2408_vm9 = vcmp.gt.f32.partialorder %v2287_v53, 0.0  ;;  %v2535_v19 = vsel %vm2407_vm11, %v2285_v33, %v2471_v35 }
 0x29b   : > { %v5673_v28 = vpop.f32.mrf.mxu0  ;;  %v2290_v37 = vpop.f32.mrf.mxu1  ;;  %2815 = vmatmul.mubr.bf16.gmra.mxu0 %v2585_v7  ;;  %v2118_v59 = vadd.f32 %v5641_v9, %v5565_v30 }
 0x29c   : > { %v2291_v29 = vadd.f32 %v2290_v37, %v2098_v46  ;;  %vm2409_vm8 = vcmp.gt.f32.partialorder %v2289_v41, 0.0  ;;  %v2473_v44 = vmul.f32 0.2, %v2289_v41  ;;  %v2536_v16 = vsel %vm2408_vm9, %v2287_v53, %v2472_v2 }
 0x29d   : > { %v5675_v24 = vpop.f32.mrf.mxu0 }
 0x29e   : > { %v2294_v12 = vpop.f32.mrf.mxu1  ;;  %vm2410_vm10 = vcmp.gt.f32.partialorder %v2291_v29, 0.0  ;;  %v2474_v18 = vmul.f32 0.2, %v2291_v29  ;;  %v2537_v3 = vsel %vm2409_vm8, %v2289_v41, %v2473_v44  ;;  %v4223_v44 = vld [vmem:[#allocation11 + $0x20] sm:$0xff]  }
 0x29f   : > { %v5679_v5 = vpop.f32.mrf.mxu0  ;;  %v2295_v14 = vadd.f32 %v2294_v12, %v2102_v50  ;;  %v2587_v21 = vpack.c.bf16 %v2537_v3, %v2535_v19  ;;  %v2124_v12 = vadd.f32 %v5647_v0, %v5565_v30  ;;  %3880 = vmatprep.subr.bf16.mxu1 %v4223_v44 }
 0x2a0   : > { %v2296_v26 = vpop.f32.mrf.mxu1  ;;  %v2538_v4 = vsel %vm2410_vm10, %v2291_v29, %v2474_v18  ;;  %v2122_v18 = vadd.f32 %v5643_v62, %v5569_v27  ;;  %3881 = vmatpush3.bf16.msra.mxu1 %v4223_v44 }
 0x2a1   : > { %v2297_v48 = vadd.f32 %v2296_v26, %v2104_v17  ;;  %v5687_v13 = vpop.f32.mrf.mxu0  ;;  %v2588_v43 = vpack.c.bf16 %v2538_v4, %v2536_v16  ;;  %v2475_v36 = vmul.f32 0.2, %v2295_v14  ;;  %vm2411_vm0 = vcmp.gt.f32.partialorder %v2295_v14, 0.0 }
 0x2a2   : > { %v2298_v47 = vpop.f32.mrf.mxu1  ;;  %v2126_v17 = vadd.f32 %v5653_v11, %v5569_v27  ;;  %v2128_v16 = vadd.f32 %v5657_v61, %v5565_v30 }
 0x2a3   : > { %v2299_v23 = vadd.f32 %v2298_v47, %v2106_v40  ;;  %v5689_v10 = vpop.f32.mrf.mxu0  ;;  %v2476_v49 = vmul.f32 0.2, %v2297_v48  ;;  %2822 = vmatprep.mubr.bf16.mxu0 %v2588_v43  ;;  %vm2412_vm12 = vcmp.gt.f32.partialorder %v2297_v48, 0.0  ;;  %v2539_v31 = vsel %vm2411_vm0, %v2295_v14, %v2475_v36 }
 0x2a4   : > { %v2300_v25 = vpop.f32.mrf.mxu1  ;;  %2823 = vmatmul.mubr.bf16.gmra.mxu0 %v2587_v21 }
 0x2a5   : > { %v2477_v57 = vmul.f32 0.2, %v2299_v23  ;;  %v2301_v56 = vadd.f32 %v2300_v25, %v2108_v32  ;;  %vm2413_vm13 = vcmp.gt.f32.partialorder %v2299_v23, 0.0  ;;  %v2540_v42 = vsel %vm2412_vm12, %v2297_v48, %v2476_v49 }
 0x2a7   : > { %v2304_v39 = vpop.f32.mrf.mxu1  ;;  %vm2414_vm14 = vcmp.gt.f32.partialorder %v2301_v56, 0.0  ;;  %v2478_v38 = vmul.f32 0.2, %v2301_v56  ;;  %v2541_v34 = vsel %vm2413_vm13, %v2299_v23, %v2477_v57  ;;  %v2134_v57 = vadd.f32 %v5663_v15, %v5565_v30 }
 0x2a8   : > { %v2305_v46 = vadd.f32 %v2304_v39, %v2112_v52  ;;  %v2589_v7 = vpack.c.bf16 %v2541_v34, %v2539_v31  ;;  %v2132_v39 = vadd.f32 %v5659_v60, %v5569_v27 }
 0x2a9   : > { %v5691_v1 = vpop.f32.mrf.mxu0  ;;  %v2306_v58 = vpop.f32.mrf.mxu1  ;;  %v2542_v54 = vsel %vm2414_vm14, %v2301_v56, %v2478_v38 }
 0x2aa   : > { %v2307_v55 = vadd.f32 %v2306_v58, %v2114_v20  ;;  %v2590_v45 = vpack.c.bf16 %v2542_v54, %v2540_v42  ;;  %v2479_v9 = vmul.f32 0.2, %v2305_v46  ;;  %vm2415_vm2 = vcmp.gt.f32.partialorder %v2305_v46, 0.0 }
 0x2ab   : > { %v5699_v22 = vpop.f32.mrf.mxu0  ;;  %v2308_v53 = vpop.f32.mrf.mxu1  ;;  %v2136_v20 = vadd.f32 %v5669_v63, %v5569_v27  ;;  %v2138_v54 = vadd.f32 %v5673_v28, %v5565_v30  ;;  %v2144_v28 = vadd.f32 %v5679_v5, %v5565_v30  ;;  %v4225_v5 = vld [vmem:[#allocation11 + $0x10] sm:$0xff]  }
 0x2ac   : > { %v2309_v6 = vadd.f32 %v2308_v53, %v2116_v8  ;;  %2830 = vmatprep.mubr.bf16.mxu0 %v2590_v45  ;;  %v2480_v41 = vmul.f32 0.2, %v2307_v55  ;;  %vm2416_vm3 = vcmp.gt.f32.partialorder %v2307_v55, 0.0  ;;  %v2543_v62 = vsel %vm2415_vm2, %v2305_v46, %v2479_v9 }
 0x2ad   : > { %v5704_v33 = vpop.f32.mrf.mxu0  ;;  %v2310_v51 = vpop.f32.mrf.mxu1  ;;  %2831 = vmatmul.mubr.bf16.gmra.mxu0 %v2589_v7 }
 0x2ae   : > { %v2481_v37 = vmul.f32 0.2, %v2309_v6  ;;  %v2311_v29 = vadd.f32 %v2310_v51, %v2118_v59  ;;  %vm2417_vm15 = vcmp.gt.f32.partialorder %v2309_v6, 0.0  ;;  %v2544_v32 = vsel %vm2416_vm3, %v2307_v55, %v2480_v41  ;;  %v4224_v55 = vld [vmem:[#allocation11 + $0x18] sm:$0xff]  }
 0x2af   : > { %v2314_v2 = vpop.f32.mrf.mxu1  ;;  %v5712_v26 = vpop.f32.mrf.mxu0  ;;  %3882 = vmatprep.subr.bf16.mxu1 %v4224_v55 }
 0x2b0   : > { %vm2418_vm1 = vcmp.gt.f32.partialorder %v2311_v29, 0.0  ;;  %v2482_v35 = vmul.f32 0.2, %v2311_v29  ;;  %v2545_v40 = vsel %vm2417_vm15, %v2309_v6, %v2481_v37  ;;  %v2315_v4 = vadd.f32 %v2314_v2, %v2122_v18  ;;  %3883 = vmatpush3.bf16.msra.mxu1 %v4224_v55 }
 0x2b1   : > { %v2316_v50 = vpop.f32.mrf.mxu1  ;;  %v2591_v11 = vpack.c.bf16 %v2545_v40, %v2543_v62  ;;  %v5717_v14 = vpop.f32.mrf.mxu0  ;;  %v2146_v2 = vadd.f32 %v5687_v13, %v5569_v27  ;;  %3884 = vmatprep.subr.bf16.mxu1 %v4225_v5 }
 0x2b2   : > { %v2317_v3 = vadd.f32 %v2316_v50, %v2124_v12  ;;  %v2546_v48 = vsel %vm2418_vm1, %v2311_v29, %v2482_v35  ;;  %v2483_v56 = vmul.f32 0.2, %v2315_v4  ;;  %vm2419_vm7 = vcmp.gt.f32.partialorder %v2315_v4, 0.0 }
 0x2b3   : > { %v2318_v0 = vpop.f32.mrf.mxu1  ;;  %v2592_v47 = vpack.c.bf16 %v2546_v48, %v2544_v32  ;;  %v5725_v36 = vpop.f32.mrf.mxu0  ;;  %v2142_v29 = vadd.f32 %v5675_v24, %v5569_v27 }
 0x2b4   : > { %v2319_v19 = vadd.f32 %v2318_v0, %v2126_v17  ;;  %v2484_v43 = vmul.f32 0.2, %v2317_v3  ;;  %vm2420_vm4 = vcmp.gt.f32.partialorder %v2317_v3, 0.0  ;;  %v2547_v53 = vsel %vm2419_vm7, %v2315_v4, %v2483_v56  ;;  %3885 = vmatpush3.bf16.msra.mxu1 %v4225_v5 }
 0x2b5   : > { %v2320_v23 = vpop.f32.mrf.mxu1  ;;  %2838 = vmatprep.mubr.bf16.mxu0 %v2592_v47  ;;  %v5729_v59 = vpop.f32.mrf.mxu0 }
 0x2b6   : > { %v2485_v21 = vmul.f32 0.2, %v2319_v19  ;;  %v2321_v25 = vadd.f32 %v2320_v23, %v2128_v16  ;;  %vm2421_vm5 = vcmp.gt.f32.partialorder %v2319_v19, 0.0  ;;  %2839 = vmatmul.mubr.bf16.gmra.mxu0 %v2591_v11  ;;  %v2548_v58 = vsel %vm2420_vm4, %v2317_v3, %v2484_v43  ;;  %v4226_v43 = vld [vmem:[#allocation11 + $0x8] sm:$0xff]  }
 0x2b7   : > { %v2324_v49 = vpop.f32.mrf.mxu1  ;;  %v5737_v44 = vpop.f32.mrf.mxu0  ;;  %v2148_v3 = vadd.f32 %v5689_v10, %v5565_v30  ;;  %v2154_v10 = vadd.f32 %v5699_v22, %v5565_v30  ;;  %3886 = vmatprep.subr.bf16.mxu1 %v4226_v43  ;;  %v4227_v22 = vld [vmem:[#allocation11] sm:$0xff]  }
 0x2b8   : > { %vm2422_vm6 = vcmp.gt.f32.partialorder %v2321_v25, 0.0  ;;  %v2486_v61 = vmul.f32 0.2, %v2321_v25  ;;  %v2549_v52 = vsel %vm2421_vm5, %v2319_v19, %v2485_v21  ;;  %v2325_v45 = vadd.f32 %v2324_v49, %v2132_v39  ;;  %3887 = vmatpush3.bf16.msra.mxu1 %v4226_v43 }
 0x2b9   : > { %v2326_v38 = vpop.f32.mrf.mxu1  ;;  %v2593_v63 = vpack.c.bf16 %v2549_v52, %v2547_v53  ;;  %v5741_v0 = vpop.f32.mrf.mxu0  ;;  %v2152_v21 = vadd.f32 %v5691_v1, %v5569_v27  ;;  %3888 = vmatprep.subr.bf16.mxu1 %v4227_v22 }
 0x2ba   : > { %v2327_v8 = vadd.f32 %v2326_v38, %v2134_v57  ;;  %v2550_v34 = vsel %vm2422_vm6, %v2321_v25, %v2486_v61  ;;  %v2487_v41 = vmul.f32 0.2, %v2325_v45  ;;  %vm2423_vm11 = vcmp.gt.f32.partialorder %v2325_v45, 0.0 }
 0x2bb   : > { %v2328_v42 = vpop.f32.mrf.mxu1  ;;  %v2594_v15 = vpack.c.bf16 %v2550_v34, %v2548_v58  ;;  %v2156_v25 = vadd.f32 %v5704_v33, %v5569_v27  ;;  %v2173_v49 = vpop.f32.mrf.mxu0 }
 0x2bc   : > { %v2329_v60 = vadd.f32 %v2328_v42, %v2136_v20  ;;  %v2488_v46 = vmul.f32 0.2, %v2327_v8  ;;  %vm2424_vm8 = vcmp.gt.f32.partialorder %v2327_v8, 0.0  ;;  %v2551_v32 = vsel %vm2423_vm11, %v2325_v45, %v2487_v41  ;;  %3889 = vmatpush3.bf16.msra.mxu1 %v4227_v22 }
 0x2bd   : > { %v2330_v31 = vpop.f32.mrf.mxu1  ;;  %2846 = vmatprep.mubr.bf16.mxu0 %v2594_v15  ;;  %v2175_v33 = vpop.f32.mrf.mxu0 }
 0x2be   : > { %v2489_v6 = vmul.f32 0.2, %v2329_v60  ;;  %v2331_v7 = vadd.f32 %v2330_v31, %v2138_v54  ;;  %vm2425_vm9 = vcmp.gt.f32.partialorder %v2329_v60, 0.0  ;;  %2847 = vmatmul.mubr.bf16.gmra.mxu0 %v2593_v63  ;;  %v2552_v18 = vsel %vm2424_vm8, %v2327_v8, %v2488_v46 }
 0x2bf   : > { %v2334_v51 = vpop.f32.mrf.mxu1  ;;  %v2158_v8 = vadd.f32 %v5712_v26, %v5565_v30  ;;  %v2162_v31 = vadd.f32 %v5717_v14, %v5569_v27  ;;  %v2166_v46 = vadd.f32 %v5729_v59, %v5569_v27 }
 0x2c0   : > { %vm2426_vm10 = vcmp.gt.f32.partialorder %v2331_v7, 0.0  ;;  %v2490_v37 = vmul.f32 0.2, %v2331_v7  ;;  %v2553_v9 = vsel %vm2425_vm9, %v2329_v60, %v2489_v6  ;;  %v2335_v48 = vadd.f32 %v2334_v51, %v2142_v29  ;;  %v2177_v6 = vpop.f32.mrf.mxu0 }
 0x2c1   : > { %v2336_v12 = vpop.f32.mrf.mxu1  ;;  %v2595_v13 = vpack.c.bf16 %v2553_v9, %v2551_v32  ;;  %v2164_v60 = vadd.f32 %v5725_v36, %v5565_v30  ;;  %v2168_v36 = vadd.f32 %v5737_v44, %v5565_v30  ;;  %v2172_v44 = vadd.f32 %v5741_v0, %v5569_v27 }
 0x2c2   : > { %v2337_v35 = vadd.f32 %v2336_v12, %v2144_v28  ;;  %v2554_v17 = vsel %vm2426_vm10, %v2331_v7, %v2490_v37  ;;  %v2491_v11 = vmul.f32 0.2, %v2335_v48  ;;  %vm2427_vm0 = vcmp.gt.f32.partialorder %v2335_v48, 0.0  ;;  %v2181_v14 = vpop.f32.mrf.mxu0 }
 0x2c3   : > { %v2338_v50 = vpop.f32.mrf.mxu1  ;;  %v2596_v40 = vpack.c.bf16 %v2554_v17, %v2552_v18 }
 0x2c4   : > { %v2339_v24 = vadd.f32 %v2338_v50, %v2146_v2  ;;  %v2492_v16 = vmul.f32 0.2, %v2337_v35  ;;  %vm2428_vm12 = vcmp.gt.f32.partialorder %v2337_v35, 0.0  ;;  %v2555_v1 = vsel %vm2427_vm0, %v2335_v48, %v2491_v11 }
 0x2c5   : > { %v2340_v47 = vpop.f32.mrf.mxu1  ;;  %2854 = vmatprep.mubr.bf16.mxu0 %v2596_v40 }
 0x2c6   : > { %v2493_v62 = vmul.f32 0.2, %v2339_v24  ;;  %v2341_v4 = vadd.f32 %v2340_v47, %v2148_v3  ;;  %vm2429_vm13 = vcmp.gt.f32.partialorder %v2339_v24, 0.0  ;;  %2855 = vmatmul.mubr.bf16.gmra.mxu0 %v2595_v13  ;;  %v2556_v39 = vsel %vm2428_vm12, %v2337_v35, %v2492_v16  ;;  %v2183_v13 = vpop.f32.mrf.mxu0 }
 0x2c7   : > { %v2344_v19 = vpop.f32.mrf.mxu1  ;;  %v2174_v3 = vadd.f32 %v2173_v49, %v5565_v30  ;;  %v2184_v22 = vadd.f32 %v2183_v13, %v5565_v30 }
 0x2c8   : > { %vm2430_vm14 = vcmp.gt.f32.partialorder %v2341_v4, 0.0  ;;  %v2494_v23 = vmul.f32 0.2, %v2341_v4  ;;  %v2557_v56 = vsel %vm2429_vm13, %v2339_v24, %v2493_v62  ;;  %v2345_v58 = vadd.f32 %v2344_v19, %v2152_v21  ;;  %v2185_v49 = vpop.f32.mrf.mxu0 }
 0x2c9   : > { %v2346_v57 = vpop.f32.mrf.mxu1  ;;  %v2597_v55 = vpack.c.bf16 %v2557_v56, %v2555_v1  ;;  %v2176_v24 = vadd.f32 %v2175_v33, %v5569_v27  ;;  %v2186_v1 = vadd.f32 %v2185_v49, %v5569_v27 }
 0x2ca   : > { %v2347_v61 = vadd.f32 %v2346_v57, %v2154_v10  ;;  %v2558_v20 = vsel %vm2430_vm14, %v2341_v4, %v2494_v23  ;;  %v2495_v26 = vmul.f32 0.2, %v2345_v58  ;;  %vm2431_vm2 = vcmp.gt.f32.partialorder %v2345_v58, 0.0 }
 0x2cb   : > { %v2348_v38 = vpop.f32.mrf.mxu1  ;;  %v2598_v52 = vpack.c.bf16 %v2558_v20, %v2556_v39  ;;  %v2178_v23 = vadd.f32 %v2177_v6, %v5565_v30 }
 0x2cc   : > { %v2349_v34 = vadd.f32 %v2348_v38, %v2156_v25  ;;  %v2496_v15 = vmul.f32 0.2, %v2347_v61  ;;  %vm2432_vm3 = vcmp.gt.f32.partialorder %v2347_v61, 0.0  ;;  %v2559_v12 = vsel %vm2431_vm2, %v2345_v58, %v2495_v26  ;;  %v2187_v58 = vpop.f32.mrf.mxu0 }
 0x2cd   : > { %v2350_v42 = vpop.f32.mrf.mxu1  ;;  %2862 = vmatprep.mubr.bf16.mxu0 %v2598_v52 }
 0x2ce   : > { %v2497_v54 = vmul.f32 0.2, %v2349_v34  ;;  %v2351_v53 = vadd.f32 %v2350_v42, %v2158_v8  ;;  %vm2433_vm15 = vcmp.gt.f32.partialorder %v2349_v34, 0.0  ;;  %2863 = vmatmul.mubr.bf16.gmra.mxu0 %v2597_v55  ;;  %v2560_v41 = vsel %vm2432_vm3, %v2347_v61, %v2496_v15 }
 0x2cf   : > { %v2354_v45 = vpop.f32.mrf.mxu1  ;;  %v2182_v8 = vadd.f32 %v2181_v14, %v5569_v27 }
 0x2d0   : > { %vm2434_vm1 = vcmp.gt.f32.partialorder %v2351_v53, 0.0  ;;  %v2498_v63 = vmul.f32 0.2, %v2351_v53  ;;  %v2561_v51 = vsel %vm2433_vm15, %v2349_v34, %v2497_v54  ;;  %v2355_v9 = vadd.f32 %v2354_v45, %v2162_v31 }
 0x2d1   : > { %v2356_v7 = vpop.f32.mrf.mxu1  ;;  %v2599_v18 = vpack.c.bf16 %v2561_v51, %v2559_v12  ;;  %v2188_v45 = vadd.f32 %v2187_v58, %v5565_v30 }
 0x2d2   : > { %v2357_v28 = vadd.f32 %v2356_v7, %v2164_v60  ;;  %v2562_v37 = vsel %vm2434_vm1, %v2351_v53, %v2498_v63  ;;  %v2499_v32 = vmul.f32 0.2, %v2355_v9  ;;  %vm2435_vm7 = vcmp.gt.f32.partialorder %v2355_v9, 0.0 }
 0x2d3   : > { %v2358_v29 = vpop.f32.mrf.mxu1  ;;  %v2600_v2 = vpack.c.bf16 %v2562_v37, %v2560_v41 }
 0x2d4   : > { %v2359_v35 = vadd.f32 %v2358_v29, %v2166_v46  ;;  %v2500_v59 = vmul.f32 0.2, %v2357_v28  ;;  %vm2436_vm4 = vcmp.gt.f32.partialorder %v2357_v28, 0.0  ;;  %v2563_v43 = vsel %vm2435_vm7, %v2355_v9, %v2499_v32  ;;  %v5773_v9 = vld [vmem:[%s5935_s6] ss:$0 sm:$0xff] }
 0x2d5   : > { %v2360_v17 = vpop.f32.mrf.mxu1  ;;  %2870 = vmatprep.mubr.bf16.mxu0 %v2600_v2 }
 0x2d6   : > { %v2501_v50 = vmul.f32 0.2, %v2359_v35  ;;  %v2361_v40 = vadd.f32 %v2360_v17, %v2168_v36  ;;  %vm2437_vm5 = vcmp.gt.f32.partialorder %v2359_v35, 0.0  ;;  %2871 = vmatmul.mubr.bf16.gmra.mxu0 %v2599_v18  ;;  %v2564_v4 = vsel %vm2436_vm4, %v2357_v28, %v2500_v59 }
 0x2d7   : > { %v2364_v5 = vpop.f32.mrf.mxu1 }
 0x2d8   : > { %vm2438_vm6 = vcmp.gt.f32.partialorder %v2361_v40, 0.0  ;;  %v2502_v48 = vmul.f32 0.2, %v2361_v40  ;;  %v2565_v16 = vsel %vm2437_vm5, %v2359_v35, %v2501_v50  ;;  %v2365_v21 = vadd.f32 %v2364_v5, %v2172_v44 }
 0x2d9   : > { %v2366_v47 = vpop.f32.mrf.mxu1  ;;  %v2601_v57 = vpack.c.bf16 %v2565_v16, %v2563_v43 }
 0x2da   : > { %v2367_v62 = vadd.f32 %v2366_v47, %v2174_v3  ;;  %v2566_v19 = vsel %vm2438_vm6, %v2361_v40, %v2502_v48  ;;  %v2503_v38 = vmul.f32 0.2, %v2365_v21  ;;  %vm2439_vm11 = vcmp.gt.f32.partialorder %v2365_v21, 0.0 }
 0x2db   : > { %v2368_v10 = vpop.f32.mrf.mxu1  ;;  %v2602_v11 = vpack.c.bf16 %v2566_v19, %v2564_v4 }
 0x2dc   : > { %v2369_v25 = vadd.f32 %v2368_v10, %v2176_v24  ;;  %v2504_v0 = vmul.f32 0.2, %v2367_v62  ;;  %vm2440_vm8 = vcmp.gt.f32.partialorder %v2367_v62, 0.0  ;;  %v2567_v60 = vsel %vm2439_vm11, %v2365_v21, %v2503_v38 }
 0x2dd   : > { %v2370_v56 = vpop.f32.mrf.mxu1  ;;  %2878 = vmatprep.mubr.bf16.mxu0 %v2602_v11 }
 0x2de   : > { %v2505_v61 = vmul.f32 0.2, %v2369_v25  ;;  %v2371_v39 = vadd.f32 %v2370_v56, %v2178_v23  ;;  %vm2441_vm9 = vcmp.gt.f32.partialorder %v2369_v25, 0.0  ;;  %2879 = vmatmul.mubr.bf16.gmra.mxu0 %v2601_v57  ;;  %v2568_v42 = vsel %vm2440_vm8, %v2367_v62, %v2504_v0 }
 0x2df   : > { %v2374_v20 = vpop.f32.mrf.mxu1 }
 0x2e0   : > { %vm2442_vm10 = vcmp.gt.f32.partialorder %v2371_v39, 0.0  ;;  %v2506_v52 = vmul.f32 0.2, %v2371_v39  ;;  %v2569_v33 = vsel %vm2441_vm9, %v2369_v25, %v2505_v61  ;;  %v2375_v26 = vadd.f32 %v2374_v20, %v2182_v8 }
 0x2e1   : > { %v2376_v34 = vpop.f32.mrf.mxu1  ;;  %v2603_v31 = vpack.c.bf16 %v2569_v33, %v2567_v60 }
 0x2e2   : > { %v2377_v55 = vadd.f32 %v2376_v34, %v2184_v22  ;;  %v2570_v15 = vsel %vm2442_vm10, %v2371_v39, %v2506_v52  ;;  %v2507_v51 = vmul.f32 0.2, %v2375_v26  ;;  %vm2443_vm0 = vcmp.gt.f32.partialorder %v2375_v26, 0.0 }
 0x2e3   : > { %v2378_v54 = vpop.f32.mrf.mxu1  ;;  %v2604_v53 = vpack.c.bf16 %v2570_v15, %v2568_v42 }
 0x2e4   : > { %v2379_v63 = vadd.f32 %v2378_v54, %v2186_v1  ;;  %v2508_v6 = vmul.f32 0.2, %v2377_v55  ;;  %vm2444_vm12 = vcmp.gt.f32.partialorder %v2377_v55, 0.0  ;;  %v2571_v2 = vsel %vm2443_vm0, %v2375_v26, %v2507_v51 }
 0x2e5   : > { %v2380_v46 = vpop.f32.mrf.mxu1  ;;  %2886 = vmatprep.mubr.bf16.mxu0 %v2604_v53 }
 0x2e6   : > { %v2509_v7 = vmul.f32 0.2, %v2379_v63  ;;  %v2381_v27 = vadd.f32 %v2380_v46, %v2188_v45  ;;  %vm2445_vm13 = vcmp.gt.f32.partialorder %v2379_v63, 0.0  ;;  %2887 = vmatmul.mubr.bf16.gmra.mxu0 %v2603_v31  ;;  %v2572_v37 = vsel %vm2444_vm12, %v2377_v55, %v2508_v6 }
 0x2e8   : > { %vm2446_vm14 = vcmp.gt.f32.partialorder %v2381_v27, 0.0  ;;  %v2510_v28 = vmul.f32 0.2, %v2381_v27  ;;  %v2573_v41 = vsel %vm2445_vm13, %v2379_v63, %v2509_v7 }
 0x2e9   : > { %v2605_v36 = vpack.c.bf16 %v2573_v41, %v2571_v2 }
 0x2ea   : > { %v2574_v29 = vsel %vm2446_vm14, %v2381_v27, %v2510_v28 }
 0x2eb   : > { %v2606_v30 = vpack.c.bf16 %v2574_v29, %v2572_v37 }
 0x2ed   : > { %2894 = vmatprep.mubr.bf16.mxu0 %v2606_v30 }
 0x2ee   : > { %2895 = vmatmul.mubr.bf16.gmra.mxu0 %v2605_v36 }
 0x32b   : > { %v3754_v12 = vpop.f32.mrf.mxu0 }
 0x32d   : > { %v3755_v35 = vpop.f32.mrf.mxu0 }
 0x32e   : > { %v3756_v14 = vadd.f32 %v3755_v35, %v3754_v12 }
 0x32f   : > { %v3757_v18 = vpop.f32.mrf.mxu0 }
 0x330   : > { %v2777_v17 = vadd.f32 %v3756_v14, %v5773_v9 }
 0x331   : > { %v3758_v59 = vpop.f32.mrf.mxu0 }
 0x332   : > { %v3759_v50 = vadd.f32 %v3758_v59, %v3757_v18  ;;  %v2935_v40 = vmul.f32 0.2, %v2777_v17  ;;  %vm2903_vm3 = vcmp.gt.f32.partialorder %v2777_v17, 0.0 }
 0x334   : > { %v2780_v5 = vadd.f32 %v3759_v50, %v5773_v9  ;;  %v2967_v44 = vsel %vm2903_vm3, %v2777_v17, %v2935_v40 }
 0x336   : > { %vm2904_vm15 = vcmp.gt.f32.partialorder %v2780_v5, 0.0  ;;  %v2936_v3 = vmul.f32 0.2, %v2780_v5  ;;  %v3760_v32 = vpop.f32.mrf.mxu0 }
 0x338   : > { %v3761_v48 = vpop.f32.mrf.mxu0  ;;  %v2968_v24 = vsel %vm2904_vm15, %v2780_v5, %v2936_v3 }
 0x339   : > { %v3762_v13 = vadd.f32 %v3761_v48, %v3760_v32  ;;  %v2999_v47 = vpack.c.bf16 %v2968_v24, %v2967_v44 }
 0x33a   : > { %v3763_v16 = vpop.f32.mrf.mxu0 }
 0x33b   : > { %v2785_v62 = vadd.f32 %v3762_v13, %v5773_v9  ;;  %3890 = vmatprep.mubr.bf16.mxu1 %v2999_v47 }
 0x33c   : > { %v3764_v4 = vpop.f32.mrf.mxu0 }
 0x33d   : > { %v3765_v19 = vadd.f32 %v3764_v4, %v3763_v16  ;;  %v2937_v10 = vmul.f32 0.2, %v2785_v62  ;;  %vm2905_vm1 = vcmp.gt.f32.partialorder %v2785_v62, 0.0 }
 0x33f   : > { %v2788_v11 = vadd.f32 %v3765_v19, %v5773_v9  ;;  %v3766_v23 = vpop.f32.mrf.mxu0  ;;  %v2969_v49 = vsel %vm2905_vm1, %v2785_v62, %v2937_v10 }
 0x341   : > { %vm2906_vm2 = vcmp.gt.f32.partialorder %v2788_v11, 0.0  ;;  %v2938_v43 = vmul.f32 0.2, %v2788_v11  ;;  %v3767_v21 = vpop.f32.mrf.mxu0 }
 0x342   : > { %v3768_v25 = vadd.f32 %v3767_v21, %v3766_v23 }
 0x343   : > { %v2970_v57 = vsel %vm2906_vm2, %v2788_v11, %v2938_v43  ;;  %v3769_v56 = vpop.f32.mrf.mxu0 }
 0x344   : > { %v3000_v0 = vpack.c.bf16 %v2970_v57, %v2969_v49  ;;  %v2793_v61 = vadd.f32 %v3768_v25, %v5773_v9 }
 0x345   : > { %v3770_v39 = vpop.f32.mrf.mxu0 }
 0x346   : > { %v3771_v20 = vadd.f32 %v3770_v39, %v3769_v56  ;;  %3891 = vmatmul.mubr.bf16.vlgmr.msra.gmra.mxu1 %v3000_v0  ;;  %v2939_v22 = vmul.f32 0.2, %v2793_v61  ;;  %vm2907_vm4 = vcmp.gt.f32.partialorder %v2793_v61, 0.0 }
 0x348   : > { %v2796_v38 = vadd.f32 %v3771_v20, %v5773_v9  ;;  %v2971_v33 = vsel %vm2907_vm4, %v2793_v61, %v2939_v22 }
 0x349   : > { %v3772_v52 = vpop.f32.mrf.mxu0 }
 0x34a   : > { %vm2908_vm5 = vcmp.gt.f32.partialorder %v2796_v38, 0.0  ;;  %v2940_v8 = vmul.f32 0.2, %v2796_v38 }
 0x34b   : > { %v3773_v1 = vpop.f32.mrf.mxu0 }
 0x34c   : > { %v3774_v58 = vadd.f32 %v3773_v1, %v3772_v52  ;;  %v2972_v55 = vsel %vm2908_vm5, %v2796_v38, %v2940_v8 }
 0x34d   : > { %v3775_v34 = vpop.f32.mrf.mxu0  ;;  %v3001_v15 = vpack.c.bf16 %v2972_v55, %v2971_v33 }
 0x34e   : > { %v2801_v42 = vadd.f32 %v3774_v58, %v5773_v9 }
 0x34f   : > { %v3776_v54 = vpop.f32.mrf.mxu0  ;;  %3894 = vmatprep.mubr.bf16.mxu1 %v3001_v15 }
 0x350   : > { %v3777_v53 = vadd.f32 %v3776_v54, %v3775_v34  ;;  %v2941_v45 = vmul.f32 0.2, %v2801_v42  ;;  %vm2909_vm6 = vcmp.gt.f32.partialorder %v2801_v42, 0.0 }
 0x352   : > { %v2804_v60 = vadd.f32 %v3777_v53, %v5773_v9  ;;  %v3778_v26 = vpop.f32.mrf.mxu0  ;;  %v2973_v6 = vsel %vm2909_vm6, %v2801_v42, %v2941_v45 }
 0x354   : > { %vm2910_vm7 = vcmp.gt.f32.partialorder %v2804_v60, 0.0  ;;  %v2942_v63 = vmul.f32 0.2, %v2804_v60  ;;  %v3779_v31 = vpop.f32.mrf.mxu0 }
 0x355   : > { %v3780_v46 = vadd.f32 %v3779_v31, %v3778_v26 }
 0x356   : > { %v2974_v7 = vsel %vm2910_vm7, %v2804_v60, %v2942_v63  ;;  %v3781_v27 = vpop.f32.mrf.mxu0 }
 0x357   : > { %v2809_v51 = vadd.f32 %v3780_v46, %v5773_v9  ;;  %v3002_v28 = vpack.c.bf16 %v2974_v7, %v2973_v6 }
 0x358   : > { %v3782_v41 = vpop.f32.mrf.mxu0 }
 0x359   : > { %v3783_v37 = vadd.f32 %v3782_v41, %v3781_v27  ;;  %3895 = vmatmul.mubr.bf16.gmra.mxu1 %v3002_v28  ;;  %v2943_v29 = vmul.f32 0.2, %v2809_v51  ;;  %vm2911_vm8 = vcmp.gt.f32.partialorder %v2809_v51, 0.0 }
 0x35b   : > { %v2812_v30 = vadd.f32 %v3783_v37, %v5773_v9  ;;  %v3784_v2 = vpop.f32.mrf.mxu0  ;;  %v2975_v18 = vsel %vm2911_vm8, %v2809_v51, %v2943_v29 }
 0x35d   : > { %vm2912_vm9 = vcmp.gt.f32.partialorder %v2812_v30, 0.0  ;;  %v2944_v36 = vmul.f32 0.2, %v2812_v30  ;;  %v3785_v12 = vpop.f32.mrf.mxu0 }
 0x35e   : > { %v3786_v35 = vadd.f32 %v3785_v12, %v3784_v2 }
 0x35f   : > { %v3787_v14 = vpop.f32.mrf.mxu0  ;;  %v2976_v17 = vsel %vm2912_vm9, %v2812_v30, %v2944_v36 }
 0x360   : > { %v2817_v59 = vadd.f32 %v3786_v35, %v5773_v9  ;;  %v3003_v50 = vpack.c.bf16 %v2976_v17, %v2975_v18 }
 0x361   : > { %v3788_v40 = vpop.f32.mrf.mxu0 }
 0x362   : > { %v3789_v5 = vadd.f32 %v3788_v40, %v3787_v14  ;;  %3898 = vmatprep.mubr.bf16.mxu1 %v3003_v50  ;;  %v2945_v3 = vmul.f32 0.2, %v2817_v59  ;;  %vm2913_vm10 = vcmp.gt.f32.partialorder %v2817_v59, 0.0 }
 0x364   : > { %v2820_v32 = vadd.f32 %v3789_v5, %v5773_v9  ;;  %v3790_v48 = vpop.f32.mrf.mxu0  ;;  %v2977_v47 = vsel %vm2913_vm10, %v2817_v59, %v2945_v3 }
 0x366   : > { %vm2914_vm11 = vcmp.gt.f32.partialorder %v2820_v32, 0.0  ;;  %v2946_v44 = vmul.f32 0.2, %v2820_v32  ;;  %v3791_v24 = vpop.f32.mrf.mxu0 }
 0x367   : > { %v3792_v13 = vadd.f32 %v3791_v24, %v3790_v48 }
 0x368   : > { %v2978_v16 = vsel %vm2914_vm11, %v2820_v32, %v2946_v44  ;;  %v3793_v62 = vpop.f32.mrf.mxu0 }
 0x369   : > { %v2825_v4 = vadd.f32 %v3792_v13, %v5773_v9  ;;  %v3004_v19 = vpack.c.bf16 %v2978_v16, %v2977_v47 }
 0x36a   : > { %v3794_v10 = vpop.f32.mrf.mxu0 }
 0x36b   : > { %v3795_v11 = vadd.f32 %v3794_v10, %v3793_v62  ;;  %3899 = vmatmul.mubr.bf16.gmra.mxu1 %v3004_v19  ;;  %v2947_v43 = vmul.f32 0.2, %v2825_v4  ;;  %vm2915_vm12 = vcmp.gt.f32.partialorder %v2825_v4, 0.0 }
 0x36d   : > { %v3796_v23 = vpop.f32.mrf.mxu0  ;;  %v2828_v21 = vadd.f32 %v3795_v11, %v5773_v9  ;;  %v2979_v61 = vsel %vm2915_vm12, %v2825_v4, %v2947_v43 }
 0x36f   : > { %v3797_v25 = vpop.f32.mrf.mxu0  ;;  %vm2916_vm13 = vcmp.gt.f32.partialorder %v2828_v21, 0.0  ;;  %v2948_v49 = vmul.f32 0.2, %v2828_v21 }
 0x370   : > { %v3798_v57 = vadd.f32 %v3797_v25, %v3796_v23 }
 0x371   : > { %v3799_v56 = vpop.f32.mrf.mxu0  ;;  %v2980_v39 = vsel %vm2916_vm13, %v2828_v21, %v2948_v49 }
 0x372   : > { %v2833_v0 = vadd.f32 %v3798_v57, %v5773_v9  ;;  %v3005_v22 = vpack.c.bf16 %v2980_v39, %v2979_v61 }
 0x373   : > { %v3800_v20 = vpop.f32.mrf.mxu0 }
 0x374   : > { %v3801_v38 = vadd.f32 %v3800_v20, %v3799_v56  ;;  %3902 = vmatprep.mubr.bf16.mxu1 %v3005_v22  ;;  %v2949_v8 = vmul.f32 0.2, %v2833_v0  ;;  %vm2917_vm14 = vcmp.gt.f32.partialorder %v2833_v0, 0.0 }
 0x376   : > { %v3802_v52 = vpop.f32.mrf.mxu0  ;;  %v2836_v1 = vadd.f32 %v3801_v38, %v5773_v9  ;;  %v2981_v42 = vsel %vm2917_vm14, %v2833_v0, %v2949_v8 }
 0x378   : > { %v3803_v58 = vpop.f32.mrf.mxu0  ;;  %vm2918_vm0 = vcmp.gt.f32.partialorder %v2836_v1, 0.0  ;;  %v2950_v34 = vmul.f32 0.2, %v2836_v1 }
 0x379   : > { %v3804_v33 = vadd.f32 %v3803_v58, %v3802_v52 }
 0x37a   : > { %v3805_v55 = vpop.f32.mrf.mxu0  ;;  %v2982_v15 = vsel %vm2918_vm0, %v2836_v1, %v2950_v34 }
 0x37b   : > { %v2841_v54 = vadd.f32 %v3804_v33, %v5773_v9  ;;  %v3006_v45 = vpack.c.bf16 %v2982_v15, %v2981_v42 }
 0x37c   : > { %v3806_v53 = vpop.f32.mrf.mxu0 }
 0x37d   : > { %v3807_v60 = vadd.f32 %v3806_v53, %v3805_v55  ;;  %3903 = vmatmul.mubr.bf16.gmra.mxu1 %v3006_v45  ;;  %v2951_v63 = vmul.f32 0.2, %v2841_v54  ;;  %vm2919_vm3 = vcmp.gt.f32.partialorder %v2841_v54, 0.0 }
 0x37e   : > { %v3808_v26 = vpop.f32.mrf.mxu0 }
 0x37f   : > { %v2844_v31 = vadd.f32 %v3807_v60, %v5773_v9  ;;  %v2983_v28 = vsel %vm2919_vm3, %v2841_v54, %v2951_v63 }
 0x380   : > { %v3809_v46 = vpop.f32.mrf.mxu0 }
 0x381   : > { %vm2920_vm15 = vcmp.gt.f32.partialorder %v2844_v31, 0.0  ;;  %v2952_v6 = vmul.f32 0.2, %v2844_v31  ;;  %v3810_v7 = vadd.f32 %v3809_v46, %v3808_v26 }
 0x382   : > { %v3811_v27 = vpop.f32.mrf.mxu0 }
 0x383   : > { %v2849_v51 = vadd.f32 %v3810_v7, %v5773_v9  ;;  %v2984_v41 = vsel %vm2920_vm15, %v2844_v31, %v2952_v6 }
 0x384   : > { %v3812_v37 = vpop.f32.mrf.mxu0  ;;  %v3007_v29 = vpack.c.bf16 %v2984_v41, %v2983_v28 }
 0x385   : > { %v3813_v30 = vadd.f32 %v3812_v37, %v3811_v27  ;;  %v2953_v36 = vmul.f32 0.2, %v2849_v51  ;;  %vm2921_vm1 = vcmp.gt.f32.partialorder %v2849_v51, 0.0 }
 0x386   : > { %v3814_v2 = vpop.f32.mrf.mxu0  ;;  %3906 = vmatprep.mubr.bf16.mxu1 %v3007_v29 }
 0x387   : > { %v2852_v12 = vadd.f32 %v3813_v30, %v5773_v9  ;;  %v2985_v59 = vsel %vm2921_vm1, %v2849_v51, %v2953_v36 }
 0x388   : > { %v3815_v35 = vpop.f32.mrf.mxu0 }
 0x389   : > { %vm2922_vm2 = vcmp.gt.f32.partialorder %v2852_v12, 0.0  ;;  %v2954_v14 = vmul.f32 0.2, %v2852_v12  ;;  %v3816_v18 = vadd.f32 %v3815_v35, %v3814_v2 }
 0x38a   : > { %v3817_v17 = vpop.f32.mrf.mxu0 }
 0x38b   : > { %v2986_v50 = vsel %vm2922_vm2, %v2852_v12, %v2954_v14  ;;  %v2857_v40 = vadd.f32 %v3816_v18, %v5773_v9 }
 0x38c   : > { %v3818_v5 = vpop.f32.mrf.mxu0  ;;  %v3008_v3 = vpack.c.bf16 %v2986_v50, %v2985_v59 }
 0x38d   : > { %v3819_v32 = vadd.f32 %v3818_v5, %v3817_v17  ;;  %v2955_v44 = vmul.f32 0.2, %v2857_v40  ;;  %vm2923_vm4 = vcmp.gt.f32.partialorder %v2857_v40, 0.0 }
 0x38e   : > { %v3820_v48 = vpop.f32.mrf.mxu0  ;;  %3907 = vmatmul.mubr.bf16.gmra.mxu1 %v3008_v3 }
 0x38f   : > { %v2860_v24 = vadd.f32 %v3819_v32, %v5773_v9  ;;  %v2987_v19 = vsel %vm2923_vm4, %v2857_v40, %v2955_v44 }
 0x390   : > { %v3821_v13 = vpop.f32.mrf.mxu0 }
 0x391   : > { %vm2924_vm5 = vcmp.gt.f32.partialorder %v2860_v24, 0.0  ;;  %v2956_v47 = vmul.f32 0.2, %v2860_v24  ;;  %v3822_v16 = vadd.f32 %v3821_v13, %v3820_v48 }
 0x392   : > { %v3823_v62 = vpop.f32.mrf.mxu0 }
 0x393   : > { %v2865_v4 = vadd.f32 %v3822_v16, %v5773_v9  ;;  %v2988_v10 = vsel %vm2924_vm5, %v2860_v24, %v2956_v47 }
 0x394   : > { %v3824_v11 = vpop.f32.mrf.mxu0  ;;  %v3009_v23 = vpack.c.bf16 %v2988_v10, %v2987_v19  ;;  %v5810_v19 = vld [vmem:[%s5937_s8] ss:$0 sm:$0xff] }
 0x395   : > { %v3825_v43 = vadd.f32 %v3824_v11, %v3823_v62  ;;  %v2957_v25 = vmul.f32 0.2, %v2865_v4  ;;  %vm2925_vm6 = vcmp.gt.f32.partialorder %v2865_v4, 0.0 }
 0x396   : > { %v3826_v21 = vpop.f32.mrf.mxu0  ;;  %3910 = vmatprep.mubr.bf16.mxu1 %v3009_v23 }
 0x397   : > { %v2868_v49 = vadd.f32 %v3825_v43, %v5773_v9  ;;  %v2989_v39 = vsel %vm2925_vm6, %v2865_v4, %v2957_v25 }
 0x398   : > { %v3827_v57 = vpop.f32.mrf.mxu0 }
 0x399   : > { %vm2926_vm7 = vcmp.gt.f32.partialorder %v2868_v49, 0.0  ;;  %v2958_v56 = vmul.f32 0.2, %v2868_v49  ;;  %v3828_v0 = vadd.f32 %v3827_v57, %v3826_v21 }
 0x39a   : > { %v3829_v61 = vpop.f32.mrf.mxu0 }
 0x39b   : > { %v2990_v20 = vsel %vm2926_vm7, %v2868_v49, %v2958_v56  ;;  %v2873_v22 = vadd.f32 %v3828_v0, %v5773_v9 }
 0x39c   : > { %v3830_v38 = vpop.f32.mrf.mxu0  ;;  %v3010_v52 = vpack.c.bf16 %v2990_v20, %v2989_v39 }
 0x39d   : > { %v3831_v8 = vadd.f32 %v3830_v38, %v3829_v61  ;;  %v2959_v58 = vmul.f32 0.2, %v2873_v22  ;;  %vm2927_vm8 = vcmp.gt.f32.partialorder %v2873_v22, 0.0 }
 0x39e   : > { %v3832_v1 = vpop.f32.mrf.mxu0  ;;  %3911 = vmatmul.mubr.bf16.gmra.mxu1 %v3010_v52 }
 0x39f   : > { %v2876_v34 = vadd.f32 %v3831_v8, %v5773_v9  ;;  %v2991_v53 = vsel %vm2927_vm8, %v2873_v22, %v2959_v58 }
 0x3a0   : > { %v3833_v33 = vpop.f32.mrf.mxu0 }
 0x3a1   : > { %vm2928_vm9 = vcmp.gt.f32.partialorder %v2876_v34, 0.0  ;;  %v2960_v55 = vmul.f32 0.2, %v2876_v34  ;;  %v3834_v42 = vadd.f32 %v3833_v33, %v3832_v1 }
 0x3a2   : > { %v3835_v15 = vpop.f32.mrf.mxu0 }
 0x3a3   : > { %v2881_v54 = vadd.f32 %v3834_v42, %v5773_v9  ;;  %v2992_v45 = vsel %vm2928_vm9, %v2876_v34, %v2960_v55 }
 0x3a4   : > { %v3836_v60 = vpop.f32.mrf.mxu0  ;;  %v3011_v26 = vpack.c.bf16 %v2992_v45, %v2991_v53 }
 0x3a5   : > { %v3837_v63 = vadd.f32 %v3836_v60, %v3835_v15  ;;  %v2961_v46 = vmul.f32 0.2, %v2881_v54  ;;  %vm2929_vm10 = vcmp.gt.f32.partialorder %v2881_v54, 0.0 }
 0x3a6   : > { %v3838_v31 = vpop.f32.mrf.mxu0  ;;  %3914 = vmatprep.mubr.bf16.mxu1 %v3011_v26 }
 0x3a7   : > { %v2884_v6 = vadd.f32 %v3837_v63, %v5773_v9  ;;  %v2993_v41 = vsel %vm2929_vm10, %v2881_v54, %v2961_v46 }
 0x3a8   : > { %v3839_v7 = vpop.f32.mrf.mxu0 }
 0x3a9   : > { %vm2930_vm11 = vcmp.gt.f32.partialorder %v2884_v6, 0.0  ;;  %v2962_v27 = vmul.f32 0.2, %v2884_v6  ;;  %v3840_v51 = vadd.f32 %v3839_v7, %v3838_v31 }
 0x3aa   : > { %v3841_v28 = vpop.f32.mrf.mxu0 }
 0x3ab   : > { %v2994_v37 = vsel %vm2930_vm11, %v2884_v6, %v2962_v27  ;;  %v2889_v29 = vadd.f32 %v3840_v51, %v5773_v9 }
 0x3ac   : > { %v3842_v30 = vpop.f32.mrf.mxu0  ;;  %v3012_v2 = vpack.c.bf16 %v2994_v37, %v2993_v41 }
 0x3ad   : > { %v3843_v36 = vadd.f32 %v3842_v30, %v3841_v28  ;;  %v2963_v35 = vmul.f32 0.2, %v2889_v29  ;;  %vm2931_vm12 = vcmp.gt.f32.partialorder %v2889_v29, 0.0 }
 0x3ae   : > { %v3844_v12 = vpop.f32.mrf.mxu0  ;;  %3915 = vmatmul.mubr.bf16.gmra.mxu1 %v3012_v2 }
 0x3af   : > { %v2892_v14 = vadd.f32 %v3843_v36, %v5773_v9  ;;  %v2995_v5 = vsel %vm2931_vm12, %v2889_v29, %v2963_v35 }
 0x3b0   : > { %v3845_v18 = vpop.f32.mrf.mxu0 }
 0x3b1   : > { %vm2932_vm13 = vcmp.gt.f32.partialorder %v2892_v14, 0.0  ;;  %v2964_v17 = vmul.f32 0.2, %v2892_v14  ;;  %v3846_v59 = vadd.f32 %v3845_v18, %v3844_v12 }
 0x3b2   : > { %v3847_v50 = vpop.f32.mrf.mxu0 }
 0x3b3   : > { %v2897_v40 = vadd.f32 %v3846_v59, %v5773_v9  ;;  %v2996_v3 = vsel %vm2932_vm13, %v2892_v14, %v2964_v17 }
 0x3b4   : > { %v3848_v32 = vpop.f32.mrf.mxu0  ;;  %v3013_v48 = vpack.c.bf16 %v2996_v3, %v2995_v5 }
 0x3b5   : > { %v3849_v44 = vadd.f32 %v3848_v32, %v3847_v50  ;;  %v2965_v24 = vmul.f32 0.2, %v2897_v40  ;;  %vm2933_vm14 = vcmp.gt.f32.partialorder %v2897_v40, 0.0 }
 0x3b6   : > { %3918 = vmatprep.mubr.bf16.mxu1 %v3013_v48 }
 0x3b7   : > { %v2900_v13 = vadd.f32 %v3849_v44, %v5773_v9  ;;  %v2997_v16 = vsel %vm2933_vm14, %v2897_v40, %v2965_v24 }
 0x3b9   : > { %vm2934_vm0 = vcmp.gt.f32.partialorder %v2900_v13, 0.0  ;;  %v2966_v47 = vmul.f32 0.2, %v2900_v13 }
 0x3bb   : > { %v2998_v62 = vsel %vm2934_vm0, %v2900_v13, %v2966_v47 }
 0x3bc   : > { %v3014_v4 = vpack.c.bf16 %v2998_v62, %v2997_v16 }
 0x3be   : > { %3919 = vmatmul.mubr.bf16.gmra.mxu1 %v3014_v4 }
 0x406   : > { %v3892_v10 = vpop.f32.mrf.mxu1 }
 0x407   : > { %v3129_v11 = vadd.f32 %v3892_v10, %v5810_v19 }
 0x408   : > { %v3120_v23 = vpop.f32.mrf.mxu1 }
 0x409   : > { %v3249_v43 = vsub.f32 0.0, %v3129_v11  ;;  %v3121_v21 = vadd.f32 %v5810_v19, %v3120_v23 }
 0x40a   : > { %v3893_v9 = vpop.f32.mrf.mxu1 }
 0x40b   : > { %v3283_v25 = vmul.f32 1.442695, %v3249_v43  ;;  %v3247_v49 = vsub.f32 0.0, %v3121_v21  ;;  %v3132_v57 = vadd.f32 %v3893_v9, %v5810_v19 }
 0x40c   : > { %v3123_v56 = vpop.f32.mrf.mxu1 }
 0x40d   : > { %4228 = vpow2.f32 %v3283_v25  ;;  %v3279_v0 = vmul.f32 1.442695, %v3247_v49  ;;  %v3250_v61 = vsub.f32 0.0, %v3132_v57  ;;  %v3124_v39 = vadd.f32 %v5810_v19, %v3123_v56 }
 0x40f   : > { %4230 = vpow2.f32 %v3279_v0  ;;  %v3285_v20 = vmul.f32 1.442695, %v3250_v61  ;;  %v3248_v22 = vsub.f32 0.0, %v3124_v39 }
 0x411   : > { %4232 = vpow2.f32 %v3285_v20  ;;  %v3281_v38 = vmul.f32 1.442695, %v3248_v22 }
 0x413   : > { %4234 = vpow2.f32 %v3281_v38 }
 0x419   : > { %v3896_v52 = vpop.f32.mrf.mxu1 }
 0x41a   : > { %v3145_v8 = vadd.f32 %v3896_v52, %v5810_v19  ;;  %v4229_v1 = vpop.eup %4228 }
 0x41b   : > { %v3136_v58 = vpop.f32.mrf.mxu1  ;;  %v3345_v34 = vadd.f32 1.0, %v4229_v1 }
 0x41c   : > { %v3253_v33 = vsub.f32 0.0, %v3145_v8  ;;  %v3137_v55 = vadd.f32 %v5810_v19, %v3136_v58  ;;  %v4231_v42 = vpop.eup %4230 }
 0x41d   : > { %v3897_v15 = vpop.f32.mrf.mxu1  ;;  %4236 = vrcp.f32 %v3345_v34  ;;  %v3343_v54 = vadd.f32 1.0, %v4231_v42 }
 0x41e   : > { %v3291_v53 = vmul.f32 1.442695, %v3253_v33  ;;  %v3251_v45 = vsub.f32 0.0, %v3137_v55  ;;  %v4233_v60 = vpop.eup %4232  ;;  %v3148_v26 = vadd.f32 %v3897_v15, %v5810_v19 }
 0x41f   : > { %v3139_v63 = vpop.f32.mrf.mxu1  ;;  %4238 = vrcp.f32 %v3343_v54  ;;  %v3346_v31 = vadd.f32 1.0, %v4233_v60 }
 0x420   : > { %v3287_v46 = vmul.f32 1.442695, %v3251_v45  ;;  %v3140_v6 = vadd.f32 %v5810_v19, %v3139_v63  ;;  %v4235_v7 = vpop.eup %4234  ;;  %4240 = vpow2.f32 %v3291_v53  ;;  %v3254_v27 = vsub.f32 0.0, %v3148_v26 }
 0x421   : > { %4242 = vrcp.f32 %v3346_v31  ;;  %v3344_v51 = vadd.f32 1.0, %v4235_v7 }
 0x422   : > { %v3252_v28 = vsub.f32 0.0, %v3140_v6  ;;  %4244 = vpow2.f32 %v3287_v46  ;;  %v3293_v41 = vmul.f32 1.442695, %v3254_v27 }
 0x423   : > { %4246 = vrcp.f32 %v3344_v51 }
 0x424   : > { %v3289_v37 = vmul.f32 1.442695, %v3252_v28  ;;  %4248 = vpow2.f32 %v3293_v41 }
 0x426   : > { %4250 = vpow2.f32 %v3289_v37 }
 0x42a   : > { %v4237_v29 = vpop.eup %4236 }
 0x42b   : > { %v3900_v30 = vpop.f32.mrf.mxu1  ;;  %3409 = vst [vmem:[%s5821_s29 + $0x10] sm:$0xff] %v4237_v29 }
 0x42c   : > { %v3161_v2 = vadd.f32 %v3900_v30, %v5810_v19  ;;  %v4239_v36 = vpop.eup %4238 }
 0x42d   : > { %v3152_v12 = vpop.f32.mrf.mxu1  ;;  %v4241_v35 = vpop.eup %4240  ;;  %3407 = vst [vmem:[%s5821_s29] sm:$0xff] %v4239_v36 }
 0x42e   : > { %v3257_v14 = vsub.f32 0.0, %v3161_v2  ;;  %v3153_v18 = vadd.f32 %v5810_v19, %v3152_v12  ;;  %v4243_v17 = vpop.eup %4242  ;;  %v3349_v59 = vadd.f32 1.0, %v4241_v35 }
 0x42f   : > { %v3901_v50 = vpop.f32.mrf.mxu1  ;;  %v4245_v40 = vpop.eup %4244  ;;  %3410 = vst [vmem:[%s5821_s29 + $0x18] sm:$0xff] %v4243_v17 }
 0x430   : > { %v3299_v5 = vmul.f32 1.442695, %v3257_v14  ;;  %v3255_v3 = vsub.f32 0.0, %v3153_v18  ;;  %v3164_v32 = vadd.f32 %v3901_v50, %v5810_v19  ;;  %v4247_v48 = vpop.eup %4246  ;;  %4252 = vrcp.f32 %v3349_v59 }
 0x431   : > { %v3347_v44 = vadd.f32 1.0, %v4245_v40  ;;  %v3155_v24 = vpop.f32.mrf.mxu1  ;;  %v4249_v13 = vpop.eup %4248  ;;  %3408 = vst [vmem:[%s5821_s29 + $0x8] sm:$0xff] %v4247_v48 }
 0x432   : > { %4254 = vpow2.f32 %v3299_v5  ;;  %v3295_v47 = vmul.f32 1.442695, %v3255_v3  ;;  %v3258_v16 = vsub.f32 0.0, %v3164_v32  ;;  %v3156_v62 = vadd.f32 %v5810_v19, %v3155_v24 }
 0x433   : > { %v4251_v4 = vpop.eup %4250  ;;  %4256 = vrcp.f32 %v3347_v44  ;;  %v3350_v10 = vadd.f32 1.0, %v4249_v13 }
 0x434   : > { %v3348_v11 = vadd.f32 1.0, %v4251_v4  ;;  %4258 = vpow2.f32 %v3295_v47  ;;  %v3301_v23 = vmul.f32 1.442695, %v3258_v16  ;;  %v3256_v43 = vsub.f32 0.0, %v3156_v62 }
 0x435   : > { %4260 = vrcp.f32 %v3350_v10 }
 0x436   : > { %4262 = vrcp.f32 %v3348_v11  ;;  %v3297_v21 = vmul.f32 1.442695, %v3256_v43 }
 0x437   : > { %4264 = vpow2.f32 %v3301_v23 }
 0x438   : > { %4266 = vpow2.f32 %v3297_v21 }
 0x43d   : > { %v3904_v9 = vpop.f32.mrf.mxu1  ;;  %v4253_v49 = vpop.eup %4252 }
 0x43e   : > { %v3177_v25 = vadd.f32 %v3904_v9, %v5810_v19  ;;  %3413 = vst [vmem:[%s5821_s29 + $0x30] sm:$0xff] %v4253_v49 }
 0x43f   : > { %v3168_v57 = vpop.f32.mrf.mxu1  ;;  %v4255_v56 = vpop.eup %4254 }
 0x440   : > { %v3261_v0 = vsub.f32 0.0, %v3177_v25  ;;  %v3169_v61 = vadd.f32 %v5810_v19, %v3168_v57  ;;  %v4257_v39 = vpop.eup %4256  ;;  %v3353_v20 = vadd.f32 1.0, %v4255_v56 }
 0x441   : > { %v3905_v22 = vpop.f32.mrf.mxu1  ;;  %v4259_v38 = vpop.eup %4258  ;;  %3411 = vst [vmem:[%s5821_s29 + $0x20] sm:$0xff] %v4257_v39 }
 0x442   : > { %v3307_v52 = vmul.f32 1.442695, %v3261_v0  ;;  %v3259_v8 = vsub.f32 0.0, %v3169_v61  ;;  %v3180_v1 = vadd.f32 %v3905_v22, %v5810_v19  ;;  %v4261_v58 = vpop.eup %4260  ;;  %4268 = vrcp.f32 %v3353_v20 }
 0x443   : > { %v3351_v34 = vadd.f32 1.0, %v4259_v38  ;;  %v3171_v33 = vpop.f32.mrf.mxu1  ;;  %v4263_v55 = vpop.eup %4262  ;;  %3414 = vst [vmem:[%s5821_s29 + $0x38] sm:$0xff] %v4261_v58 }
 0x444   : > { %4270 = vpow2.f32 %v3307_v52  ;;  %v3303_v42 = vmul.f32 1.442695, %v3259_v8  ;;  %v3262_v15 = vsub.f32 0.0, %v3180_v1  ;;  %v3172_v54 = vadd.f32 %v5810_v19, %v3171_v33  ;;  %v4265_v53 = vpop.eup %4264  ;;  %3412 = vst [vmem:[%s5821_s29 + $0x28] sm:$0xff] %v4263_v55 }
 0x445   : > { %4272 = vrcp.f32 %v3351_v34  ;;  %v4267_v45 = vpop.eup %4266  ;;  %v3354_v60 = vadd.f32 1.0, %v4265_v53 }
 0x446   : > { %4274 = vpow2.f32 %v3303_v42  ;;  %v3309_v26 = vmul.f32 1.442695, %v3262_v15  ;;  %v3260_v63 = vsub.f32 0.0, %v3172_v54  ;;  %v3352_v31 = vadd.f32 1.0, %v4267_v45 }
 0x447   : > { %4276 = vrcp.f32 %v3354_v60 }
 0x448   : > { %v3305_v46 = vmul.f32 1.442695, %v3260_v63  ;;  %4278 = vrcp.f32 %v3352_v31 }
 0x449   : > { %4280 = vpow2.f32 %v3309_v26 }
 0x44a   : > { %4282 = vpow2.f32 %v3305_v46 }
 0x44e   : > { %v3908_v6 = vpop.f32.mrf.mxu1 }
 0x44f   : > { %v3193_v7 = vadd.f32 %v3908_v6, %v5810_v19  ;;  %v4269_v51 = vpop.eup %4268 }
 0x450   : > { %v3184_v27 = vpop.f32.mrf.mxu1  ;;  %3417 = vst [vmem:[%s5821_s29 + $0x50] sm:$0xff] %v4269_v51 }
 0x451   : > { %v3265_v28 = vsub.f32 0.0, %v3193_v7  ;;  %v3185_v41 = vadd.f32 %v5810_v19, %v3184_v27  ;;  %v4271_v37 = vpop.eup %4270 }
 0x452   : > { %v3909_v29 = vpop.f32.mrf.mxu1  ;;  %v4273_v30 = vpop.eup %4272  ;;  %v3357_v2 = vadd.f32 1.0, %v4271_v37 }
 0x453   : > { %v3315_v36 = vmul.f32 1.442695, %v3265_v28  ;;  %v3263_v12 = vsub.f32 0.0, %v3185_v41  ;;  %v3196_v35 = vadd.f32 %v3909_v29, %v5810_v19  ;;  %v4275_v14 = vpop.eup %4274  ;;  %3415 = vst [vmem:[%s5821_s29 + $0x40] sm:$0xff] %v4273_v30 }
 0x454   : > { %v3187_v18 = vpop.f32.mrf.mxu1  ;;  %4284 = vrcp.f32 %v3357_v2  ;;  %v3355_v17 = vadd.f32 1.0, %v4275_v14  ;;  %v4277_v40 = vpop.eup %4276 }
 0x455   : > { %v3311_v59 = vmul.f32 1.442695, %v3263_v12  ;;  %v3266_v50 = vsub.f32 0.0, %v3196_v35  ;;  %4286 = vpow2.f32 %v3315_v36  ;;  %v3188_v5 = vadd.f32 %v5810_v19, %v3187_v18  ;;  %v4279_v3 = vpop.eup %4278  ;;  %3418 = vst [vmem:[%s5821_s29 + $0x58] sm:$0xff] %v4277_v40 }
 0x456   : > { %4288 = vrcp.f32 %v3355_v17  ;;  %v4281_v48 = vpop.eup %4280  ;;  %3416 = vst [vmem:[%s5821_s29 + $0x48] sm:$0xff] %v4279_v3 }
 0x457   : > { %v3317_v32 = vmul.f32 1.442695, %v3266_v50  ;;  %4290 = vpow2.f32 %v3311_v59  ;;  %v3264_v44 = vsub.f32 0.0, %v3188_v5  ;;  %v4283_v24 = vpop.eup %4282  ;;  %v3358_v13 = vadd.f32 1.0, %v4281_v48 }
 0x458   : > { %v3356_v47 = vadd.f32 1.0, %v4283_v24 }
 0x459   : > { %4292 = vpow2.f32 %v3317_v32  ;;  %v3313_v16 = vmul.f32 1.442695, %v3264_v44 }
 0x45a   : > { %4294 = vrcp.f32 %v3358_v13 }
 0x45b   : > { %4296 = vrcp.f32 %v3356_v47 }
 0x45c   : > { %4298 = vpow2.f32 %v3313_v16 }
 0x45e   : > { %v3912_v62 = vpop.f32.mrf.mxu1 }
 0x45f   : > { %v3209_v4 = vadd.f32 %v3912_v62, %v5810_v19 }
 0x460   : > { %v3200_v10 = vpop.f32.mrf.mxu1 }
 0x461   : > { %v3269_v11 = vsub.f32 0.0, %v3209_v4  ;;  %v3201_v23 = vadd.f32 %v5810_v19, %v3200_v10  ;;  %v4285_v43 = vpop.eup %4284 }
 0x462   : > { %v3913_v21 = vpop.f32.mrf.mxu1  ;;  %v4287_v9 = vpop.eup %4286  ;;  %3421 = vst [vmem:[%s5821_s29 + $0x70] sm:$0xff] %v4285_v43 }
 0x463   : > { %v3323_v25 = vmul.f32 1.442695, %v3269_v11  ;;  %v3267_v49 = vsub.f32 0.0, %v3201_v23  ;;  %v3212_v57 = vadd.f32 %v3913_v21, %v5810_v19  ;;  %v4289_v56 = vpop.eup %4288  ;;  %v3361_v0 = vadd.f32 1.0, %v4287_v9 }
 0x464   : > { %v3203_v61 = vpop.f32.mrf.mxu1  ;;  %v4291_v39 = vpop.eup %4290  ;;  %3419 = vst [vmem:[%s5821_s29 + $0x60] sm:$0xff] %v4289_v56 }
 0x465   : > { %4300 = vpow2.f32 %v3323_v25  ;;  %v3319_v20 = vmul.f32 1.442695, %v3267_v49  ;;  %v3270_v22 = vsub.f32 0.0, %v3212_v57  ;;  %v3204_v38 = vadd.f32 %v5810_v19, %v3203_v61 }
 0x466   : > { %v4293_v52 = vpop.eup %4292  ;;  %4302 = vrcp.f32 %v3361_v0  ;;  %v3359_v8 = vadd.f32 1.0, %v4291_v39 }
 0x467   : > { %v3362_v1 = vadd.f32 1.0, %v4293_v52  ;;  %4304 = vpow2.f32 %v3319_v20  ;;  %v3325_v58 = vmul.f32 1.442695, %v3270_v22  ;;  %v3268_v34 = vsub.f32 0.0, %v3204_v38  ;;  %v4295_v33 = vpop.eup %4294 }
 0x468   : > { %4306 = vrcp.f32 %v3359_v8  ;;  %v4297_v55 = vpop.eup %4296  ;;  %3422 = vst [vmem:[%s5821_s29 + $0x78] sm:$0xff] %v4295_v33 }
 0x469   : > { %4308 = vrcp.f32 %v3362_v1  ;;  %v3321_v42 = vmul.f32 1.442695, %v3268_v34  ;;  %v4299_v15 = vpop.eup %4298  ;;  %3420 = vst [vmem:[%s5821_s29 + $0x68] sm:$0xff] %v4297_v55 }
 0x46a   : > { %4310 = vpow2.f32 %v3325_v58  ;;  %v3360_v54 = vadd.f32 1.0, %v4299_v15 }
 0x46b   : > { %4312 = vpow2.f32 %v3321_v42 }
 0x46c   : > { %4314 = vrcp.f32 %v3360_v54 }
 0x46e   : > { %v3916_v53 = vpop.f32.mrf.mxu1 }
 0x46f   : > { %v3225_v45 = vadd.f32 %v3916_v53, %v5810_v19 }
 0x470   : > { %v3216_v60 = vpop.f32.mrf.mxu1 }
 0x471   : > { %v3273_v26 = vsub.f32 0.0, %v3225_v45  ;;  %v3217_v63 = vadd.f32 %v5810_v19, %v3216_v60 }
 0x472   : > { %v4301_v31 = vpop.eup %4300  ;;  %v3917_v46 = vpop.f32.mrf.mxu1 }
 0x473   : > { %v4303_v6 = vpop.eup %4302  ;;  %v3365_v7 = vadd.f32 1.0, %v4301_v31  ;;  %v3331_v27 = vmul.f32 1.442695, %v3273_v26  ;;  %v3271_v51 = vsub.f32 0.0, %v3217_v63  ;;  %v3228_v28 = vadd.f32 %v3917_v46, %v5810_v19 }
 0x474   : > { %v4305_v41 = vpop.eup %4304  ;;  %3425 = vst [vmem:[%s5821_s29 + $0x90] sm:$0xff] %v4303_v6  ;;  %v3219_v37 = vpop.f32.mrf.mxu1 }
 0x475   : > { %v4307_v29 = vpop.eup %4306  ;;  %4316 = vrcp.f32 %v3365_v7  ;;  %v3363_v30 = vadd.f32 1.0, %v4305_v41  ;;  %v3327_v2 = vmul.f32 1.442695, %v3271_v51  ;;  %v3274_v36 = vsub.f32 0.0, %v3228_v28 }
 0x476   : > { %v4309_v12 = vpop.eup %4308  ;;  %3423 = vst [vmem:[%s5821_s29 + $0x80] sm:$0xff] %v4307_v29  ;;  %4318 = vpow2.f32 %v3331_v27  ;;  %v3220_v35 = vadd.f32 %v5810_v19, %v3219_v37 }
 0x477   : > { %v4311_v14 = vpop.eup %4310  ;;  %3426 = vst [vmem:[%s5821_s29 + $0x98] sm:$0xff] %v4309_v12  ;;  %4320 = vrcp.f32 %v3363_v30  ;;  %v3333_v18 = vmul.f32 1.442695, %v3274_v36 }
 0x478   : > { %v4313_v17 = vpop.eup %4312  ;;  %v3366_v59 = vadd.f32 1.0, %v4311_v14  ;;  %4322 = vpow2.f32 %v3327_v2  ;;  %v3272_v50 = vsub.f32 0.0, %v3220_v35 }
 0x479   : > { %v3364_v40 = vadd.f32 1.0, %v4313_v17  ;;  %4324 = vpow2.f32 %v3333_v18  ;;  %v4315_v5 = vpop.eup %4314 }
 0x47a   : > { %4326 = vrcp.f32 %v3366_v59  ;;  %v3329_v3 = vmul.f32 1.442695, %v3272_v50  ;;  %3424 = vst [vmem:[%s5821_s29 + $0x88] sm:$0xff] %v4315_v5 }
 0x47b   : > { %4328 = vrcp.f32 %v3364_v40 }
 0x47c   : > { %4330 = vpow2.f32 %v3329_v3 }
 0x47e   : > { %v3920_v32 = vpop.f32.mrf.mxu1 }
 0x47f   : > { %v3241_v48 = vadd.f32 %v3920_v32, %v5810_v19 }
 0x480   : > { %v3232_v44 = vpop.f32.mrf.mxu1 }
 0x481   : > { %v3277_v24 = vsub.f32 0.0, %v3241_v48  ;;  %v3233_v13 = vadd.f32 %v5810_v19, %v3232_v44 }
 0x482   : > { %v4317_v47 = vpop.eup %4316  ;;  %v3921_v16 = vpop.f32.mrf.mxu1 }
 0x483   : > { %v4319_v62 = vpop.eup %4318  ;;  %3429 = vst [vmem:[%s5821_s29 + $0xb0] sm:$0xff] %v4317_v47  ;;  %v3339_v4 = vmul.f32 1.442695, %v3277_v24  ;;  %v3275_v10 = vsub.f32 0.0, %v3233_v13  ;;  %v3244_v11 = vadd.f32 %v3921_v16, %v5810_v19 }
 0x484   : > { %v4321_v23 = vpop.eup %4320  ;;  %v3369_v43 = vadd.f32 1.0, %v4319_v62  ;;  %v3235_v21 = vpop.f32.mrf.mxu1 }
 0x485   : > { %v4323_v9 = vpop.eup %4322  ;;  %3427 = vst [vmem:[%s5821_s29 + $0xa0] sm:$0xff] %v4321_v23  ;;  %4332 = vpow2.f32 %v3339_v4  ;;  %v3335_v25 = vmul.f32 1.442695, %v3275_v10  ;;  %v3278_v49 = vsub.f32 0.0, %v3244_v11  ;;  %v3236_v57 = vadd.f32 %v5810_v19, %v3235_v21 }
 0x486   : > { %v4325_v56 = vpop.eup %4324  ;;  %4334 = vrcp.f32 %v3369_v43  ;;  %v3367_v0 = vadd.f32 1.0, %v4323_v9 }
 0x487   : > { %v4327_v61 = vpop.eup %4326  ;;  %v3370_v39 = vadd.f32 1.0, %v4325_v56  ;;  %4336 = vpow2.f32 %v3335_v25  ;;  %v3341_v20 = vmul.f32 1.442695, %v3278_v49  ;;  %v3276_v22 = vsub.f32 0.0, %v3236_v57 }
 0x488   : > { %v4329_v38 = vpop.eup %4328  ;;  %3430 = vst [vmem:[%s5821_s29 + $0xb8] sm:$0xff] %v4327_v61  ;;  %4338 = vrcp.f32 %v3367_v0 }
 0x489   : > { %v4331_v52 = vpop.eup %4330  ;;  %3428 = vst [vmem:[%s5821_s29 + $0xa8] sm:$0xff] %v4329_v38  ;;  %4340 = vrcp.f32 %v3370_v39  ;;  %v3337_v8 = vmul.f32 1.442695, %v3276_v22 }
 0x48a   : > { %v3368_v1 = vadd.f32 1.0, %v4331_v52  ;;  %4342 = vpow2.f32 %v3341_v20 }
 0x48b   : > { %4344 = vpow2.f32 %v3337_v8 }
 0x48c   : > { %4346 = vrcp.f32 %v3368_v1 }
 0x492   : > { %v4333_v19 = vpop.eup %4332 }
 0x493   : > { %v4335_v58 = vpop.eup %4334  ;;  %v3373_v34 = vadd.f32 1.0, %v4333_v19 }
 0x494   : > { %v4337_v33 = vpop.eup %4336  ;;  %3433 = vst [vmem:[%s5821_s29 + $0xd0] sm:$0xff] %v4335_v58 }
 0x495   : > { %v4339_v55 = vpop.eup %4338  ;;  %4348 = vrcp.f32 %v3373_v34  ;;  %v3371_v42 = vadd.f32 1.0, %v4337_v33 }
 0x496   : > { %v4341_v15 = vpop.eup %4340  ;;  %3431 = vst [vmem:[%s5821_s29 + $0xc0] sm:$0xff] %v4339_v55 }
 0x497   : > { %v4343_v54 = vpop.eup %4342  ;;  %3434 = vst [vmem:[%s5821_s29 + $0xd8] sm:$0xff] %v4341_v15  ;;  %4350 = vrcp.f32 %v3371_v42 }
 0x498   : > { %v4345_v53 = vpop.eup %4344  ;;  %v3374_v45 = vadd.f32 1.0, %v4343_v54 }
 0x499   : > { %v4347_v60 = vpop.eup %4346  ;;  %v3372_v26 = vadd.f32 1.0, %v4345_v53 }
 0x49a   : > { %3432 = vst [vmem:[%s5821_s29 + $0xc8] sm:$0xff] %v4347_v60  ;;  %4352 = vrcp.f32 %v3374_v45 }
 0x49b   : > { %4354 = vrcp.f32 %v3372_v26 }
 0x4a2   : > { %v4349_v63 = vpop.eup %4348 }
 0x4a3   : > { %3437 = vst [vmem:[%s5821_s29 + $0xf0] sm:$0xff] %v4349_v63 }
 0x4a4   : > { %v4351_v31 = vpop.eup %4350 }
 0x4a5   : > { %3435 = vst [vmem:[%s5821_s29 + $0xe0] sm:$0xff] %v4351_v31 }
 0x4a7   : > { %v4353_v46 = vpop.eup %4352 }
 0x4a8   : > { %v4355_v6 = vpop.eup %4354  ;;  %3438 = vst [vmem:[%s5821_s29 + $0xf8] sm:$0xff] %v4353_v46 }
 0x4a9   : > { %3436 = vst [vmem:[%s5821_s29 + $0xe8] sm:$0xff] %v4355_v6 }
 0x4aa   : > { %4527 = shalt.err (!%p4524_p3)
}
 0x4ab   : > { %s4528_s26 = scalar_lea.hbm %s5882_s17, 4096  ;;  %s4532_s25 = scalar_lea.hbm %s5938_s9, 8192 }
 0x4ac   : > { %p4529_p9 = scmp.ne.s32.totalorder %s5882_s17, %s4528_s26  ;;  %p4533_p13 = scmp.lt.s32.totalorder %s5882_s17, %s5938_s9 }
 0x4ad   : > { %p4534_p0 = scmp.lt.s32.totalorder %s4532_s25, %s4528_s26 }
 0x4ae   : > { %p4530_p6 = pnand %p4529_p9, %p5978_p4 }
 0x4af   : > { %p4535_p2 = por %p4534_p0, %p4533_p13 }
 0x4b0   : > { %p4531_p12 = pneg %p4530_p6 }
 0x4b2   : > { %p4536_p8 = pnand %p4535_p2, %p4531_p12 }
 0x4b4   : > { %4539 = shalt.err (!%p4536_p8)
}
 0x4b5   : > { %s4606_s20 = smov 128   ;;  %s4607_s3 = smov 8  }
 0x4b6   : > { %3960 = dma.vmem_to_hbm [thread:$0]  (%p5978_p4), %s5884_s1, 4096, %s5882_s17, %s3440_s23, %s4606_s20, %s4606_s20, %s4607_s3  }
 0x4b7 PF: > { %s3468_s16 = sand.u32 1, %s4578_s30   ;;  %p5979_p10 = scmp.ne.s32.totalorder %s5960_s13, 0 }
 0x4b8   : > { %p5980_p11 = scmp.ge.s32.totalorder %s4590_s12, 2  ;;  %s3469_s15 = scalar_lea.sflag [#allocation4], %s3468_s16 }
 0x4ba   : > { %p3983_p7 = pnand %p5980_p11, %p5979_p10 }
 0x4bc   : > { %p3984_p5 = pneg %p3983_p7 }
 0x4be   : > { %4573 = dma.done.wait (%p3984_p5), %s3469_s15, 4096  }
 0x4bf   : > { %4575 = vsyncadd (%p3984_p5), %s3469_s15, 4294963200  ;;  %p25_p1 = scmp.ge.s32.totalorder %s4756_s22, 4   ;;  %s5981_s30 = smov %s4582_s10 }
 0x4c0   : > { %s5982_s10 = smov %s4586_s11  ;;  %s5983_s11 = smov %s4768_s18 }
 0x4c1   : > { %s5984_s12 = smov %s4756_s22  ;;  %27 = sbr.rel (!%p25_p1) target bundleno = 12 (0xc), region = 121 }
 0x4c6   :  { %3474 = vsyncpa [#allocation3], 1 }
 0x4c7   :  { %3476 = vsyncpa [#allocation3 + $0x1], 1 }
 0x4c8   :  { %3477 = vsyncpa [#allocation6], 1 }
 0x4c9   :  { %3478 = vsyncpa [#allocation9], 1 }
 0x4ca   :  { %3479 = vsyncpa [#allocation12], 1 }
 0x4cb   :  { %3480 = vsyncpa [#allocation4], 1 }
 0x4cc   :  { %3482 = vsyncpa [#allocation4 + $0x1], 1 }

</bundles_post_ra>
